<compile_context>
chip_gen: v6e
topology: v6e:2x2x1
jax: 0.10.0
libtpu: 0.0.40
codegen_flags: <defaults>
</compile_context>

<pallas_src>
import functools

import jax
import jax.numpy as jnp
from jax.experimental import pallas as pl
from jax.experimental.pallas import tpu as pltpu


# ----------------------------------------------------------------------------
# small helpers
# ----------------------------------------------------------------------------
def _round_up(x, m):
    return ((x + m - 1) // m) * m


def _pad2d(x, rows, cols):
    r, c = x.shape
    if r == rows and c == cols:
        return x
    return jnp.pad(x, ((0, rows - r), (0, cols - c)))


# ----------------------------------------------------------------------------
# Pallas kernel 1: tiled matmul (+ optional bias) + activations (MXU hot path)
# ----------------------------------------------------------------------------
def _matmul_kernel(*refs, in_act, out_act, has_bias, use_scratch):
    nin = 3 if has_bias else 2
    a_ref, b_ref = refs[0], refs[1]
    bias_ref = refs[2] if has_bias else None
    o_ref = refs[nin]
    acc_ref = refs[nin + 1] if use_scratch else o_ref   # f32 out: accumulate in place

    k = pl.program_id(2)

    @pl.when(k == 0)
    def _():
        acc_ref[...] = jnp.zeros_like(acc_ref)

    a = a_ref[...]                                       # bf16 tile
    if in_act == "leaky":                                # LeakyReLU(0.2) fused on inputs
        a = jnp.where(a >= 0, a, a * 0.2)
    elif in_act == "relu":
        a = jnp.maximum(a, 0)
    acc_ref[...] += jnp.dot(a, b_ref[...], preferred_element_type=jnp.float32)

    if use_scratch or has_bias or out_act != "none":
        @pl.when(k == pl.num_programs(2) - 1)
        def _():
            r = acc_ref[...]
            if has_bias:
                r = r + bias_ref[...]                    # bias only once, on last K step
            if out_act == "relu":
                r = jnp.maximum(r, 0.0)
            o_ref[...] = r.astype(o_ref.dtype)


def matmul_bias_act(a, b, bias=None, *, in_act="none", out_act="none",
                    out_dtype=jnp.bfloat16):
    """out = out_act(in_act(a) @ b + bias); a:(M,K) b:(K,N) bias:(N,) or None.

    Inputs are cast to bf16 for the MXU, accumulation is f32.  Arrays are
    zero-padded to tile multiples (safe: in_act(0)==0, zero B rows/cols add 0)
    and the result is sliced back when padding was required.
    """
    M, K = a.shape
    K2, N = b.shape
    assert K == K2
    tm = min(512, _round_up(M, 16))      # 16: full bf16 sublane packing
    tk = min(1024, _round_up(K, 128))
    tn = min(1024, _round_up(N, 128))
    Mp, Kp, Np = _round_up(M, tm), _round_up(K, tk), _round_up(N, tn)

    a_p = _pad2d(a.astype(jnp.bfloat16), Mp, Kp)
    b_p = _pad2d(b.astype(jnp.bfloat16), Kp, Np)

    has_bias = bias is not None
    use_scratch = jnp.dtype(out_dtype) != jnp.dtype(jnp.float32)

    in_specs = [pl.BlockSpec((tm, tk), lambda i, j, k: (i, k)),
                pl.BlockSpec((tk, tn), lambda i, j, k: (k, j))]
    inputs = [a_p, b_p]
    if has_bias:
        in_specs.append(pl.BlockSpec((1, tn), lambda i, j, k: (0, j)))
        inputs.append(_pad2d(bias.reshape(1, N).astype(jnp.float32), 1, Np))

    scratch = [pltpu.VMEM((tm, tn), jnp.float32)] if use_scratch else []

    kernel = functools.partial(_matmul_kernel, in_act=in_act, out_act=out_act,
                               has_bias=has_bias, use_scratch=use_scratch)
    out = pl.pallas_call(
        kernel,
        out_shape=jax.ShapeDtypeStruct((Mp, Np), out_dtype),
        grid_spec=pltpu.PrefetchScalarGridSpec(
            num_scalar_prefetch=0,
            grid=(Mp // tm, Np // tn, Kp // tk),
            in_specs=in_specs,
            out_specs=pl.BlockSpec((tm, tn), lambda i, j, k: (i, j)),
            scratch_shapes=scratch,
        ),
        compiler_params=pltpu.CompilerParams(
            dimension_semantics=("parallel", "parallel", "arbitrary")),
    )(*inputs)
    if (Mp, Np) != (M, N):
        out = out[:M, :N]
    return out


# ----------------------------------------------------------------------------
# Pallas kernel 2: fused col2im (ConvTranspose2d k=4,s=2,p=1 overlap-add) + BN stats
# ----------------------------------------------------------------------------
# up_cols row r = (n, a, b) with r = a*Win + b; column (kh, kw, c).  Output pixel
# (oh, ow) = (2a + rh, 2b + rw) gathers tap (kh, kw) from input pixel (a - dh, b - dw):
#   rh = 0: (kh=1, dh=0), (kh=3, dh=+1);  rh = 1: (kh=2, dh=0), (kh=0, dh=-1)   (same for W)
# A shift of dh rows in `a` is a shift of dh*Win flattened rows; zero-fill handles the
# H boundary, the two (HW,1) masks handle the W boundary (iw==0 / iw==Win-1).
def _col2im_bnstats_kernel(cols_ref, mwp_ref, mwn_ref, spat_ref, stats_ref,
                           *, hin, win, c):
    hw = hin * win
    cols = cols_ref[0].astype(jnp.float32)               # (HW, 16*C)
    mwp = mwp_ref[...]                                    # (HW, 1): 1.0 where iw >= 1
    mwn = mwn_ref[...]                                    # (HW, 1): 1.0 where iw <= Win-2

    def tap(kh, kw):
        t = (kh * 4 + kw) * c
        return cols[:, t:t + c]

    def shd(x, s):                                        # result[r] = x[r-s], zeros on top
        return jnp.concatenate([jnp.zeros((s, c), jnp.float32), x[:hw - s]], axis=0)

    def shu(x, s):                                        # result[r] = x[r+s], zeros at bottom
        return jnp.concatenate([x[s:], jnp.zeros((s, c), jnp.float32)], axis=0)

    p00 = tap(1, 1) + shd(tap(3, 1), win) + mwp * (shd(tap(1, 3), 1) + shd(tap(3, 3), win + 1))
    p01 = tap(1, 2) + shd(tap(3, 2), win) + mwn * (shu(tap(1, 0), 1) + shd(tap(3, 0), win - 1))
    p10 = tap(2, 1) + shu(tap(0, 1), win) + mwp * (shd(tap(2, 3), 1) + shu(tap(0, 3), win - 1))
    p11 = tap(2, 2) + shu(tap(0, 2), win) + mwn * (shu(tap(2, 0), 1) + shu(tap(0, 0), win + 1))

    spat_ref[0, 0] = p00
    spat_ref[0, 1] = p01
    spat_ref[0, 2] = p10
    spat_ref[0, 3] = p11

    s = (jnp.sum(p00, axis=0, keepdims=True) + jnp.sum(p01, axis=0, keepdims=True)
         + jnp.sum(p10, axis=0, keepdims=True) + jnp.sum(p11, axis=0, keepdims=True))
    sq = (jnp.sum(p00 * p00, axis=0, keepdims=True) + jnp.sum(p01 * p01, axis=0, keepdims=True)
          + jnp.sum(p10 * p10, axis=0, keepdims=True) + jnp.sum(p11 * p11, axis=0, keepdims=True))
    stats_ref[0] = jnp.concatenate([s, sq], axis=0)       # (2, C) per-image partial stats


def col2im_bn_stats(up_cols, N, Hin, Win, C):
    """up_cols:(N*Hin*Win, 16*C) -> spatial (N, 4, Hin*Win, C) in phase layout
    (p = rh*2 + rw) plus per-channel (2, C) [sum, sum-of-squares] over all real pixels."""
    HW = Hin * Win
    cols3 = up_cols.reshape(N, HW, 16 * C)
    iw = jnp.arange(HW, dtype=jnp.int32) % Win
    mwp = (iw >= 1).astype(jnp.float32).reshape(HW, 1)
    mwn = (iw <= Win - 2).astype(jnp.float32).reshape(HW, 1)

    kernel = functools.partial(_col2im_bnstats_kernel, hin=Hin, win=Win, c=C)
    spat, stats = pl.pallas_call(
        kernel,
        out_shape=(jax.ShapeDtypeStruct((N, 4, HW, C), jnp.float32),
                   jax.ShapeDtypeStruct((N, 2, C), jnp.float32)),
        grid_spec=pltpu.PrefetchScalarGridSpec(
            num_scalar_prefetch=0,
            grid=(N,),
            in_specs=[pl.BlockSpec((1, HW, 16 * C), lambda n: (n, 0, 0)),
                      pl.BlockSpec((HW, 1), lambda n: (0, 0)),
                      pl.BlockSpec((HW, 1), lambda n: (0, 0))],
            out_specs=[pl.BlockSpec((1, 4, HW, C), lambda n: (n, 0, 0, 0)),
                       pl.BlockSpec((1, 2, C), lambda n: (n, 0, 0))],
        ),
        compiler_params=pltpu.CompilerParams(dimension_semantics=("parallel",)),
    )(cols3, mwp, mwn)
    return spat, jnp.sum(stats, axis=0)                   # (N,4,HW,C), (2,C)


# ----------------------------------------------------------------------------
# Pallas kernel 3: BatchNorm (training-mode batch stats) normalize pass
# ----------------------------------------------------------------------------
def _bn_apply_kernel(x_ref, stats_ref, gamma_ref, beta_ref, o_ref, *, count, eps):
    x = x_ref[...]
    mean = stats_ref[0:1, :] * (1.0 / count)
    ex2 = stats_ref[1:2, :] * (1.0 / count)
    var = jnp.maximum(ex2 - mean * mean, 0.0)             # biased var, as PyTorch training BN
    inv = jax.lax.rsqrt(var + eps)
    o_ref[...] = ((x - mean) * (inv * gamma_ref[...]) + beta_ref[...]).astype(o_ref.dtype)


def batchnorm_apply(x2d, stats, gamma, beta, *, count, eps=1e-5, out_dtype=jnp.float32):
    M, C = x2d.shape
    tm = min(512, _round_up(M, 8))     # capped: (tm,C) f32 double-buffered stays << 16 MiB (v5e)
    Mp = _round_up(M, tm)
    x_p = _pad2d(x2d, Mp, C)
    kernel = functools.partial(_bn_apply_kernel, count=float(count), eps=eps)
    y = pl.pallas_call(
        kernel,
        out_shape=jax.ShapeDtypeStruct((Mp, C), out_dtype),
        grid_spec=pltpu.PrefetchScalarGridSpec(
            num_scalar_prefetch=0,
            grid=(Mp // tm,),
            in_specs=[pl.BlockSpec((tm, C), lambda i: (i, 0)),
                      pl.BlockSpec((2, C), lambda i: (0, 0)),
                      pl.BlockSpec((1, C), lambda i: (0, 0)),
                      pl.BlockSpec((1, C), lambda i: (0, 0))],
            out_specs=pl.BlockSpec((tm, C), lambda i: (i, 0)),
        ),
        compiler_params=pltpu.CompilerParams(dimension_semantics=("parallel",)),
    )(x_p, stats.astype(jnp.float32),
      gamma.reshape(1, C).astype(jnp.float32), beta.reshape(1, C).astype(jnp.float32))
    return y[:M] if Mp != M else y


# ----------------------------------------------------------------------------
# Pallas kernel 4: fused "color head" = ReLU -> center-tap 3x3 conv -> ReLU -> fc
# ----------------------------------------------------------------------------
def _color_head_kernel(p_ref, w1_ref, b1_ref, w2_ref, b2_ref, o_ref):
    h = jnp.maximum(p_ref[...], 0.0)
    h = jnp.dot(h, w1_ref[...], preferred_element_type=jnp.float32) + b1_ref[...]
    h = jnp.maximum(h, 0.0)
    o_ref[...] = (jnp.dot(h, w2_ref[...], preferred_element_type=jnp.float32)
                  + b2_ref[...]).astype(o_ref.dtype)


def color_head(pooled, w_center, b_int, w_fc, b_fc):
    N, inner = pooled.shape
    mid = w_center.shape[0]
    vmem = pl.BlockSpec(memory_space=pltpu.MemorySpace.VMEM)
    return pl.pallas_call(
        _color_head_kernel,
        out_shape=jax.ShapeDtypeStruct((N, 3), jnp.float32),
        in_specs=[vmem] * 5,
        out_specs=vmem,
    )(pooled.astype(jnp.float32),
      w_center.T.astype(jnp.float32),                     # (inner, inner//2)
      b_int.reshape(1, mid).astype(jnp.float32),
      w_fc.T.astype(jnp.float32),                         # (inner//2, 3)
      b_fc.reshape(1, 3).astype(jnp.float32))


# ----------------------------------------------------------------------------
# JAX glue: bf16 NHWC im2col for the 4x4/s2/p1 down conv (layout plumbing only)
# ----------------------------------------------------------------------------
def _im2col_nhwc_4x4_s2_p1(x_nhwc):
    """(N,H,W,C) -> (N*OH*OW, 16*C), patch columns ordered (kh, kw, c)."""
    N, H, W, C = x_nhwc.shape
    OH, OW = H // 2, W // 2
    xp = jnp.pad(x_nhwc, ((0, 0), (1, 1), (1, 1), (0, 0)))
    taps = []
    for kh in range(4):
        for kw in range(4):
            taps.append(xp[:, kh:kh + 2 * OH:2, kw:kw + 2 * OW:2, :])
    pat = jnp.stack(taps, axis=3)                         # (N, OH, OW, 16, C)
    return pat.reshape(N * OH * OW, 16 * C), OH, OW


# ----------------------------------------------------------------------------
# MultiUnetSkipConnectionBlock (innermost=True) forward
# ----------------------------------------------------------------------------
def init_params(key, outer_nc, inner_nc):
    ks = jax.random.split(key, 10)
    nrm = lambda k, shape, s=0.05: s * jax.random.normal(k, shape, jnp.float32)
    return dict(
        # downconv: Conv2d(outer_nc, inner_nc, 4, stride=2, padding=1)
        w_down=nrm(ks[0], (inner_nc, outer_nc, 4, 4)), b_down=nrm(ks[1], (inner_nc,)),
        # int_conv: Conv2d(inner_nc, inner_nc//2, 3, stride=1, padding=1)
        w_int=nrm(ks[2], (inner_nc // 2, inner_nc, 3, 3)), b_int=nrm(ks[3], (inner_nc // 2,)),
        # fc: original hardcodes nn.Linear(256, 3) (valid only when inner_nc == 512);
        # scaled here to Linear(inner_nc//2, 3) so small shapes stay consistent.
        w_fc=nrm(ks[4], (3, inner_nc // 2)), b_fc=nrm(ks[5], (3,)),
        # upconv_model_1/2: ConvTranspose2d(inner_nc, outer_nc, 4, stride=2, padding=1) + BN
        # (the ConvT biases are kept for the reference but are a no-op before training BN)
        w_up1=nrm(ks[6], (inner_nc, outer_nc, 4, 4)), b_up1=nrm(ks[7], (outer_nc,)),
        w_up2=nrm(ks[8], (inner_nc, outer_nc, 4, 4)), b_up2=nrm(ks[9], (outer_nc,)),
        gamma1=jnp.ones((outer_nc,), jnp.float32), beta1=jnp.zeros((outer_nc,), jnp.float32),
        gamma2=jnp.ones((outer_nc,), jnp.float32), beta2=jnp.zeros((outer_nc,), jnp.float32),
    )


def multi_unet_innermost_forward(params, x):
    N, outer_nc, H, W = x.shape
    inner_nc = params["w_down"].shape[0]
    C2 = 2 * outer_nc                                      # both up branches jointly

    # ---- down = [LeakyReLU(0.2), Conv2d(outer_nc, inner_nc, 4, 2, 1)] --------------
    x_nhwc = jnp.transpose(x, (0, 2, 3, 1)).astype(jnp.bfloat16)   # bf16 im2col
    patches, Hin, Win = _im2col_nhwc_4x4_s2_p1(x_nhwc)             # (N*Hin*Win, 16*outer)
    Bd = jnp.transpose(params["w_down"], (2, 3, 1, 0)).reshape(16 * outer_nc, inner_nc)
    down2d = matmul_bias_act(patches, Bd, params["b_down"], in_act="leaky",
                             out_dtype=jnp.bfloat16)               # (M, inner) bf16

    # ---- int_conv = [AdaptiveAvgPool2d((1,1)), ReLU, Conv2d(in,in//2,3,1,1), ReLU]; fc ---
    # 3x3 conv with pad=1 on a 1x1 map: only the center tap w[:, :, 1, 1] sees real data.
    pooled = jnp.mean(down2d.reshape(N, Hin * Win, inner_nc), axis=1, dtype=jnp.float32)
    color_s = color_head(pooled, params["w_int"][:, :, 1, 1], params["b_int"],
                         params["w_fc"], params["b_fc"])           # (N, 3)

    # ---- upconv_model_1/2 = [ReLU, ConvTranspose2d(inner, outer, 4, 2, 1), BN] -----
    # Both branches in ONE matmul: relu(down) @ [W1 | W2]  (no dilated zeros, no im2col);
    # then a single Pallas kernel does the col2im overlap-add + BN batch stats; the ConvT
    # bias is omitted (no-op before training-mode BN).
    w_up = jnp.stack([jnp.transpose(params["w_up1"], (0, 2, 3, 1)),
                      jnp.transpose(params["w_up2"], (0, 2, 3, 1))], axis=3)
    Bu = w_up.reshape(inner_nc, 16 * C2)                   # columns ordered (kh, kw, br, co)
    up_cols = matmul_bias_act(down2d, Bu, None, in_act="relu",
                              out_dtype=jnp.bfloat16)      # (M, 16*C2) bf16

    spat, stats = col2im_bn_stats(up_cols, N, Hin, Win, C2)        # (N,4,HW,C2), (2,C2)

    gamma_cat = jnp.concatenate([params["gamma1"], params["gamma2"]])
    beta_cat = jnp.concatenate([params["beta1"], params["beta2"]])
    up_bn = batchnorm_apply(spat.reshape(N * 4 * Hin * Win, C2), stats,
                            gamma_cat, beta_cat, count=N * H * W)  # (N*4*HW, C2) f32

    # phase interleave folded into the (anyway required) NHWC->NCHW output transpose
    bn6 = up_bn.reshape(N, 2, 2, Hin, Win, C2)             # (n, rh, rw, a, b, c)
    y_nchw = jnp.transpose(bn6, (0, 5, 3, 1, 4, 2)).reshape(N, C2, H, W)
    y_pair = y_nchw.reshape(N, 2, outer_nc, H, W)          # c = br*outer_nc + co
    y1 = jnp.concatenate([y_pair[:, 0], x], axis=1)        # torch.cat([y, x], dim=1)
    y2 = jnp.concatenate([y_pair[:, 1], x], axis=1)
    return y1, y2, color_s

# TODO(synk): outermost / intermediate branches require a `submodule`; only the
# self-contained innermost branch is implemented (it exercises every op type).


# ----------------------------------------------------------------------------
# Pure-JAX f32 reference (golden check for the Pallas path)
# ----------------------------------------------------------------------------
def reference_forward(params, x, eps=1e-5):
    N, outer_nc, H, W = x.shape
    dn = ("NCHW", "OIHW", "NCHW")
    lrelu = jnp.where(x >= 0, x, 0.2 * x)
    down = jax.lax.conv_general_dilated(lrelu, params["w_down"], (2, 2),
                                        ((1, 1), (1, 1)), dimension_numbers=dn)
    down = down + params["b_down"][None, :, None, None]

    pooled = jnp.mean(down, axis=(2, 3), keepdims=True)
    h = jnp.maximum(pooled, 0.0)
    h = jax.lax.conv_general_dilated(h, params["w_int"], (1, 1), ((1, 1), (1, 1)),
                                     dimension_numbers=dn)
    h = jnp.maximum(h + params["b_int"][None, :, None, None], 0.0)
    color = h.reshape(N, -1) @ params["w_fc"].T + params["b_fc"]

    def up_branch(w_t, b, gamma, beta):
        r = jnp.maximum(down, 0.0)
        w_conv = jnp.flip(jnp.transpose(w_t, (1, 0, 2, 3)), axis=(2, 3))
        y = jax.lax.conv_general_dilated(r, w_conv, (1, 1), ((2, 2), (2, 2)),
                                         lhs_dilation=(2, 2), dimension_numbers=dn)
        y = y + b[None, :, None, None]
        mean = jnp.mean(y, axis=(0, 2, 3), keepdims=True)
        var = jnp.mean((y - mean) ** 2, axis=(0, 2, 3), keepdims=True)
        yn = (y - mean) * jax.lax.rsqrt(var + eps)
        return yn * gamma[None, :, None, None] + beta[None, :, None, None]

    y1 = up_branch(params["w_up1"], params["b_up1"], params["gamma1"], params["beta1"])
    y2 = up_branch(params["w_up2"], params["b_up2"], params["gamma2"], params["beta2"])
    return (jnp.concatenate([y1, x], axis=1), jnp.concatenate([y2, x], axis=1), color)


if __name__ == "__main__":
    key = jax.random.PRNGKey(0)
    k_param, k_x = jax.random.split(key)

    N, outer_nc, inner_nc, H, W = 2, 4, 8, 16, 16
    params = init_params(k_param, outer_nc, inner_nc)
    x = jax.random.normal(k_x, (N, outer_nc, H, W), jnp.float32)

    fwd = jax.jit(multi_unet_innermost_forward)
    y1, y2, color_s = fwd(params, x)
    jax.block_until_ready((y1, y2, color_s))

    assert y1.shape == (N, 2 * outer_nc, H, W)
    assert y2.shape == (N, 2 * outer_nc, H, W)
    assert color_s.shape == (N, 3)
    assert bool(jnp.all(jnp.isfinite(y1)))
    assert bool(jnp.all(jnp.isfinite(y2)))
    assert bool(jnp.all(jnp.isfinite(color_s)))

    # golden check vs. pure-JAX f32 reference (bf16 MXU + BN-normalized outputs)
    r1, r2, rc = jax.jit(reference_forward)(params, x)
    err1 = float(jnp.max(jnp.abs(y1 - r1)))
    err2 = float(jnp.max(jnp.abs(y2 - r2)))
    errc = float(jnp.max(jnp.abs(color_s - rc)))
    assert err1 < 0.2 and err2 < 0.2 and errc < 0.05, (err1, err2, errc)

    print("KERNEL_OK")
</pallas_src>

<mosaic_0001>
module attributes {stable_mosaic.version = 11 : i64} {
  func.func @_color_head_kernel(%arg0: memref<2x8xf32, #tpu.memory_space<vmem>>, %arg1: memref<8x4xf32, #tpu.memory_space<vmem>>, %arg2: memref<1x4xf32, #tpu.memory_space<vmem>>, %arg3: memref<4x3xf32, #tpu.memory_space<vmem>>, %arg4: memref<1x3xf32, #tpu.memory_space<vmem>>, %arg5: memref<2x3xf32, #tpu.memory_space<vmem>>) attributes {dimension_semantics = [], scalar_prefetch = 0 : i64, scratch_operands = 0 : i64, tpu.core_type = #tpu.core_type<tc>} {
    %c0 = arith.constant 0 : index
    %c0_0 = arith.constant 0 : index
    %0 = vector.load %arg0[%c0, %c0_0] : memref<2x8xf32, #tpu.memory_space<vmem>>, vector<2x8xf32>
    %cst = arith.constant 0.000000e+00 : f32
    %1 = vector.broadcast %cst : f32 to vector<2x8xf32>
    %2 = arith.maximumf %0, %1 : vector<2x8xf32>
    %c0_1 = arith.constant 0 : index
    %c0_2 = arith.constant 0 : index
    %3 = vector.load %arg1[%c0_1, %c0_2] : memref<8x4xf32, #tpu.memory_space<vmem>>, vector<8x4xf32>
    %cst_3 = arith.constant dense<0.000000e+00> : vector<2x4xf32>
    %4 = tpu.matmul %2, %3, %cst_3 {dimension_numbers = #tpu.dot_dimension_numbers<[1], [0], [0], [1], [0, 0, 1, 1], [], []>} : vector<2x8xf32>, vector<8x4xf32>, vector<2x4xf32> -> vector<2x4xf32>
    %c0_4 = arith.constant 0 : index
    %c0_5 = arith.constant 0 : index
    %5 = vector.load %arg2[%c0_4, %c0_5] : memref<1x4xf32, #tpu.memory_space<vmem>>, vector<1x4xf32>
    %6 = vector.broadcast %5 : vector<1x4xf32> to vector<2x4xf32>
    %7 = arith.addf %4, %6 : vector<2x4xf32>
    %cst_6 = arith.constant 0.000000e+00 : f32
    %8 = vector.broadcast %cst_6 : f32 to vector<2x4xf32>
    %9 = arith.maximumf %7, %8 : vector<2x4xf32>
    %c0_7 = arith.constant 0 : index
    %c0_8 = arith.constant 0 : index
    %10 = vector.load %arg3[%c0_7, %c0_8] : memref<4x3xf32, #tpu.memory_space<vmem>>, vector<4x3xf32>
    %cst_9 = arith.constant dense<0.000000e+00> : vector<2x3xf32>
    %11 = tpu.matmul %9, %10, %cst_9 {dimension_numbers = #tpu.dot_dimension_numbers<[1], [0], [0], [1], [0, 0, 1, 1], [], []>} : vector<2x4xf32>, vector<4x3xf32>, vector<2x3xf32> -> vector<2x3xf32>
    %c0_10 = arith.constant 0 : index
    %c0_11 = arith.constant 0 : index
    %12 = vector.load %arg4[%c0_10, %c0_11] : memref<1x3xf32, #tpu.memory_space<vmem>>, vector<1x3xf32>
    %13 = vector.broadcast %12 : vector<1x3xf32> to vector<2x3xf32>
    %14 = arith.addf %11, %13 : vector<2x3xf32>
    %c0_12 = arith.constant 0 : index
    %c0_13 = arith.constant 0 : index
    %15 = vector.load %arg5[%c0_12, %c0_13] : memref<2x3xf32, #tpu.memory_space<vmem>>, vector<2x3xf32>
    tpu.vector_store %arg5[%c0_12, %c0_13], %14 {strides = array<i32>} : memref<2x3xf32, #tpu.memory_space<vmem>>, vector<2x3xf32>,
    return
  }
}

module attributes {stable_mosaic.version = 11 : i64} {
  func.func @_matmul_kernel(%arg0: i32, %arg1: i32, %arg2: i32, %arg3: memref<128x128xbf16, #tpu.memory_space<vmem>>, %arg4: memref<128x128xbf16, #tpu.memory_space<vmem>>, %arg5: memref<1x128xf32, #tpu.memory_space<vmem>>, %arg6: memref<128x128xbf16, #tpu.memory_space<vmem>>, %arg7: memref<128x128xf32, #tpu.memory_space<vmem>>) attributes {dimension_semantics = [#tpu.dimension_semantics<parallel>, #tpu.dimension_semantics<parallel>, #tpu.dimension_semantics<arbitrary>], iteration_bounds = array<i64: 1, 1, 1>, scalar_prefetch = 0 : i64, scratch_operands = 1 : i64, tpu.core_type = #tpu.core_type<tc>, window_params = [{transform_indices = @transform_0, window_bounds = array<i64: 128, 128>}, {transform_indices = @transform_1, window_bounds = array<i64: 128, 128>}, {transform_indices = @transform_2, window_bounds = array<i64: 1, 128>}, {transform_indices = @transform_3, window_bounds = array<i64: 128, 128>}]} {
    %c0_i32 = arith.constant 0 : i32
    %0 = arith.cmpi eq, %arg2, %c0_i32 : i32
    %1 = arith.extui %0 : i1 to i32
    %c0_i32_0 = arith.constant 0 : i32
    %2 = arith.cmpi ne, %1, %c0_i32_0 : i32
    scf.if %2 {
      %cst_12 = arith.constant 0.000000e+00 : f32
      %17 = vector.broadcast %cst_12 : f32 to vector<128x128xf32>
      %c0_13 = arith.constant 0 : index
      %c0_14 = arith.constant 0 : index
      %18 = vector.load %arg7[%c0_13, %c0_14] : memref<128x128xf32, #tpu.memory_space<vmem>>, vector<128x128xf32>
      tpu.vector_store %arg7[%c0_13, %c0_14], %17 {strides = array<i32>} : memref<128x128xf32, #tpu.memory_space<vmem>>, vector<128x128xf32>,
    } else {
    }
    %c0 = arith.constant 0 : index
    %c0_1 = arith.constant 0 : index
    %3 = vector.load %arg3[%c0, %c0_1] : memref<128x128xbf16, #tpu.memory_space<vmem>>, vector<128x128xbf16>
    %cst = arith.constant 0.000000e+00 : bf16
    %4 = vector.broadcast %cst : bf16 to vector<128x128xbf16>
    %5 = arith.cmpf oge, %3, %4 : vector<128x128xbf16>
    %cst_2 = arith.constant 2.001950e-01 : bf16
    %6 = vector.broadcast %cst_2 : bf16 to vector<128x128xbf16>
    %7 = arith.mulf %3, %6 : vector<128x128xbf16>
    %8 = arith.select %5, %3, %7 : vector<128x128xi1>, vector<128x128xbf16>
    %c0_3 = arith.constant 0 : index
    %c0_4 = arith.constant 0 : index
    %9 = vector.load %arg7[%c0_3, %c0_4] : memref<128x128xf32, #tpu.memory_space<vmem>>, vector<128x128xf32>
    %c0_5 = arith.constant 0 : index
    %c0_6 = arith.constant 0 : index
    %10 = vector.load %arg4[%c0_5, %c0_6] : memref<128x128xbf16, #tpu.memory_space<vmem>>, vector<128x128xbf16>
    %cst_7 = arith.constant dense<0.000000e+00> : vector<128x128xf32>
    %11 = tpu.matmul %8, %10, %cst_7 {dimension_numbers = #tpu.dot_dimension_numbers<[1], [0], [0], [1], [0, 0, 1, 1], [], []>} : vector<128x128xbf16>, vector<128x128xbf16>, vector<128x128xf32> -> vector<128x128xf32>
    %12 = arith.addf %9, %11 : vector<128x128xf32>
    %c0_8 = arith.constant 0 : index
    %c0_9 = arith.constant 0 : index
    %13 = vector.load %arg7[%c0_8, %c0_9] : memref<128x128xf32, #tpu.memory_space<vmem>>, vector<128x128xf32>
    tpu.vector_store %arg7[%c0_8, %c0_9], %12 {strides = array<i32>} : memref<128x128xf32, #tpu.memory_space<vmem>>, vector<128x128xf32>,
    %c0_i32_10 = arith.constant 0 : i32
    %14 = arith.cmpi eq, %arg2, %c0_i32_10 : i32
    %15 = arith.extui %14 : i1 to i32
    %c0_i32_11 = arith.constant 0 : i32
    %16 = arith.cmpi ne, %15, %c0_i32_11 : i32
    scf.if %16 {
      %c0_12 = arith.constant 0 : index
      %c0_13 = arith.constant 0 : index
      %17 = vector.load %arg7[%c0_12, %c0_13] : memref<128x128xf32, #tpu.memory_space<vmem>>, vector<128x128xf32>
      %c0_14 = arith.constant 0 : index
      %c0_15 = arith.constant 0 : index
      %18 = vector.load %arg5[%c0_14, %c0_15] : memref<1x128xf32, #tpu.memory_space<vmem>>, vector<1x128xf32>
      %19 = vector.broadcast %18 : vector<1x128xf32> to vector<128x128xf32>
      %20 = arith.addf %17, %19 : vector<128x128xf32>
      %21 = arith.truncf %20 : vector<128x128xf32> to vector<128x128xbf16>
      %c0_16 = arith.constant 0 : index
      %c0_17 = arith.constant 0 : index
      %22 = vector.load %arg6[%c0_16, %c0_17] : memref<128x128xbf16, #tpu.memory_space<vmem>>, vector<128x128xbf16>
      tpu.vector_store %arg6[%c0_16, %c0_17], %21 {strides = array<i32>} : memref<128x128xbf16, #tpu.memory_space<vmem>>, vector<128x128xbf16>,
    } else {
    }
    return
  }
  func.func @transform_0(%arg0: i32, %arg1: i32, %arg2: i32) -> (i32, i32) {
    %c0_i32 = arith.constant 0 : i32
    return %arg0, %arg2 : i32, i32
  }
  func.func @transform_1(%arg0: i32, %arg1: i32, %arg2: i32) -> (i32, i32) {
    %c0_i32 = arith.constant 0 : i32
    return %arg2, %arg1 : i32, i32
  }
  func.func @transform_2(%arg0: i32, %arg1: i32, %arg2: i32) -> (i32, i32) {
    %c0_i32 = arith.constant 0 : i32
    %c0_i32_0 = arith.constant 0 : i32
    return %c0_i32, %arg1 : i32, i32
  }
  func.func @transform_3(%arg0: i32, %arg1: i32, %arg2: i32) -> (i32, i32) {
    %c0_i32 = arith.constant 0 : i32
    return %arg0, %arg1 : i32, i32
  }
}

module attributes {stable_mosaic.version = 11 : i64} {
  func.func @_matmul_kernel(%arg0: i32, %arg1: i32, %arg2: i32, %arg3: memref<128x128xbf16, #tpu.memory_space<vmem>>, %arg4: memref<128x128xbf16, #tpu.memory_space<vmem>>, %arg5: memref<128x128xbf16, #tpu.memory_space<vmem>>, %arg6: memref<128x128xf32, #tpu.memory_space<vmem>>) attributes {dimension_semantics = [#tpu.dimension_semantics<parallel>, #tpu.dimension_semantics<parallel>, #tpu.dimension_semantics<arbitrary>], iteration_bounds = array<i64: 1, 1, 1>, scalar_prefetch = 0 : i64, scratch_operands = 1 : i64, tpu.core_type = #tpu.core_type<tc>, window_params = [{transform_indices = @transform_0, window_bounds = array<i64: 128, 128>}, {transform_indices = @transform_1, window_bounds = array<i64: 128, 128>}, {transform_indices = @transform_2, window_bounds = array<i64: 128, 128>}]} {
    %c0_i32 = arith.constant 0 : i32
    %0 = arith.cmpi eq, %arg2, %c0_i32 : i32
    %1 = arith.extui %0 : i1 to i32
    %c0_i32_0 = arith.constant 0 : i32
    %2 = arith.cmpi ne, %1, %c0_i32_0 : i32
    scf.if %2 {
      %cst_11 = arith.constant 0.000000e+00 : f32
      %14 = vector.broadcast %cst_11 : f32 to vector<128x128xf32>
      %c0_12 = arith.constant 0 : index
      %c0_13 = arith.constant 0 : index
      %15 = vector.load %arg6[%c0_12, %c0_13] : memref<128x128xf32, #tpu.memory_space<vmem>>, vector<128x128xf32>
      tpu.vector_store %arg6[%c0_12, %c0_13], %14 {strides = array<i32>} : memref<128x128xf32, #tpu.memory_space<vmem>>, vector<128x128xf32>,
    } else {
    }
    %c0 = arith.constant 0 : index
    %c0_1 = arith.constant 0 : index
    %3 = vector.load %arg3[%c0, %c0_1] : memref<128x128xbf16, #tpu.memory_space<vmem>>, vector<128x128xbf16>
    %cst = arith.constant 0.000000e+00 : bf16
    %4 = vector.broadcast %cst : bf16 to vector<128x128xbf16>
    %5 = arith.maximumf %3, %4 : vector<128x128xbf16>
    %c0_2 = arith.constant 0 : index
    %c0_3 = arith.constant 0 : index
    %6 = vector.load %arg6[%c0_2, %c0_3] : memref<128x128xf32, #tpu.memory_space<vmem>>, vector<128x128xf32>
    %c0_4 = arith.constant 0 : index
    %c0_5 = arith.constant 0 : index
    %7 = vector.load %arg4[%c0_4, %c0_5] : memref<128x128xbf16, #tpu.memory_space<vmem>>, vector<128x128xbf16>
    %cst_6 = arith.constant dense<0.000000e+00> : vector<128x128xf32>
    %8 = tpu.matmul %5, %7, %cst_6 {dimension_numbers = #tpu.dot_dimension_numbers<[1], [0], [0], [1], [0, 0, 1, 1], [], []>} : vector<128x128xbf16>, vector<128x128xbf16>, vector<128x128xf32> -> vector<128x128xf32>
    %9 = arith.addf %6, %8 : vector<128x128xf32>
    %c0_7 = arith.constant 0 : index
    %c0_8 = arith.constant 0 : index
    %10 = vector.load %arg6[%c0_7, %c0_8] : memref<128x128xf32, #tpu.memory_space<vmem>>, vector<128x128xf32>
    tpu.vector_store %arg6[%c0_7, %c0_8], %9 {strides = array<i32>} : memref<128x128xf32, #tpu.memory_space<vmem>>, vector<128x128xf32>,
    %c0_i32_9 = arith.constant 0 : i32
    %11 = arith.cmpi eq, %arg2, %c0_i32_9 : i32
    %12 = arith.extui %11 : i1 to i32
    %c0_i32_10 = arith.constant 0 : i32
    %13 = arith.cmpi ne, %12, %c0_i32_10 : i32
    scf.if %13 {
      %c0_11 = arith.constant 0 : index
      %c0_12 = arith.constant 0 : index
      %14 = vector.load %arg6[%c0_11, %c0_12] : memref<128x128xf32, #tpu.memory_space<vmem>>, vector<128x128xf32>
      %15 = arith.truncf %14 : vector<128x128xf32> to vector<128x128xbf16>
      %c0_13 = arith.constant 0 : index
      %c0_14 = arith.constant 0 : index
      %16 = vector.load %arg5[%c0_13, %c0_14] : memref<128x128xbf16, #tpu.memory_space<vmem>>, vector<128x128xbf16>
      tpu.vector_store %arg5[%c0_13, %c0_14], %15 {strides = array<i32>} : memref<128x128xbf16, #tpu.memory_space<vmem>>, vector<128x128xbf16>,
    } else {
    }
    return
  }
  func.func @transform_0(%arg0: i32, %arg1: i32, %arg2: i32) -> (i32, i32) {
    %c0_i32 = arith.constant 0 : i32
    return %arg0, %arg2 : i32, i32
  }
  func.func @transform_1(%arg0: i32, %arg1: i32, %arg2: i32) -> (i32, i32) {
    %c0_i32 = arith.constant 0 : i32
    return %arg2, %arg1 : i32, i32
  }
  func.func @transform_2(%arg0: i32, %arg1: i32, %arg2: i32) -> (i32, i32) {
    %c0_i32 = arith.constant 0 : i32
    return %arg0, %arg1 : i32, i32
  }
}

module attributes {stable_mosaic.version = 11 : i64} {
  func.func @_col2im_bnstats_kernel(%arg0: i32, %arg1: memref<1x64x128xbf16, #tpu.memory_space<vmem>>, %arg2: memref<64x1xf32, #tpu.memory_space<vmem>>, %arg3: memref<64x1xf32, #tpu.memory_space<vmem>>, %arg4: memref<1x4x64x8xf32, #tpu.memory_space<vmem>>, %arg5: memref<1x2x8xf32, #tpu.memory_space<vmem>>) attributes {dimension_semantics = [#tpu.dimension_semantics<parallel>], iteration_bounds = array<i64: 2>, scalar_prefetch = 0 : i64, scratch_operands = 0 : i64, tpu.core_type = #tpu.core_type<tc>, window_params = [{transform_indices = @transform_0, window_bounds = array<i64: 1, 64, 128>}, {pipeline_mode = #tpu.pipeline_mode<synchronous>, transform_indices = @transform_1, window_bounds = array<i64: 64, 1>}, {pipeline_mode = #tpu.pipeline_mode<synchronous>, transform_indices = @transform_2, window_bounds = array<i64: 64, 1>}, {transform_indices = @transform_3, window_bounds = array<i64: 1, 4, 64, 8>}, {transform_indices = @transform_4, window_bounds = array<i64: 1, 2, 8>}]} {
    %c0 = arith.constant 0 : index
    %c0_0 = arith.constant 0 : index
    %c0_1 = arith.constant 0 : index
    %0 = vector.load %arg1[%c0, %c0_0, %c0_1] : memref<1x64x128xbf16, #tpu.memory_space<vmem>>, vector<1x64x128xbf16>
    %1 = vector.shape_cast %0 : vector<1x64x128xbf16> to vector<64x128xbf16>
    %2 = arith.extf %1 : vector<64x128xbf16> to vector<64x128xf32>
    %c0_2 = arith.constant 0 : index
    %c0_3 = arith.constant 0 : index
    %3 = vector.load %arg2[%c0_2, %c0_3] : memref<64x1xf32, #tpu.memory_space<vmem>>, vector<64x1xf32>
    %c0_4 = arith.constant 0 : index
    %c0_5 = arith.constant 0 : index
    %4 = vector.load %arg3[%c0_4, %c0_5] : memref<64x1xf32, #tpu.memory_space<vmem>>, vector<64x1xf32>
    %5 = vector.extract_strided_slice %2 {offsets = [0, 40], sizes = [64, 8], strides = [1, 1]} : vector<64x128xf32> to vector<64x8xf32>
    %6 = vector.extract_strided_slice %2 {offsets = [0, 104], sizes = [64, 8], strides = [1, 1]} : vector<64x128xf32> to vector<64x8xf32>
    %cst = arith.constant 0.000000e+00 : f32
    %7 = vector.broadcast %cst : f32 to vector<8x8xf32>
    %8 = vector.extract_strided_slice %6 {offsets = [0, 0], sizes = [56, 8], strides = [1, 1]} : vector<64x8xf32> to vector<56x8xf32>
    %9 = tpu.concatenate %7, %8 in 0 : vector<8x8xf32>, vector<56x8xf32> -> vector<64x8xf32>
    %10 = arith.addf %5, %9 : vector<64x8xf32>
    %11 = vector.extract_strided_slice %2 {offsets = [0, 56], sizes = [64, 8], strides = [1, 1]} : vector<64x128xf32> to vector<64x8xf32>
    %cst_6 = arith.constant 0.000000e+00 : f32
    %12 = vector.broadcast %cst_6 : f32 to vector<1x8xf32>
    %13 = vector.extract_strided_slice %11 {offsets = [0, 0], sizes = [63, 8], strides = [1, 1]} : vector<64x8xf32> to vector<63x8xf32>
    %14 = tpu.concatenate %12, %13 in 0 : vector<1x8xf32>, vector<63x8xf32> -> vector<64x8xf32>
    %15 = vector.extract_strided_slice %2 {offsets = [0, 120], sizes = [64, 8], strides = [1, 1]} : vector<64x128xf32> to vector<64x8xf32>
    %cst_7 = arith.constant 0.000000e+00 : f32
    %16 = vector.broadcast %cst_7 : f32 to vector<9x8xf32>
    %17 = vector.extract_strided_slice %15 {offsets = [0, 0], sizes = [55, 8], strides = [1, 1]} : vector<64x8xf32> to vector<55x8xf32>
    %18 = tpu.concatenate %16, %17 in 0 : vector<9x8xf32>, vector<55x8xf32> -> vector<64x8xf32>
    %19 = arith.addf %14, %18 : vector<64x8xf32>
    %20 = vector.broadcast %3 : vector<64x1xf32> to vector<64x8xf32>
    %21 = arith.mulf %20, %19 : vector<64x8xf32>
    %22 = arith.addf %10, %21 : vector<64x8xf32>
    %23 = vector.extract_strided_slice %2 {offsets = [0, 48], sizes = [64, 8], strides = [1, 1]} : vector<64x128xf32> to vector<64x8xf32>
    %24 = vector.extract_strided_slice %2 {offsets = [0, 112], sizes = [64, 8], strides = [1, 1]} : vector<64x128xf32> to vector<64x8xf32>
    %cst_8 = arith.constant 0.000000e+00 : f32
    %25 = vector.broadcast %cst_8 : f32 to vector<8x8xf32>
    %26 = vector.extract_strided_slice %24 {offsets = [0, 0], sizes = [56, 8], strides = [1, 1]} : vector<64x8xf32> to vector<56x8xf32>
    %27 = tpu.concatenate %25, %26 in 0 : vector<8x8xf32>, vector<56x8xf32> -> vector<64x8xf32>
    %28 = arith.addf %23, %27 : vector<64x8xf32>
    %29 = vector.extract_strided_slice %2 {offsets = [0, 32], sizes = [64, 8], strides = [1, 1]} : vector<64x128xf32> to vector<64x8xf32>
    %30 = vector.extract_strided_slice %29 {offsets = [1, 0], sizes = [63, 8], strides = [1, 1]} : vector<64x8xf32> to vector<63x8xf32>
    %cst_9 = arith.constant 0.000000e+00 : f32
    %31 = vector.broadcast %cst_9 : f32 to vector<1x8xf32>
    %32 = tpu.concatenate %30, %31 in 0 : vector<63x8xf32>, vector<1x8xf32> -> vector<64x8xf32>
    %33 = vector.extract_strided_slice %2 {offsets = [0, 96], sizes = [64, 8], strides = [1, 1]} : vector<64x128xf32> to vector<64x8xf32>
    %cst_10 = arith.constant 0.000000e+00 : f32
    %34 = vector.broadcast %cst_10 : f32 to vector<7x8xf32>
    %35 = vector.extract_strided_slice %33 {offsets = [0, 0], sizes = [57, 8], strides = [1, 1]} : vector<64x8xf32> to vector<57x8xf32>
    %36 = tpu.concatenate %34, %35 in 0 : vector<7x8xf32>, vector<57x8xf32> -> vector<64x8xf32>
    %37 = arith.addf %32, %36 : vector<64x8xf32>
    %38 = vector.broadcast %4 : vector<64x1xf32> to vector<64x8xf32>
    %39 = arith.mulf %38, %37 : vector<64x8xf32>
    %40 = arith.addf %28, %39 : vector<64x8xf32>
    %41 = vector.extract_strided_slice %2 {offsets = [0, 72], sizes = [64, 8], strides = [1, 1]} : vector<64x128xf32> to vector<64x8xf32>
    %42 = vector.extract_strided_slice %2 {offsets = [0, 8], sizes = [64, 8], strides = [1, 1]} : vector<64x128xf32> to vector<64x8xf32>
    %43 = vector.extract_strided_slice %42 {offsets = [8, 0], sizes = [56, 8], strides = [1, 1]} : vector<64x8xf32> to vector<56x8xf32>
    %cst_11 = arith.constant 0.000000e+00 : f32
    %44 = vector.broadcast %cst_11 : f32 to vector<8x8xf32>
    %45 = tpu.concatenate %43, %44 in 0 : vector<56x8xf32>, vector<8x8xf32> -> vector<64x8xf32>
    %46 = arith.addf %41, %45 : vector<64x8xf32>
    %47 = vector.extract_strided_slice %2 {offsets = [0, 88], sizes = [64, 8], strides = [1, 1]} : vector<64x128xf32> to vector<64x8xf32>
    %cst_12 = arith.constant 0.000000e+00 : f32
    %48 = vector.broadcast %cst_12 : f32 to vector<1x8xf32>
    %49 = vector.extract_strided_slice %47 {offsets = [0, 0], sizes = [63, 8], strides = [1, 1]} : vector<64x8xf32> to vector<63x8xf32>
    %50 = tpu.concatenate %48, %49 in 0 : vector<1x8xf32>, vector<63x8xf32> -> vector<64x8xf32>
    %51 = vector.extract_strided_slice %2 {offsets = [0, 24], sizes = [64, 8], strides = [1, 1]} : vector<64x128xf32> to vector<64x8xf32>
    %52 = vector.extract_strided_slice %51 {offsets = [7, 0], sizes = [57, 8], strides = [1, 1]} : vector<64x8xf32> to vector<57x8xf32>
    %cst_13 = arith.constant 0.000000e+00 : f32
    %53 = vector.broadcast %cst_13 : f32 to vector<7x8xf32>
    %54 = tpu.concatenate %52, %53 in 0 : vector<57x8xf32>, vector<7x8xf32> -> vector<64x8xf32>
    %55 = arith.addf %50, %54 : vector<64x8xf32>
    %56 = vector.broadcast %3 : vector<64x1xf32> to vector<64x8xf32>
    %57 = arith.mulf %56, %55 : vector<64x8xf32>
    %58 = arith.addf %46, %57 : vector<64x8xf32>
    %59 = vector.extract_strided_slice %2 {offsets = [0, 80], sizes = [64, 8], strides = [1, 1]} : vector<64x128xf32> to vector<64x8xf32>
    %60 = vector.extract_strided_slice %2 {offsets = [0, 16], sizes = [64, 8], strides = [1, 1]} : vector<64x128xf32> to vector<64x8xf32>
    %61 = vector.extract_strided_slice %60 {offsets = [8, 0], sizes = [56, 8], strides = [1, 1]} : vector<64x8xf32> to vector<56x8xf32>
    %cst_14 = arith.constant 0.000000e+00 : f32
    %62 = vector.broadcast %cst_14 : f32 to vector<8x8xf32>
    %63 = tpu.concatenate %61, %62 in 0 : vector<56x8xf32>, vector<8x8xf32> -> vector<64x8xf32>
    %64 = arith.addf %59, %63 : vector<64x8xf32>
    %65 = vector.extract_strided_slice %2 {offsets = [0, 64], sizes = [64, 8], strides = [1, 1]} : vector<64x128xf32> to vector<64x8xf32>
    %66 = vector.extract_strided_slice %65 {offsets = [1, 0], sizes = [63, 8], strides = [1, 1]} : vector<64x8xf32> to vector<63x8xf32>
    %cst_15 = arith.constant 0.000000e+00 : f32
    %67 = vector.broadcast %cst_15 : f32 to vector<1x8xf32>
    %68 = tpu.concatenate %66, %67 in 0 : vector<63x8xf32>, vector<1x8xf32> -> vector<64x8xf32>
    %69 = vector.extract_strided_slice %2 {offsets = [0, 0], sizes = [64, 8], strides = [1, 1]} : vector<64x128xf32> to vector<64x8xf32>
    %70 = vector.extract_strided_slice %69 {offsets = [9, 0], sizes = [55, 8], strides = [1, 1]} : vector<64x8xf32> to vector<55x8xf32>
    %cst_16 = arith.constant 0.000000e+00 : f32
    %71 = vector.broadcast %cst_16 : f32 to vector<9x8xf32>
    %72 = tpu.concatenate %70, %71 in 0 : vector<55x8xf32>, vector<9x8xf32> -> vector<64x8xf32>
    %73 = arith.addf %68, %72 : vector<64x8xf32>
    %74 = vector.broadcast %4 : vector<64x1xf32> to vector<64x8xf32>
    %75 = arith.mulf %74, %73 : vector<64x8xf32>
    %76 = arith.addf %64, %75 : vector<64x8xf32>
    %c0_17 = arith.constant 0 : index
    %c0_18 = arith.constant 0 : index
    %c0_19 = arith.constant 0 : index
    %c0_20 = arith.constant 0 : index
    %77 = vector.load %arg4[%c0_17, %c0_18, %c0_19, %c0_20] : memref<1x4x64x8xf32, #tpu.memory_space<vmem>>, vector<1x1x64x8xf32>
    %78 = vector.shape_cast %77 : vector<1x1x64x8xf32> to vector<64x8xf32>
    %79 = vector.shape_cast %22 : vector<64x8xf32> to vector<1x1x64x8xf32>
    tpu.vector_store %arg4[%c0_17, %c0_18, %c0_19, %c0_20], %79 {strides = array<i32>} : memref<1x4x64x8xf32, #tpu.memory_space<vmem>>, vector<1x1x64x8xf32>,
    %c0_21 = arith.constant 0 : index
    %c1 = arith.constant 1 : index
    %c0_22 = arith.constant 0 : index
    %c0_23 = arith.constant 0 : index
    %80 = vector.load %arg4[%c0_21, %c1, %c0_22, %c0_23] : memref<1x4x64x8xf32, #tpu.memory_space<vmem>>, vector<1x1x64x8xf32>
    %81 = vector.shape_cast %80 : vector<1x1x64x8xf32> to vector<64x8xf32>
    %82 = vector.shape_cast %40 : vector<64x8xf32> to vector<1x1x64x8xf32>
    tpu.vector_store %arg4[%c0_21, %c1, %c0_22, %c0_23], %82 {strides = array<i32>} : memref<1x4x64x8xf32, #tpu.memory_space<vmem>>, vector<1x1x64x8xf32>,
    %c0_24 = arith.constant 0 : index
    %c2 = arith.constant 2 : index
    %c0_25 = arith.constant 0 : index
    %c0_26 = arith.constant 0 : index
    %83 = vector.load %arg4[%c0_24, %c2, %c0_25, %c0_26] : memref<1x4x64x8xf32, #tpu.memory_space<vmem>>, vector<1x1x64x8xf32>
    %84 = vector.shape_cast %83 : vector<1x1x64x8xf32> to vector<64x8xf32>
    %85 = vector.shape_cast %58 : vector<64x8xf32> to vector<1x1x64x8xf32>
    tpu.vector_store %arg4[%c0_24, %c2, %c0_25, %c0_26], %85 {strides = array<i32>} : memref<1x4x64x8xf32, #tpu.memory_space<vmem>>, vector<1x1x64x8xf32>,
    %c0_27 = arith.constant 0 : index
    %c3 = arith.constant 3 : index
    %c0_28 = arith.constant 0 : index
    %c0_29 = arith.constant 0 : index
    %86 = vector.load %arg4[%c0_27, %c3, %c0_28, %c0_29] : memref<1x4x64x8xf32, #tpu.memory_space<vmem>>, vector<1x1x64x8xf32>
    %87 = vector.shape_cast %86 : vector<1x1x64x8xf32> to vector<64x8xf32>
    %88 = vector.shape_cast %76 : vector<64x8xf32> to vector<1x1x64x8xf32>
    tpu.vector_store %arg4[%c0_27, %c3, %c0_28, %c0_29], %88 {strides = array<i32>} : memref<1x4x64x8xf32, #tpu.memory_space<vmem>>, vector<1x1x64x8xf32>,
    %cst_30 = arith.constant dense<0.000000e+00> : vector<8xf32>
    %89 = vector.multi_reduction <add>, %22, %cst_30 [0] : vector<64x8xf32> to vector<8xf32>
    %90 = vector.shape_cast %89 : vector<8xf32> to vector<1x8xf32>
    %cst_31 = arith.constant dense<0.000000e+00> : vector<8xf32>
    %91 = vector.multi_reduction <add>, %40, %cst_31 [0] : vector<64x8xf32> to vector<8xf32>
    %92 = vector.shape_cast %91 : vector<8xf32> to vector<1x8xf32>
    %93 = arith.addf %90, %92 : vector<1x8xf32>
    %cst_32 = arith.constant dense<0.000000e+00> : vector<8xf32>
    %94 = vector.multi_reduction <add>, %58, %cst_32 [0] : vector<64x8xf32> to vector<8xf32>
    %95 = vector.shape_cast %94 : vector<8xf32> to vector<1x8xf32>
    %96 = arith.addf %93, %95 : vector<1x8xf32>
    %cst_33 = arith.constant dense<0.000000e+00> : vector<8xf32>
    %97 = vector.multi_reduction <add>, %76, %cst_33 [0] : vector<64x8xf32> to vector<8xf32>
    %98 = vector.shape_cast %97 : vector<8xf32> to vector<1x8xf32>
    %99 = arith.addf %96, %98 : vector<1x8xf32>
    %100 = arith.mulf %22, %22 : vector<64x8xf32>
    %cst_34 = arith.constant dense<0.000000e+00> : vector<8xf32>
    %101 = vector.multi_reduction <add>, %100, %cst_34 [0] : vector<64x8xf32> to vector<8xf32>
    %102 = vector.shape_cast %101 : vector<8xf32> to vector<1x8xf32>
    %103 = arith.mulf %40, %40 : vector<64x8xf32>
    %cst_35 = arith.constant dense<0.000000e+00> : vector<8xf32>
    %104 = vector.multi_reduction <add>, %103, %cst_35 [0] : vector<64x8xf32> to vector<8xf32>
    %105 = vector.shape_cast %104 : vector<8xf32> to vector<1x8xf32>
    %106 = arith.addf %102, %105 : vector<1x8xf32>
    %107 = arith.mulf %58, %58 : vector<64x8xf32>
    %cst_36 = arith.constant dense<0.000000e+00> : vector<8xf32>
    %108 = vector.multi_reduction <add>, %107, %cst_36 [0] : vector<64x8xf32> to vector<8xf32>
    %109 = vector.shape_cast %108 : vector<8xf32> to vector<1x8xf32>
    %110 = arith.addf %106, %109 : vector<1x8xf32>
    %111 = arith.mulf %76, %76 : vector<64x8xf32>
    %cst_37 = arith.constant dense<0.000000e+00> : vector<8xf32>
    %112 = vector.multi_reduction <add>, %111, %cst_37 [0] : vector<64x8xf32> to vector<8xf32>
    %113 = vector.shape_cast %112 : vector<8xf32> to vector<1x8xf32>
    %114 = arith.addf %110, %113 : vector<1x8xf32>
    %115 = tpu.concatenate %99, %114 in 0 : vector<1x8xf32>, vector<1x8xf32> -> vector<2x8xf32>
    %c0_38 = arith.constant 0 : index
    %c0_39 = arith.constant 0 : index
    %c0_40 = arith.constant 0 : index
    %116 = vector.load %arg5[%c0_38, %c0_39, %c0_40] : memref<1x2x8xf32, #tpu.memory_space<vmem>>, vector<1x2x8xf32>
    %117 = vector.shape_cast %116 : vector<1x2x8xf32> to vector<2x8xf32>
    %118 = vector.shape_cast %115 : vector<2x8xf32> to vector<1x2x8xf32>
    tpu.vector_store %arg5[%c0_38, %c0_39, %c0_40], %118 {strides = array<i32>} : memref<1x2x8xf32, #tpu.memory_space<vmem>>, vector<1x2x8xf32>,
    return
  }
  func.func @transform_0(%arg0: i32) -> (i32, i32, i32) {
    %c0_i32 = arith.constant 0 : i32
    %c0_i32_0 = arith.constant 0 : i32
    %c0_i32_1 = arith.constant 0 : i32
    return %arg0, %c0_i32, %c0_i32_0 : i32, i32, i32
  }
  func.func @transform_1(%arg0: i32) -> (i32, i32) {
    %c0_i32 = arith.constant 0 : i32
    %c0_i32_0 = arith.constant 0 : i32
    %c0_i32_1 = arith.constant 0 : i32
    return %c0_i32, %c0_i32_0 : i32, i32
  }
  func.func @transform_2(%arg0: i32) -> (i32, i32) {
    %c0_i32 = arith.constant 0 : i32
    %c0_i32_0 = arith.constant 0 : i32
    %c0_i32_1 = arith.constant 0 : i32
    return %c0_i32, %c0_i32_0 : i32, i32
  }
  func.func @transform_3(%arg0: i32) -> (i32, i32, i32, i32) {
    %c0_i32 = arith.constant 0 : i32
    %c0_i32_0 = arith.constant 0 : i32
    %c0_i32_1 = arith.constant 0 : i32
    %c0_i32_2 = arith.constant 0 : i32
    return %arg0, %c0_i32, %c0_i32_0, %c0_i32_1 : i32, i32, i32, i32
  }
  func.func @transform_4(%arg0: i32) -> (i32, i32, i32) {
    %c0_i32 = arith.constant 0 : i32
    %c0_i32_0 = arith.constant 0 : i32
    %c0_i32_1 = arith.constant 0 : i32
    return %arg0, %c0_i32, %c0_i32_0 : i32, i32, i32
  }
}

module attributes {stable_mosaic.version = 11 : i64} {
  func.func @_bn_apply_kernel(%arg0: i32, %arg1: memref<512x8xf32, #tpu.memory_space<vmem>>, %arg2: memref<2x8xf32, #tpu.memory_space<vmem>>, %arg3: memref<1x8xf32, #tpu.memory_space<vmem>>, %arg4: memref<1x8xf32, #tpu.memory_space<vmem>>, %arg5: memref<512x8xf32, #tpu.memory_space<vmem>>) attributes {dimension_semantics = [#tpu.dimension_semantics<parallel>], iteration_bounds = array<i64: 1>, scalar_prefetch = 0 : i64, scratch_operands = 0 : i64, tpu.core_type = #tpu.core_type<tc>, window_params = [{transform_indices = @transform_0, window_bounds = array<i64: 512, 8>}, {pipeline_mode = #tpu.pipeline_mode<synchronous>, transform_indices = @transform_1, window_bounds = array<i64: 2, 8>}, {pipeline_mode = #tpu.pipeline_mode<synchronous>, transform_indices = @transform_2, window_bounds = array<i64: 1, 8>}, {pipeline_mode = #tpu.pipeline_mode<synchronous>, transform_indices = @transform_3, window_bounds = array<i64: 1, 8>}, {transform_indices = @transform_4, window_bounds = array<i64: 512, 8>}]} {
    %c0 = arith.constant 0 : index
    %c0_0 = arith.constant 0 : index
    %0 = vector.load %arg1[%c0, %c0_0] : memref<512x8xf32, #tpu.memory_space<vmem>>, vector<512x8xf32>
    %c0_1 = arith.constant 0 : index
    %c0_2 = arith.constant 0 : index
    %1 = vector.load %arg2[%c0_1, %c0_2] : memref<2x8xf32, #tpu.memory_space<vmem>>, vector<1x8xf32>
    %cst = arith.constant 0.001953125 : f32
    %2 = vector.broadcast %cst : f32 to vector<1x8xf32>
    %3 = arith.mulf %1, %2 : vector<1x8xf32>
    %c1 = arith.constant 1 : index
    %c0_3 = arith.constant 0 : index
    %4 = vector.load %arg2[%c1, %c0_3] : memref<2x8xf32, #tpu.memory_space<vmem>>, vector<1x8xf32>
    %cst_4 = arith.constant 0.001953125 : f32
    %5 = vector.broadcast %cst_4 : f32 to vector<1x8xf32>
    %6 = arith.mulf %4, %5 : vector<1x8xf32>
    %7 = arith.mulf %3, %3 : vector<1x8xf32>
    %8 = arith.subf %6, %7 : vector<1x8xf32>
    %cst_5 = arith.constant 0.000000e+00 : f32
    %9 = vector.broadcast %cst_5 : f32 to vector<1x8xf32>
    %10 = arith.maximumf %8, %9 : vector<1x8xf32>
    %cst_6 = arith.constant 9.99999974E-6 : f32
    %11 = vector.broadcast %cst_6 : f32 to vector<1x8xf32>
    %12 = arith.addf %10, %11 : vector<1x8xf32>
    %13 = math.rsqrt %12 : vector<1x8xf32>
    %14 = vector.broadcast %3 : vector<1x8xf32> to vector<512x8xf32>
    %15 = arith.subf %0, %14 : vector<512x8xf32>
    %c0_7 = arith.constant 0 : index
    %c0_8 = arith.constant 0 : index
    %16 = vector.load %arg3[%c0_7, %c0_8] : memref<1x8xf32, #tpu.memory_space<vmem>>, vector<1x8xf32>
    %17 = arith.mulf %13, %16 : vector<1x8xf32>
    %18 = vector.broadcast %17 : vector<1x8xf32> to vector<512x8xf32>
    %19 = arith.mulf %15, %18 : vector<512x8xf32>
    %c0_9 = arith.constant 0 : index
    %c0_10 = arith.constant 0 : index
    %20 = vector.load %arg4[%c0_9, %c0_10] : memref<1x8xf32, #tpu.memory_space<vmem>>, vector<1x8xf32>
    %21 = vector.broadcast %20 : vector<1x8xf32> to vector<512x8xf32>
    %22 = arith.addf %19, %21 : vector<512x8xf32>
    %c0_11 = arith.constant 0 : index
    %c0_12 = arith.constant 0 : index
    %23 = vector.load %arg5[%c0_11, %c0_12] : memref<512x8xf32, #tpu.memory_space<vmem>>, vector<512x8xf32>
    tpu.vector_store %arg5[%c0_11, %c0_12], %22 {strides = array<i32>} : memref<512x8xf32, #tpu.memory_space<vmem>>, vector<512x8xf32>,
    return
  }
  func.func @transform_0(%arg0: i32) -> (i32, i32) {
    %c0_i32 = arith.constant 0 : i32
    %c0_i32_0 = arith.constant 0 : i32
    return %arg0, %c0_i32 : i32, i32
  }
  func.func @transform_1(%arg0: i32) -> (i32, i32) {
    %c0_i32 = arith.constant 0 : i32
    %c0_i32_0 = arith.constant 0 : i32
    %c0_i32_1 = arith.constant 0 : i32
    return %c0_i32, %c0_i32_0 : i32, i32
  }
  func.func @transform_2(%arg0: i32) -> (i32, i32) {
    %c0_i32 = arith.constant 0 : i32
    %c0_i32_0 = arith.constant 0 : i32
    %c0_i32_1 = arith.constant 0 : i32
    return %c0_i32, %c0_i32_0 : i32, i32
  }
  func.func @transform_3(%arg0: i32) -> (i32, i32) {
    %c0_i32 = arith.constant 0 : i32
    %c0_i32_0 = arith.constant 0 : i32
    %c0_i32_1 = arith.constant 0 : i32
    return %c0_i32, %c0_i32_0 : i32, i32
  }
  func.func @transform_4(%arg0: i32) -> (i32, i32) {
    %c0_i32 = arith.constant 0 : i32
    %c0_i32_0 = arith.constant 0 : i32
    return %arg0, %c0_i32 : i32, i32
  }
}

</mosaic_0001>

<bundles_post_ra>
// kernel: multi_unet_innermost_forward.7
= control target key start
LH: loop header
LB: loop body
LE: loop exit
PB: predicated region body
PF: predicated region fallthrough
CT: control target
= control target key end

     0   :  { %v592_v7 = vmov 0   ;;  %s720_s1 = inlined_call_operand.vmem [shape: bf16[128,128], index: 1, kind: input, shape index: {}]   ;;  %s721_s0 = inlined_call_operand.vmem [shape: bf16[128,128], index: 0, kind: input, shape index: {}]   ;;  %s722_s2 = inlined_call_operand.vmem [shape: bf16[128,128], index: 2, kind: output, shape index: {}]  }
   0x1   :  { %v584_v0 = vld [vmem:[%s720_s1 + $0x38] sm:$0xff]   ;;  %v585_v1 = vld [vmem:[%s720_s1 + $0x30] sm:$0xff]   ;;  %v586_v2 = vld [vmem:[%s720_s1 + $0x28] sm:$0xff]  }
   0x2   :  { %535 = vmatprep.subr.bf16.mxu0 %v584_v0  ;;  %567 = vmatprep.subr.bf16.mxu1 %v584_v0  ;;  %v587_v3 = vld [vmem:[%s720_s1 + $0x20] sm:$0xff]   ;;  %v588_v14 = vld [vmem:[%s720_s1 + $0x18] sm:$0xff]   ;;  %v589_v16 = vld [vmem:[%s720_s1 + $0x10] sm:$0xff]  }
   0x3   :  { %536 = vmatpush3.bf16.msra.mxu0 %v584_v0  ;;  %575 = vmatpush3.bf16.msra.mxu1 %v584_v0  ;;  %v32_v4 = vld [vmem:[%s721_s0] sm:$0xf]  ;;  %v33_v5 = vld [vmem:[%s721_s0 + $0x4] sm:$0xf]  ;;  %v590_v17 = vld [vmem:[%s720_s1 + $0x8] sm:$0xff]  }
   0x4   :  { %537 = vmatprep.subr.bf16.mxu0 %v585_v1  ;;  %568 = vmatprep.subr.bf16.mxu1 %v585_v1  ;;  %v40_v6 = vld [vmem:[%s721_s0 + $0x20] sm:$0xf]  ;;  %v48_v8 = vmax.bf16 %v592_v7, %v32_v4  ;;  %v49_v9 = vmax.bf16 %v592_v7, %v33_v5  ;;  %v41_v10 = vld [vmem:[%s721_s0 + $0x24] sm:$0xf]  ;;  %v34_v19 = vld [vmem:[%s721_s0 + $0x8] sm:$0xf] }
   0x5   :  { %v56_v11 = vmax.bf16 %v592_v7, %v40_v6  ;;  %v57_v12 = vmax.bf16 %v592_v7, %v41_v10  ;;  %v591_v18 = vld [vmem:[%s720_s1] sm:$0xff]   ;;  %v35_v20 = vld [vmem:[%s721_s0 + $0xc] sm:$0xf]  ;;  %v42_v21 = vld [vmem:[%s721_s0 + $0x28] sm:$0xf]  ;;  %v50_v27 = vmax.bf16 %v592_v7, %v34_v19 }
   0x6   :  { %v424_v13 = vcombine.low %v48_v8, %v49_v9  ;;  %v43_v22 = vld [vmem:[%s721_s0 + $0x2c] sm:$0xf]  ;;  %v36_v23 = vld [vmem:[%s721_s0 + $0x10] sm:$0xf]  ;;  %v37_v24 = vld [vmem:[%s721_s0 + $0x14] sm:$0xf]  ;;  %v51_v28 = vmax.bf16 %v592_v7, %v35_v20  ;;  %v58_v29 = vmax.bf16 %v592_v7, %v42_v21 }
   0x7   :  { %538 = vmatpush3.bf16.msra.mxu0 %v585_v1  ;;  %576 = vmatpush3.bf16.msra.mxu1 %v585_v1  ;;  %v428_v15 = vcombine.low %v56_v11, %v57_v12  ;;  %v44_v25 = vld [vmem:[%s721_s0 + $0x30] sm:$0xf]  ;;  %v45_v26 = vld [vmem:[%s721_s0 + $0x34] sm:$0xf]  ;;  %v59_v30 = vmax.bf16 %v592_v7, %v43_v22  ;;  %v52_v31 = vmax.bf16 %v592_v7, %v36_v23  ;;  %v38_v37 = vld [vmem:[%s721_s0 + $0x18] sm:$0xf] }
   0x8   :  { %539 = vmatprep.subr.bf16.mxu0 %v586_v2  ;;  %569 = vmatprep.subr.bf16.mxu1 %v586_v2  ;;  %v53_v32 = vmax.bf16 %v592_v7, %v37_v24  ;;  %v60_v33 = vmax.bf16 %v592_v7, %v44_v25  ;;  %v61_v34 = vmax.bf16 %v592_v7, %v45_v26  ;;  %v39_v40 = vld [vmem:[%s721_s0 + $0x1c] sm:$0xf]  ;;  %v46_v41 = vld [vmem:[%s721_s0 + $0x38] sm:$0xf] }
   0x9   :  { %551 = vmatprep.mubr.bf16.mxu0 %v424_v13  ;;  %559 = vmatprep.mubr.bf16.mxu1 %v428_v15  ;;  %v425_v35 = vcombine.low %v50_v27, %v51_v28  ;;  %v429_v36 = vcombine.low %v58_v29, %v59_v30  ;;  %v47_v42 = vld [vmem:[%s721_s0 + $0x3c] sm:$0xf]  ;;  %v54_v43 = vmax.bf16 %v592_v7, %v38_v37 }
   0xa   :  { %v426_v38 = vcombine.low %v52_v31, %v53_v32  ;;  %v430_v39 = vcombine.low %v60_v33, %v61_v34  ;;  %v55_v44 = vmax.bf16 %v592_v7, %v39_v40  ;;  %v62_v45 = vmax.bf16 %v592_v7, %v46_v41 }
   0xb   :  { %540 = vmatpush3.bf16.msra.mxu0 %v586_v2  ;;  %577 = vmatpush3.bf16.msra.mxu1 %v586_v2  ;;  %v63_v46 = vmax.bf16 %v592_v7, %v47_v42 }
   0xc   :  { %541 = vmatprep.subr.bf16.mxu0 %v587_v3  ;;  %570 = vmatprep.subr.bf16.mxu1 %v587_v3  ;;  %v427_v47 = vcombine.low %v54_v43, %v55_v44 }
   0xd   :  { %v431_v48 = vcombine.low %v62_v45, %v63_v46 }
   0xf   :  { %542 = vmatpush3.bf16.msra.mxu0 %v587_v3  ;;  %578 = vmatpush3.bf16.msra.mxu1 %v587_v3 }
  0x10   :  { %543 = vmatprep.subr.bf16.mxu0 %v588_v14  ;;  %571 = vmatprep.subr.bf16.mxu1 %v588_v14 }
  0x13   :  { %544 = vmatpush3.bf16.msra.mxu0 %v588_v14  ;;  %579 = vmatpush3.bf16.msra.mxu1 %v588_v14 }
  0x14   :  { %545 = vmatprep.subr.bf16.mxu0 %v589_v16  ;;  %572 = vmatprep.subr.bf16.mxu1 %v589_v16 }
  0x17   :  { %546 = vmatpush3.bf16.msra.mxu0 %v589_v16  ;;  %580 = vmatpush3.bf16.msra.mxu1 %v589_v16 }
  0x18   :  { %547 = vmatprep.subr.bf16.mxu0 %v590_v17  ;;  %573 = vmatprep.subr.bf16.mxu1 %v590_v17 }
  0x1b   :  { %548 = vmatpush3.bf16.msra.mxu0 %v590_v17  ;;  %581 = vmatpush3.bf16.msra.mxu1 %v590_v17 }
  0x1c   :  { %549 = vmatprep.subr.bf16.mxu0 %v591_v18  ;;  %574 = vmatprep.subr.bf16.mxu1 %v591_v18 }
  0x1f   :  { %550 = vmatpush3.bf16.msra.mxu0 %v591_v18  ;;  %582 = vmatpush3.bf16.msra.mxu1 %v591_v18 }
  0x22   :  { %552 = vmatmul.mubr.bf16.vlgmr.msra.gmra.mxu0 %v425_v35  ;;  %560 = vmatmul.mubr.bf16.vlgmr.msra.gmra.mxu1 %v429_v36 }
  0x23   :  { %555 = vmatprep.mubr.bf16.mxu0 %v426_v38  ;;  %563 = vmatprep.mubr.bf16.mxu1 %v430_v39 }
  0x2a   :  { %556 = vmatmul.mubr.bf16.gmra.mxu0 %v427_v47  ;;  %564 = vmatmul.mubr.bf16.gmra.mxu1 %v431_v48 }
  0xe2   :  { %v553_v49 = vpop.f32.mrf.mxu0  ;;  %v561_v50 = vpop.f32.mrf.mxu1 }
  0xe4   :  { %v226_v51 = vpop.f32.mrf.mxu0  ;;  %v258_v52 = vpop.f32.mrf.mxu1 }
  0xe6   :  { %v554_v53 = vpop.f32.mrf.mxu0  ;;  %v562_v54 = vpop.f32.mrf.mxu1 }
  0xe7   :  { %v480_v55 = vpack.c.bf16 %v554_v53, %v553_v49  ;;  %v500_v56 = vpack.c.bf16 %v562_v54, %v561_v50 }
  0xe8   :  { %v229_v57 = vpop.f32.mrf.mxu0  ;;  %v261_v58 = vpop.f32.mrf.mxu1 }
  0xe9   :  { %512 = vst [vmem:[%s722_s2 + $0x8] sm:$0xff] %v480_v55   ;;  %516 = vst [vmem:[%s722_s2 + $0x28] sm:$0xff] %v500_v56   ;;  %v475_v59 = vpack.c.bf16 %v229_v57, %v226_v51  ;;  %v495_v60 = vpack.c.bf16 %v261_v58, %v258_v52 }
  0xea   :  { %v557_v61 = vpop.f32.mrf.mxu0  ;;  %v565_v62 = vpop.f32.mrf.mxu1 }
  0xeb   :  { %476 = vst [vmem:[%s722_s2] sm:$0xff] %v475_v59   ;;  %515 = vst [vmem:[%s722_s2 + $0x20] sm:$0xff] %v495_v60  }
  0xec   :  { %v242_v63 = vpop.f32.mrf.mxu0  ;;  %v274_v0 = vpop.f32.mrf.mxu1 }
  0xee   :  { %v558_v1 = vpop.f32.mrf.mxu0  ;;  %v566_v2 = vpop.f32.mrf.mxu1 }
  0xef   :  { %v490_v3 = vpack.c.bf16 %v558_v1, %v557_v61  ;;  %v510_v4 = vpack.c.bf16 %v566_v2, %v565_v62 }
  0xf0   :  { %v245_v5 = vpop.f32.mrf.mxu0  ;;  %v277_v6 = vpop.f32.mrf.mxu1 }
  0xf1   :  { %514 = vst [vmem:[%s722_s2 + $0x18] sm:$0xff] %v490_v3   ;;  %518 = vst [vmem:[%s722_s2 + $0x38] sm:$0xff] %v510_v4   ;;  %v485_v7 = vpack.c.bf16 %v245_v5, %v242_v63  ;;  %v505_v8 = vpack.c.bf16 %v277_v6, %v274_v0 }
  0xf3   :  { %513 = vst [vmem:[%s722_s2 + $0x10] sm:$0xff] %v485_v7   ;;  %517 = vst [vmem:[%s722_s2 + $0x30] sm:$0xff] %v505_v8  }

// kernel: multi_unet_innermost_forward.6
= control target key start
LH: loop header
LB: loop body
LE: loop exit
PB: predicated region body
PF: predicated region fallthrough
CT: control target
= control target key end

     0   :  { %vm31_vm0 = vcmask 64512   ;;  %v252_v2 = vmov 0.0   ;;  %vm253_vm1 = vmmov 0   ;;  %s303_s0 = inlined_call_operand.vmem [shape: f32[2,8], index: 0, kind: input, shape index: {}]   ;;  %s304_s1 = inlined_call_operand.vmem [shape: f32[8,4], index: 1, kind: input, shape index: {}]   ;;  %s305_s2 = inlined_call_operand.vmem [shape: f32[1,4], index: 2, kind: input, shape index: {}]   ;;  %s306_s3 = inlined_call_operand.vmem [shape: f32[4,3], index: 3, kind: input, shape index: {}]   ;;  %s307_s4 = inlined_call_operand.vmem [shape: f32[1,3], index: 4, kind: input, shape index: {}]   ;;  %s308_s5 = inlined_call_operand.hbm [shape: f32[2,3], index: 5, kind: output, shape index: {}]  }
   0x1   :  { %v23_v0 = vld [vmem:[%s304_s1] sm:$0xff]  ;;  %217 = vmatprep.subr.mxu0 %v252_v2  ;;  %219 = vmatprep.mubr.msk.f32.mxu0 %vm253_vm1, %v252_v2 }
   0x2   :  { %v21_v1 = vld [vmem:[%s303_s0] sm:$0x3] }
   0x3   :  { %v22_v3 = vmax.f32 %v21_v1, 0.0 }
   0x4   :  { %10 = vsyncpa [#allocation3], 0  ;;  %218 = vmatpush3.msra.mxu0 %v23_v0  ;;  %222 = vmatprep.subr.mxu1 %v252_v2  ;;  %v106_v4 = vld [vmem:[%s306_s3] sm:$0xf]  ;;  %vm118_vm2 = vcmask 1043456   ;;  %vm114_vm3 = vcmask 31744  }
   0x5   :  { %220 = vmatmul.mubr.msk.f32.vlgmr.msra.gmra.mxu0 %vm31_vm0, %v22_v3  ;;  %224 = vmatprep.mubr.msk.f32.mxu1 %vm253_vm1, %v252_v2  ;;  %v208_v5 = vld [vmem:[%s305_s2] ss:$0 sm:$0xff]  ;;  %s254_s26 = smov [#allocation2]   ;;  %vm192_vm4 = vcmask 17408  }
   0x6   :  { %223 = vmatpush3.msk.msra.mxu1 %vm118_vm2, %v106_v4  ;;  %v210_v10 = vld [vmem:[%s307_s4] ss:$0 sm:$0xff]  ;;  %s200_s27 = sshll.u32 %s254_s26, 4  ;;  %s201_s27 = int_to_ptr.vmem [resolvable:$true] %s200_s27 }
   0x7   :  { %s230_s3 = scalar_lea.vmem %s201_s27, 32  ;;  %p235_p1 = scmp.lt.s32.totalorder %s201_s27, %s201_s27 }
   0x8   :  { %p231_p0 = scmp.ne.s32.totalorder %s201_s27, %s230_s3  ;;  %p236_p2 = scmp.lt.s32.totalorder %s230_s3, %s230_s3 }
   0xa   :  { %p237_p3 = por %p236_p2, %p235_p1 }
   0xc   :  { %p238_p4 = pnand %p237_p3, %p231_p0 }
  0xc5   :  { %v101_v6 = vpop.f32.mrf.mxu0 }
  0xc6   :  { %v102_v7 = vadd.f32 %v208_v5, %v101_v6 }
  0xc7   :  { %v221_v8 = vpop.f32.mrf.mxu0 }
  0xc8   :  { %v105_v9 = vmax.f32 %v102_v7, 0.0 }
  0xca   :  { %225 = vmatmul.mubr.msk.f32.vlgmr.msra.gmra.mxu1 %vm114_vm3, %v105_v9 }
 0x18a   :  { %v188_v11 = vpop.f32.mrf.mxu1 }
 0x18b   :  { %v189_v12 = vadd.f32 %v210_v10, %v188_v11 }
 0x18c   :  { %v226_v13 = vpop.f32.mrf.mxu1 }
 0x18d   :  { %193 = vst.msk [vmem:[#allocation2] sm:$0x3] %vm192_vm4, %v189_v12 }
 0x18e   :  { %241 = shalt.err (!%p238_p4)
}
 0x18f   :  { %203 = dma.vmem_to_hbm [thread:$0]  %s201_s27, 32, %s308_s5, [#allocation3]  }
 0x190   :  { %250 = dma.done.wait [#allocation3], 32  }
 0x191   :  { %251 = vsyncadd [#allocation3], 4294967264 }
 0x192   :  { %207 = vsyncpa [#allocation3], 1 }

// kernel: multi_unet_innermost_forward.5
= control target key start
LH: loop header
LB: loop body
LE: loop exit
PB: predicated region body
PF: predicated region fallthrough
CT: control target
= control target key end

     0   :  { %s774_s1 = inlined_call_operand.vmem [shape: bf16[128,128], index: 1, kind: input, shape index: {}]   ;;  %s775_s0 = inlined_call_operand.vmem [shape: bf16[128,128], index: 0, kind: input, shape index: {}]   ;;  %s776_s2 = inlined_call_operand.vmem [shape: f32[1,128], index: 2, kind: input, shape index: {}]   ;;  %s777_s3 = inlined_call_operand.vmem [shape: bf16[128,128], index: 3, kind: output, shape index: {}]  }
   0x1   :  { %v643_v0 = vld [vmem:[%s774_s1 + $0x38] sm:$0xff]   ;;  %v644_v1 = vld [vmem:[%s774_s1 + $0x30] sm:$0xff]   ;;  %v645_v2 = vld [vmem:[%s774_s1 + $0x28] sm:$0xff]  }
   0x2   :  { %595 = vmatprep.subr.bf16.mxu0 %v643_v0  ;;  %627 = vmatprep.subr.bf16.mxu1 %v643_v0  ;;  %v646_v3 = vld [vmem:[%s774_s1 + $0x20] sm:$0xff]   ;;  %v647_v14 = vld [vmem:[%s774_s1 + $0x18] sm:$0xff]   ;;  %v648_v19 = vld [vmem:[%s774_s1 + $0x10] sm:$0xff]  }
   0x3   :  { %596 = vmatpush3.bf16.msra.mxu0 %v643_v0  ;;  %635 = vmatpush3.bf16.msra.mxu1 %v643_v0  ;;  %v36_v4 = vld [vmem:[%s775_s0] sm:$0xf]  ;;  %v37_v5 = vld [vmem:[%s775_s0 + $0x4] sm:$0xf]  ;;  %v38_v20 = vld [vmem:[%s775_s0 + $0x8] sm:$0xf] }
   0x4   :  { %597 = vmatprep.subr.bf16.mxu0 %v644_v1  ;;  %628 = vmatprep.subr.bf16.mxu1 %v644_v1  ;;  %v44_v6 = vld [vmem:[%s775_s0 + $0x20] sm:$0xf]  ;;  %vm52_vm0 = vcmp.ge.bf16.partialorder %v36_v4, 0  ;;  %vm53_vm1 = vcmp.ge.bf16.partialorder %v37_v5, 0  ;;  %v68_v7 = vmul.bf16 1045249613, %v36_v4 }
   0x5   :  { %v69_v8 = vmul.bf16 1045249613, %v37_v5  ;;  %v45_v9 = vld [vmem:[%s775_s0 + $0x24] sm:$0xf]  ;;  %vm60_vm2 = vcmp.ge.bf16.partialorder %v44_v6, 0  ;;  %v649_v22 = vld [vmem:[%s774_s1 + $0x8] sm:$0xff]  }
   0x6   :  { %v76_v10 = vmul.bf16 1045249613, %v44_v6  ;;  %v84_v11 = vsel %vm52_vm0, %v36_v4, %v68_v7  ;;  %vm61_vm3 = vcmp.ge.bf16.partialorder %v45_v9, 0  ;;  %v77_v13 = vmul.bf16 1045249613, %v45_v9  ;;  %v650_v30 = vld [vmem:[%s774_s1] sm:$0xff]  }
   0x7   :  { %598 = vmatpush3.bf16.msra.mxu0 %v644_v1  ;;  %636 = vmatpush3.bf16.msra.mxu1 %v644_v1  ;;  %v85_v12 = vsel %vm53_vm1, %v37_v5, %v69_v8  ;;  %v39_v21 = vld [vmem:[%s775_s0 + $0xc] sm:$0xf]  ;;  %v46_v23 = vld [vmem:[%s775_s0 + $0x28] sm:$0xf]  ;;  %v70_v25 = vmul.bf16 1045249613, %v38_v20 }
   0x8   :  { %599 = vmatprep.subr.bf16.mxu0 %v645_v2  ;;  %629 = vmatprep.subr.bf16.mxu1 %v645_v2  ;;  %v483_v15 = vcombine.low %v84_v11, %v85_v12  ;;  %v92_v16 = vsel %vm60_vm2, %v44_v6, %v76_v10  ;;  %v93_v17 = vsel %vm61_vm3, %v45_v9, %v77_v13  ;;  %v47_v24 = vld [vmem:[%s775_s0 + $0x2c] sm:$0xf]  ;;  %v40_v26 = vld [vmem:[%s775_s0 + $0x10] sm:$0xf]  ;;  %v41_v27 = vld [vmem:[%s775_s0 + $0x14] sm:$0xf] }
   0x9   :  { %v487_v18 = vcombine.low %v92_v16, %v93_v17  ;;  %vm54_vm4 = vcmp.ge.bf16.partialorder %v38_v20, 0  ;;  %vm55_vm5 = vcmp.ge.bf16.partialorder %v39_v21, 0  ;;  %v48_v28 = vld [vmem:[%s775_s0 + $0x30] sm:$0xf]  ;;  %v49_v29 = vld [vmem:[%s775_s0 + $0x34] sm:$0xf] }
   0xa   :  { %611 = vmatprep.mubr.bf16.mxu0 %v483_v15  ;;  %v71_v31 = vmul.bf16 1045249613, %v39_v21  ;;  %vm62_vm6 = vcmp.ge.bf16.partialorder %v46_v23, 0  ;;  %vm63_vm7 = vcmp.ge.bf16.partialorder %v47_v24, 0  ;;  %v78_v32 = vmul.bf16 1045249613, %v46_v23 }
   0xb   :  { %600 = vmatpush3.bf16.msra.mxu0 %v645_v2  ;;  %637 = vmatpush3.bf16.msra.mxu1 %v645_v2  ;;  %v79_v33 = vmul.bf16 1045249613, %v47_v24  ;;  %v72_v34 = vmul.bf16 1045249613, %v40_v26  ;;  %v73_v35 = vmul.bf16 1045249613, %v41_v27  ;;  %v86_v38 = vsel %vm54_vm4, %v38_v20, %v70_v25 }
   0xc   :  { %601 = vmatprep.subr.bf16.mxu0 %v646_v3  ;;  %630 = vmatprep.subr.bf16.mxu1 %v646_v3  ;;  %vm56_vm8 = vcmp.ge.bf16.partialorder %v40_v26, 0  ;;  %vm57_vm9 = vcmp.ge.bf16.partialorder %v41_v27, 0  ;;  %v80_v36 = vmul.bf16 1045249613, %v48_v28  ;;  %v81_v37 = vmul.bf16 1045249613, %v49_v29 }
   0xd   :  { %619 = vmatprep.mubr.bf16.mxu1 %v487_v18  ;;  %vm64_vm10 = vcmp.ge.bf16.partialorder %v48_v28, 0  ;;  %vm65_vm11 = vcmp.ge.bf16.partialorder %v49_v29, 0  ;;  %v87_v39 = vsel %vm55_vm5, %v39_v21, %v71_v31  ;;  %v94_v40 = vsel %vm62_vm6, %v46_v23, %v78_v32  ;;  %v42_v44 = vld [vmem:[%s775_s0 + $0x18] sm:$0xf]  ;;  %v43_v47 = vld [vmem:[%s775_s0 + $0x1c] sm:$0xf] }
   0xe   :  { %v95_v41 = vsel %vm63_vm7, %v47_v24, %v79_v33  ;;  %v88_v42 = vsel %vm56_vm8, %v40_v26, %v72_v34  ;;  %v89_v43 = vsel %vm57_vm9, %v41_v27, %v73_v35  ;;  %v96_v45 = vsel %vm64_vm10, %v48_v28, %v80_v36  ;;  %v50_v48 = vld [vmem:[%s775_s0 + $0x38] sm:$0xf]  ;;  %v51_v49 = vld [vmem:[%s775_s0 + $0x3c] sm:$0xf]  ;;  %v499_v2 = vld [vmem:[%s776_s2] ss:$0 sm:$0xff] }
   0xf   :  { %602 = vmatpush3.bf16.msra.mxu0 %v646_v3  ;;  %638 = vmatpush3.bf16.msra.mxu1 %v646_v3  ;;  %v97_v46 = vsel %vm65_vm11, %v49_v29, %v81_v37  ;;  %v484_v50 = vcombine.low %v86_v38, %v87_v39  ;;  %v488_v51 = vcombine.low %v94_v40, %v95_v41  ;;  %vm58_vm12 = vcmp.ge.bf16.partialorder %v42_v44, 0 }
  0x10   :  { %603 = vmatprep.subr.bf16.mxu0 %v647_v14  ;;  %631 = vmatprep.subr.bf16.mxu1 %v647_v14  ;;  %v485_v52 = vcombine.low %v88_v42, %v89_v43  ;;  %v74_v53 = vmul.bf16 1045249613, %v42_v44  ;;  %v489_v54 = vcombine.low %v96_v45, %v97_v46  ;;  %v75_v55 = vmul.bf16 1045249613, %v43_v47 }
  0x11   :  { %v82_v56 = vmul.bf16 1045249613, %v50_v48  ;;  %v83_v57 = vmul.bf16 1045249613, %v51_v49  ;;  %vm59_vm13 = vcmp.ge.bf16.partialorder %v43_v47, 0  ;;  %vm66_vm14 = vcmp.ge.bf16.partialorder %v50_v48, 0 }
  0x12   :  { %vm67_vm15 = vcmp.ge.bf16.partialorder %v51_v49, 0  ;;  %v90_v58 = vsel %vm58_vm12, %v42_v44, %v74_v53  ;;  %v91_v59 = vsel %vm59_vm13, %v43_v47, %v75_v55 }
  0x13   :  { %604 = vmatpush3.bf16.msra.mxu0 %v647_v14  ;;  %639 = vmatpush3.bf16.msra.mxu1 %v647_v14  ;;  %v98_v60 = vsel %vm66_vm14, %v50_v48, %v82_v56  ;;  %v99_v61 = vsel %vm67_vm15, %v51_v49, %v83_v57  ;;  %v486_v62 = vcombine.low %v90_v58, %v91_v59 }
  0x14   :  { %605 = vmatprep.subr.bf16.mxu0 %v648_v19  ;;  %632 = vmatprep.subr.bf16.mxu1 %v648_v19  ;;  %v490_v63 = vcombine.low %v98_v60, %v99_v61 }
  0x17   :  { %606 = vmatpush3.bf16.msra.mxu0 %v648_v19  ;;  %640 = vmatpush3.bf16.msra.mxu1 %v648_v19 }
  0x18   :  { %607 = vmatprep.subr.bf16.mxu0 %v649_v22  ;;  %633 = vmatprep.subr.bf16.mxu1 %v649_v22 }
  0x1b   :  { %608 = vmatpush3.bf16.msra.mxu0 %v649_v22  ;;  %641 = vmatpush3.bf16.msra.mxu1 %v649_v22 }
  0x1c   :  { %609 = vmatprep.subr.bf16.mxu0 %v650_v30  ;;  %634 = vmatprep.subr.bf16.mxu1 %v650_v30 }
  0x1f   :  { %610 = vmatpush3.bf16.msra.mxu0 %v650_v30  ;;  %642 = vmatpush3.bf16.msra.mxu1 %v650_v30 }
  0x22   :  { %612 = vmatmul.mubr.bf16.vlgmr.msra.gmra.mxu0 %v484_v50  ;;  %620 = vmatmul.mubr.bf16.vlgmr.msra.gmra.mxu1 %v488_v51 }
  0x23   :  { %615 = vmatprep.mubr.bf16.mxu0 %v485_v52  ;;  %623 = vmatprep.mubr.bf16.mxu1 %v489_v54 }
  0x2a   :  { %616 = vmatmul.mubr.bf16.gmra.mxu0 %v486_v62  ;;  %624 = vmatmul.mubr.bf16.gmra.mxu1 %v490_v63 }
  0xe2   :  { %v613_v0 = vpop.f32.mrf.mxu0  ;;  %v621_v1 = vpop.f32.mrf.mxu1 }
  0xe3   :  { %v385_v7 = vadd.f32 %v613_v0, %v499_v2  ;;  %v393_v8 = vadd.f32 %v621_v1, %v499_v2 }
  0xe4   :  { %v262_v3 = vpop.f32.mrf.mxu0  ;;  %v294_v4 = vpop.f32.mrf.mxu1 }
  0xe5   :  { %v383_v11 = vadd.f32 %v499_v2, %v262_v3  ;;  %v391_v12 = vadd.f32 %v499_v2, %v294_v4 }
  0xe6   :  { %v614_v5 = vpop.f32.mrf.mxu0  ;;  %v622_v6 = vpop.f32.mrf.mxu1 }
  0xe7   :  { %v386_v9 = vadd.f32 %v614_v5, %v499_v2  ;;  %v394_v10 = vadd.f32 %v622_v6, %v499_v2 }
  0xe8   :  { %v265_v13 = vpop.f32.mrf.mxu0  ;;  %v297_v14 = vpop.f32.mrf.mxu1 }
  0xe9   :  { %v540_v15 = vpack.c.bf16 %v386_v9, %v385_v7  ;;  %v560_v16 = vpack.c.bf16 %v394_v10, %v393_v8  ;;  %v384_v17 = vadd.f32 %v499_v2, %v265_v13  ;;  %v392_v18 = vadd.f32 %v499_v2, %v297_v14 }
  0xea   :  { %v617_v19 = vpop.f32.mrf.mxu0  ;;  %v625_v20 = vpop.f32.mrf.mxu1 }
  0xeb   :  { %572 = vst [vmem:[%s777_s3 + $0x8] sm:$0xff] %v540_v15   ;;  %576 = vst [vmem:[%s777_s3 + $0x28] sm:$0xff] %v560_v16   ;;  %v535_v21 = vpack.c.bf16 %v384_v17, %v383_v11  ;;  %v555_v22 = vpack.c.bf16 %v392_v18, %v391_v12  ;;  %v389_v27 = vadd.f32 %v617_v19, %v499_v2 }
  0xec   :  { %v278_v23 = vpop.f32.mrf.mxu0  ;;  %v310_v24 = vpop.f32.mrf.mxu1  ;;  %v397_v28 = vadd.f32 %v625_v20, %v499_v2 }
  0xed   :  { %536 = vst [vmem:[%s777_s3] sm:$0xff] %v535_v21   ;;  %575 = vst [vmem:[%s777_s3 + $0x20] sm:$0xff] %v555_v22   ;;  %v387_v31 = vadd.f32 %v499_v2, %v278_v23  ;;  %v395_v32 = vadd.f32 %v499_v2, %v310_v24 }
  0xee   :  { %v618_v25 = vpop.f32.mrf.mxu0  ;;  %v626_v26 = vpop.f32.mrf.mxu1 }
  0xef   :  { %v390_v29 = vadd.f32 %v618_v25, %v499_v2  ;;  %v398_v30 = vadd.f32 %v626_v26, %v499_v2 }
  0xf0   :  { %v281_v33 = vpop.f32.mrf.mxu0  ;;  %v313_v34 = vpop.f32.mrf.mxu1 }
  0xf1   :  { %v550_v35 = vpack.c.bf16 %v390_v29, %v389_v27  ;;  %v570_v36 = vpack.c.bf16 %v398_v30, %v397_v28  ;;  %v388_v37 = vadd.f32 %v499_v2, %v281_v33  ;;  %v396_v38 = vadd.f32 %v499_v2, %v313_v34 }
  0xf3   :  { %574 = vst [vmem:[%s777_s3 + $0x18] sm:$0xff] %v550_v35   ;;  %578 = vst [vmem:[%s777_s3 + $0x38] sm:$0xff] %v570_v36   ;;  %v545_v39 = vpack.c.bf16 %v388_v37, %v387_v31  ;;  %v565_v40 = vpack.c.bf16 %v396_v38, %v395_v32 }
  0xf5   :  { %573 = vst [vmem:[%s777_s3 + $0x10] sm:$0xff] %v545_v39   ;;  %577 = vst [vmem:[%s777_s3 + $0x30] sm:$0xff] %v565_v40  }

// kernel: multi_unet_innermost_forward.8
= control target key start
LH: loop header
LB: loop body
LE: loop exit
PB: predicated region body
PF: predicated region fallthrough
CT: control target
= control target key end

     0   :  { %s1781_s15 = smov 0   ;;  %s2639_s0 = inlined_call_operand.vmem [shape: bf16[2,64,128], index: 0, kind: input, shape index: {}]   ;;  %s2640_s1 = inlined_call_operand.vmem [shape: f32[64,1], index: 1, kind: input, shape index: {}]   ;;  %s2641_s2 = inlined_call_operand.vmem [shape: f32[64,1], index: 2, kind: input, shape index: {}]   ;;  %s2642_s3 = inlined_call_operand.vmem [shape: f32[2,4,64,8], index: 3, kind: output, shape index: {0}]   ;;  %s2643_s4 = inlined_call_operand.vmem [shape: f32[2,2,8], index: 4, kind: output, shape index: {1}]  }
   0x1 LB: > { %s1377_s16 = sadd.s32 4294967295, %s1738_s15   ;;  %p1381_p0 = scmp.ge.s32.totalorder %s1738_s15, 1  ;;  %s1738_s15 = sphi %s1781_s15, %s15_s15  }
   0x2   : > { %p165_p1 = scmp.lt.s32.totalorder %s1738_s15, 3 }
   0x4   : > { %p166_p2 = pnand %p1381_p0, %p165_p1 }
   0x6   : > { %169 = sbr.rel (%p166_p2) target bundleno = 688 (0x2b0), region = 32 }
   0xb   : > { %p195_p3 = scmp.lt.s32.totalorder %s1377_s16, 1  ;;  %v1740_v0 = vmov 0   ;;  %vm296_vm0 = vcmask 1040384   ;;  %s1741_s21 = smov 24   ;;  %vm501_vm1 = vcmask 1046528   ;;  %v226_v56 = vld [vmem:[%s2640_s1 + $0x8] sm:$0xff] }
   0xc   : > { %1529 = vset.pattern.permute.xlu1 %v1740_v0  ;;  %1528 = vset.pattern.permute.xlu0 %v1740_v0  ;;  %s1742_s22 = smov 72   ;;  %s1743_s23 = smov 8   ;;  %v225_v57 = vld [vmem:[%s2640_s1] sm:$0xff]  ;;  %v227_v58 = vld [vmem:[%s2640_s1 + $0x10] sm:$0xff]  ;;  %v228_v59 = vld [vmem:[%s2640_s1 + $0x18] sm:$0xff]  ;;  %vm1047_vm2 = vcmask 392512  }
   0xd   : > { %s2664_s16 = smov (!%p195_p3, %s1377_s16), 1  ;;  %s1744_s24 = smov 32   ;;  %v229_v60 = vld [vmem:[%s2640_s1 + $0x20] sm:$0xff]  ;;  %v230_v61 = vld [vmem:[%s2640_s1 + $0x28] sm:$0xff]  ;;  %v231_v62 = vld [vmem:[%s2640_s1 + $0x30] sm:$0xff]  ;;  %vm1096_vm3 = vcmask 654912  }
   0xe   : > { %s1413_s17 = sshll.u32 %s2664_s16, 5  ;;  %v232_v63 = vld [vmem:[%s2640_s1 + $0x38] sm:$0xff]  ;;  %v233_v0 = vld [vmem:[%s2641_s2] sm:$0xff]  ;;  %s1745_s25 = smov 40   ;;  %vm1123_vm4 = vcmask 720512   ;;  %vm1069_vm5 = vcmask 458112  }
   0xf   : > { %s199_s20 = scalar_lea.vmem %s2639_s0, %s1413_s17  ;;  %s1746_s30 = smov 16   ;;  %vm915_vm6 = vcmask 64512   ;;  %vm1289_vm7 = vcmask 58368  }
  0x10   : > { %v1432_v1 = vld [vmem:[%s199_s20 + $0x10] sm:$0xff]   ;;  %v1416_v2 = vld [vmem:[%s199_s20] sm:$0xff]   ;;  %v1433_v3 = vld [vmem:[%s199_s20 + $0x18] sm:$0xff]   ;;  %s1747_s5 = smov 104   ;;  %s1748_s10 = smov 64  }
  0x11   : > { %v1795_v4 = vunpack.c.l.bf16 %v1432_v1  ;;  %v1797_v5 = vunpack.c.h.bf16 %v1432_v1  ;;  %v1799_v6 = vunpack.c.l.bf16 %v1416_v2  ;;  %v1801_v7 = vunpack.c.h.bf16 %v1416_v2  ;;  %v1431_v8 = vld [vmem:[%s199_s20 + $0x8] sm:$0xff]   ;;  %v235_v2 = vld [vmem:[%s2641_s2 + $0x10] sm:$0xff]  ;;  %s1752_s13 = smov 120   ;;  %s1753_s14 = smov 88  }
  0x12   : > { %v1803_v9 = vunpack.c.l.bf16 %v1433_v3  ;;  %v1805_v10 = vunpack.c.l.bf16 %v1431_v8  ;;  %v1807_v11 = vunpack.c.h.bf16 %v1431_v8  ;;  %v1809_v12 = vunpack.c.h.bf16 %v1433_v3  ;;  %v234_v1 = vld [vmem:[%s2641_s2 + $0x8] sm:$0xff]  ;;  %v236_v3 = vld [vmem:[%s2641_s2 + $0x18] sm:$0xff]  ;;  %v237_v8 = vld [vmem:[%s2641_s2 + $0x20] sm:$0xff]  ;;  %s1754_s17 = smov 80   ;;  %s1755_s18 = smov 56  }
  0x13   : > { %2649 = vst [vmem:[#allocation2_spill] sm:$0xff] %v1795_v4  ;;  %v1813_v13 = vpack.i.bf16 %v1797_v5, %v1795_v4  ;;  %v1817_v14 = vpack.i.bf16 %v1801_v7, %v1799_v6  ;;  %v298_v15 = vrot.slane %v1801_v7, 7  ;;  %v297_v16 = vrot.slane %v1799_v6, 7  ;;  %s1414_s19 = sshll.u32 %s2664_s16, 8 }
  0x14   : > { %v300_v17 = vrot.slane %v1805_v10, 7  ;;  %v302_v18 = vrot.slane %v1807_v11, 7  ;;  %v1827_v19 = vpack.i.bf16 %v1807_v11, %v1805_v10  ;;  %v306_v21 = vrot.slane %v1797_v5, 7 }
  0x15   : > { %1469 = vrot.lane.b32.xlu1 %v1813_v13, %s1741_s21  ;;  %1459 = vrot.lane.b32.xlu0 %v1817_v14, %s1741_s21  ;;  %v1830_v20 = vsel %vm296_vm0, %v297_v16, %v298_v15  ;;  %v308_v22 = vrot.slane %v1803_v9, 7  ;;  %v310_v25 = vrot.slane %v1809_v12, 7  ;;  %v304_v26 = vrot.slane %v1795_v4, 7 }
  0x16   : > { %v1835_v23 = vsel %vm296_vm0, %v298_v15, %v300_v17  ;;  %v1838_v24 = vsel %vm296_vm0, %v300_v17, %v302_v18  ;;  %v1849_v28 = vpack.i.bf16 %v1830_v20, %v297_v16  ;;  %v502_v35 = vrot.slane %v1799_v6, 1  ;;  %v238_v17 = vld [vmem:[%s2641_s2 + $0x28] sm:$0xff] }
  0x17   : > { %v1846_v27 = vpack.i.bf16 %v1838_v24, %v1835_v23  ;;  %v1852_v29 = vsel %vm296_vm0, %v306_v21, %v308_v22  ;;  %v1855_v30 = vsel %vm296_vm0, %v308_v22, %v310_v25  ;;  %v1858_v31 = vsel %vm296_vm0, %v302_v18, %v304_v26  ;;  %v239_v18 = vld [vmem:[%s2641_s2 + $0x30] sm:$0xff] }
  0x18   : > { %v1861_v32 = vsel %vm296_vm0, %v304_v26, %v306_v21  ;;  %v1869_v33 = vpack.i.bf16 %v1855_v30, %v1852_v29  ;;  %v503_v36 = vrot.slane %v1801_v7, 1  ;;  %v1878_v37 = vsel %vm296_vm0, %v310_v25, 0.0 }
  0x19   : > { %260 = vrot.lane.b32.xlu1 %v1803_v9, %s1741_s21  ;;  %1464 = vrot.lane.b32.xlu0 %v1827_v19, %s1741_s21  ;;  %v1873_v34 = vpack.i.bf16 %v1861_v32, %v1858_v31  ;;  %v507_v38 = vrot.slane %v1807_v11, 1  ;;  %v1595_v39 = vpack.i.bf16 %v1878_v37, %v1855_v30  ;;  %v509_v41 = vrot.slane %v1795_v4, 1 }
  0x1a   : > { %v1888_v40 = vsel %vm501_vm1, %v502_v35, %v503_v36  ;;  %v511_v42 = vrot.slane %v1797_v5, 1  ;;  %v505_v43 = vrot.slane %v1805_v10, 1  ;;  %v513_v45 = vrot.slane %v1803_v9, 1 }
  0x1b   : > { %v1508_v44 = vpack.i.bf16 %v1888_v40, %v502_v35  ;;  %v515_v46 = vrot.slane %v1809_v12, 1  ;;  %v1899_v47 = vsel %vm501_vm1, %v507_v38, %v509_v41  ;;  %v1550_v15 = vpack.i.bf16 %v1858_v31, %v1838_v24 }
  0x1c   : > { %v1902_v48 = vsel %vm501_vm1, %v509_v41, %v511_v42  ;;  %v1905_v49 = vsel %vm501_vm1, %v503_v36, %v505_v43  ;;  %v1908_v50 = vsel %vm501_vm1, %v505_v43, %v507_v38  ;;  %v1917_v53 = vsel %vm501_vm1, %v511_v42, %v513_v45 }
  0x1d   : > { %1479 = vrot.lane.b32.xlu1 %v1846_v27, %s1742_s22  ;;  %1474 = vrot.lane.b32.xlu0 %v1849_v28, %s1742_s22  ;;  %v1518_v51 = vpack.i.bf16 %v1902_v48, %v1899_v47  ;;  %v1513_v52 = vpack.i.bf16 %v1908_v50, %v1905_v49  ;;  %v1922_v54 = vsel %vm501_vm1, %v513_v45, %v515_v46 }
  0x1e   : > { %v1523_v55 = vpack.i.bf16 %v1922_v54, %v1917_v53  ;;  %v1540_v16 = vpack.i.bf16 %v1835_v23, %v1830_v20  ;;  %v240_v20 = vld [vmem:[%s2641_s2 + $0x38] sm:$0xff]  ;;  %v1749_v23 = vmov 0.0  }
  0x21   : > { %1489 = vrot.lane.b32.xlu1 %v1869_v33, %s1742_s22  ;;  %1484 = vrot.lane.b32.xlu0 %v1873_v34, %s1742_s22 }
  0x25   : > { %1499 = vrot.lane.b32.xlu1 %v1846_v27, %s1743_s23  ;;  %1494 = vrot.lane.b32.xlu0 %v1849_v28, %s1743_s23 }
  0x29   : > { %1509 = vrot.lane.b32.xlu1 %v1508_v44, %s1744_s24  ;;  %1504 = vrot.lane.b32.xlu0 %v1873_v34, %s1743_s23 }
  0x2d   : > { %1519 = vrot.lane.b32.xlu1 %v1518_v51, %s1744_s24  ;;  %1514 = vrot.lane.b32.xlu0 %v1513_v52, %s1744_s24 }
  0x31   : > { %349 = vrot.lane.b32.xlu1 %v1852_v29, %s1743_s23  ;;  %1524 = vrot.lane.b32.xlu0 %v1523_v55, %s1744_s24  ;;  %s2564_s23 = scalar_lea.vmem %s2642_s3, %s1414_s19 }
  0x35   : > { %374 = vperm.xlu1 %1529, %v226_v56   ;;  %369 = vperm.xlu0 %1528, %v225_v57   ;;  %v2030_v57 = vsel %vm501_vm1, %v515_v46, 0.0 }
  0x39   : > { %379 = vperm.xlu1 %1529, %v227_v58   ;;  %384 = vperm.xlu0 %1528, %v228_v59   ;;  %v1635_v58 = vpack.i.bf16 %v1749_v23, %v2030_v57 }
  0x3d   : > { %389 = vperm.xlu1 %1529, %v229_v60   ;;  %394 = vperm.xlu0 %1528, %v230_v61  }
  0x41   : > { %399 = vperm.xlu1 %1529, %v231_v62   ;;  %404 = vperm.xlu0 %1528, %v232_v63  }
  0x45   : > { %579 = vperm.xlu1 %1529, %v233_v0   ;;  %584 = vperm.xlu0 %1528, %v234_v1  }
  0x49   : > { %589 = vperm.xlu1 %1529, %v235_v2   ;;  %1531 = vrot.lane.b32.xlu0 %v1849_v28, %s1745_s25 }
  0x4d   : > { %594 = vperm.xlu1 %1529, %v236_v3   ;;  %599 = vperm.xlu0 %1528, %v237_v8  }
  0x51   : > { %1536 = vrot.lane.b32.xlu1 %v1817_v14, %s1746_s30  ;;  %1551 = vrot.lane.b32.xlu0 %v1550_v15, %s1747_s5  ;;  %v1575_v14 = vpack.i.bf16 %v1852_v29, %v1861_v32 }
  0x55   : > { %1541 = vrot.lane.b32.xlu1 %v1540_v16, %s1747_s5  ;;  %604 = vperm.xlu0 %1528, %v238_v17  }
  0x59   : > { %1546 = vrot.lane.b32.xlu1 %v1846_v27, %s1745_s25  ;;  %609 = vperm.xlu0 %1528, %v239_v18  }
  0x5d   : > { %1556 = vrot.lane.b32.xlu1 %v1513_v52, %s1748_s10  ;;  %1576 = vrot.lane.b32.xlu0 %v1575_v14, %s1747_s5 }
  0x61   : > { %1561 = vrot.lane.b32.xlu1 %v1827_v19, %s1746_s30  ;;  %1581 = vrot.lane.b32.xlu0 %v1813_v13, %s1746_s30 }
  0x65   : > { %1566 = vrot.lane.b32.xlu1 %v1518_v51, %s1748_s10  ;;  %1586 = vrot.lane.b32.xlu0 %v1523_v55, %s1748_s10 }
  0x69   : > { %1571 = vrot.lane.b32.xlu1 %v1873_v34, %s1745_s25  ;;  %1596 = vrot.lane.b32.xlu0 %v1595_v39, %s1747_s5 }
  0x6d   : > { %614 = vperm.xlu1 %1529, %v240_v20  }
  0x71   : > { %1591 = vrot.lane.b32.xlu1 %v1869_v33, %s1745_s25 }
  0x75   : > { %467 = vrot.lane.b32.xlu1 %v1803_v9, %s1746_s30 }
  0x87   : > { %v1470_v13 = vpop.permute.xlu1 %1469  ;;  %v1460_v19 = vpop.permute.xlu0 %1459 }
  0x88   : > { %v1461_v21 = vunpack.i.l.bf16 %v1460_v19  ;;  %v1462_v22 = vunpack.i.h.bf16 %v1460_v19  ;;  %v1471_v27 = vunpack.i.l.bf16 %v1470_v13  ;;  %v1472_v34 = vunpack.i.h.bf16 %v1470_v13 }
  0x8a   : > { %v1600_v24 = vpack.i.bf16 %v1461_v21, %v1749_v23 }
  0x8b   : > { %v261_v25 = vpop.permute.xlu1 %260  ;;  %v1465_v26 = vpop.permute.xlu0 %1464 }
  0x8c   : > { %v1467_v28 = vunpack.i.h.bf16 %v1465_v26  ;;  %v1466_v29 = vunpack.i.l.bf16 %v1465_v26  ;;  %1601 = vrot.lane.b32.xlu0 %v1600_v24, %s1745_s25  ;;  %v1615_v35 = vpack.i.bf16 %v261_v25, %v1472_v34  ;;  %v1655_v24 = vpack.i.bf16 %v1805_v10, %v1801_v7 }
  0x8e   : > { %v1605_v30 = vpack.i.bf16 %v1466_v29, %v1462_v22  ;;  %v1610_v31 = vpack.i.bf16 %v1471_v27, %v1467_v28  ;;  %v1660_v27 = vpack.i.bf16 %v1795_v4, %v1807_v11 }
  0x8f   : > { %v2007_v32 = vpop.permute.xlu1 %1479  ;;  %v2009_v33 = vpop.permute.xlu0 %1474 }
  0x90   : > { %1606 = vrot.lane.b32.xlu1 %v1605_v30, %s1745_s25  ;;  %1611 = vrot.lane.b32.xlu0 %v1610_v31, %s1745_s25  ;;  %v1476_v28 = vunpack.i.l.bf16 %v2009_v33 }
  0x92   : > { %v336_v31 = vsel %vm296_vm0, 0.0, %v1476_v28 }
  0x93   : > { %v2013_v36 = vpop.permute.xlu1 %1489  ;;  %v2015_v37 = vpop.permute.xlu0 %1484 }
  0x94   : > { %1616 = vrot.lane.b32.xlu1 %v1615_v35, %s1745_s25 }
  0x97   : > { %v2018_v38 = vpop.permute.xlu1 %1499  ;;  %v2020_v39 = vpop.permute.xlu0 %1494 }
  0x9b   : > { %v1510_v41 = vpop.permute.xlu1 %1509  ;;  %v2022_v42 = vpop.permute.xlu0 %1504 }
  0x9c   : > { %v1512_v43 = vunpack.i.h.bf16 %v1510_v41  ;;  %v1511_v44 = vunpack.i.l.bf16 %v1510_v41 }
  0x9e   : > { %v543_v45 = vsel %vm501_vm1, 0.0, %v1511_v44 }
  0x9f   : > { %v1515_v51 = vpop.permute.xlu0 %1514  ;;  %v1620_v52 = vpack.i.bf16 %v1512_v43, %v543_v45  ;;  %v1520_v55 = vpop.permute.xlu1 %1519  ;;  %v1496_v45 = vunpack.i.l.bf16 %v2020_v39 }
  0xa1   : > { %1621 = vrot.lane.b32.xlu0 %v1620_v52, %s1744_s24  ;;  %v358_v28 = vsel %vm296_vm0, 0.0, %v1496_v45 }
  0xa3   : > { %v1525_v56 = vpop.permute.xlu0 %1524  ;;  %v2035_v59 = vpop.permute.xlu1 %349 }
  0xa4   : > { %1641 = vrot.lane.b32.xlu1 %v1525_v56, %s1744_s24 }
  0xa5   : > { %1626 = vrot.lane.b32.xlu0 %v1515_v51, %s1744_s24 }
  0xa9   : > { %1631 = vrot.lane.b32.xlu0 %v1520_v55, %s1744_s24  ;;  %s1750_s24 = smov 48  }
  0xad   : > { %1636 = vrot.lane.b32.xlu0 %v1635_v58, %s1748_s10 }
  0xb0   : > { %v375_v60 = vpop.permute.xlu1 %374  ;;  %v2038_v61 = vpop.permute.xlu0 %369 }
  0xb1   : > { %v407_v34 = vmul.f32 %v2038_v61, %v336_v31 }
  0xb4   : > { %v2040_v62 = vpop.permute.xlu1 %379  ;;  %v2042_v63 = vpop.permute.xlu0 %384 }
  0xb8   : > { %v2044_v0 = vpop.permute.xlu1 %389  ;;  %v2046_v46 = vpop.permute.xlu0 %394 }
  0xbc   : > { %v2048_v1 = vpop.permute.xlu1 %399  ;;  %v2050_v2 = vpop.permute.xlu0 %404 }
  0xc0   : > { %v2052_v3 = vpop.permute.xlu1 %579  ;;  %v2054_v8 = vpop.permute.xlu0 %584 }
  0xc4   : > { %v2056_v15 = vpop.permute.xlu1 %589  ;;  %v1532_v16 = vpop.permute.xlu0 %1531 }
  0xc8   : > { %v2058_v17 = vpop.permute.xlu1 %594  ;;  %v2060_v18 = vpop.permute.xlu0 %599 }
  0xcc   : > { %v1537_v14 = vpop.permute.xlu1 %1536  ;;  %v1552_v20 = vpop.permute.xlu0 %1551 }
  0xcd   : > { %v1538_v13 = vunpack.i.l.bf16 %v1537_v14  ;;  %v1539_v35 = vunpack.i.h.bf16 %v1537_v14  ;;  %v1554_v56 = vunpack.i.h.bf16 %v1552_v20 }
  0xcf   : > { %v1645_v19 = vpack.i.bf16 %v1538_v13, %v1749_v23 }
  0xd0   : > { %v1542_v21 = vpop.permute.xlu1 %1541  ;;  %v2062_v22 = vpop.permute.xlu0 %604 }
  0xd1   : > { %1646 = vrot.lane.b32.xlu1 %v1645_v19, %s1750_s24  ;;  %v1544_v23 = vunpack.i.h.bf16 %v1542_v21 }
  0xd3   : > { %v1680_v41 = vadd.high.f32.bf16 %v1544_v23, %v1532_v16 }
  0xd4   : > { %v1547_v25 = vpop.permute.xlu1 %1546  ;;  %v2067_v26 = vpop.permute.xlu0 %609 }
  0xd5   : > { %1656 = vrot.lane.b32.xlu1 %v1655_v24, %s1748_s10  ;;  %v758_v19 = vmul.f32 %v1680_v41, %v375_v60  ;;  %v1533_v24 = vunpack.i.l.bf16 %v1532_v16  ;;  %v1682_v23 = vadd.high.f32.bf16 %v1554_v56, %v1547_v25 }
  0xd7   : > { %v760_v45 = vmul.f32 %v1682_v23, %v2042_v63 }
  0xd8   : > { %v1557_v29 = vpop.permute.xlu1 %1556  ;;  %v1577_v30 = vpop.permute.xlu0 %1576 }
  0xd9   : > { %1661 = vrot.lane.b32.xlu1 %v1660_v27, %s1748_s10  ;;  %v1681_v58 = vadd.low.f32.bf16 %v1888_v40, %v1557_v29  ;;  %v1578_v56 = vunpack.i.l.bf16 %v1577_v30 }
  0xdb   : > { %v835_v31 = vmul.f32 %v1681_v58, %v2052_v3 }
  0xdc   : > { %v1562_v43 = vpop.permute.xlu1 %1561  ;;  %v1582_v44 = vpop.permute.xlu0 %1581 }
  0xdd   : > { %v1564_v51 = vunpack.i.h.bf16 %v1562_v43  ;;  %v1563_v52 = vunpack.i.l.bf16 %v1562_v43  ;;  %v1583_v55 = vunpack.i.l.bf16 %v1582_v44  ;;  %423 = vrot.lane.b32.xlu1 %v407_v34, %s1745_s25  ;;  %v1683_v43 = vadd.high.f32.bf16 %v358_v28, %v2009_v33 }
  0xde   : > { %v721_v34 = vsel %vm296_vm0, 0.0, %v1533_v24  ;;  %v1584_v58 = vunpack.i.h.bf16 %v1582_v44 }
  0xdf   : > { %v1650_v13 = vpack.i.bf16 %v1563_v52, %v1539_v35  ;;  %v1665_v14 = vpack.i.bf16 %v1583_v55, %v1564_v51  ;;  %v408_v16 = vmul.f32 %v1683_v43, %v375_v60  ;;  %v1553_v35 = vunpack.i.l.bf16 %v1552_v20 }
  0xe0   : > { %v1567_v27 = vpop.permute.xlu1 %1566  ;;  %v1684_v41 = vadd.low.f32.bf16 %v721_v34, %v1542_v21  ;;  %v1686_v60 = vadd.high.f32.bf16 %v1905_v49, %v1557_v29  ;;  %v1670_v29 = vpack.i.bf16 %v1803_v9, %v1797_v5  ;;  %v1587_v23 = vpop.permute.xlu0 %1586 }
  0xe1   : > { %1651 = vrot.lane.b32.xlu0 %v1650_v13, %s1750_s24  ;;  %775 = vrot.lane.b32.xlu1 %v758_v19, %s1742_s22  ;;  %v1685_v52 = vadd.low.f32.bf16 %v1553_v35, %v1547_v25  ;;  %v1579_v13 = vunpack.i.h.bf16 %v1577_v30  ;;  %v1689_v28 = vadd.low.f32.bf16 %v1908_v50, %v1567_v27  ;;  %v1691_v43 = vadd.low.f32.bf16 %v1902_v48, %v1587_v23 }
  0xe2   : > { %v757_v33 = vmul.f32 %v1684_v41, %v2038_v61  ;;  %v836_v61 = vmul.f32 %v1686_v60, %v2054_v8 }
  0xe3   : > { %v759_v20 = vmul.f32 %v1685_v52, %v2040_v62 }
  0xe4   : > { %v1572_v4 = vpop.permute.xlu1 %1571  ;;  %v1597_v34 = vpop.permute.xlu0 %1596 }
  0xe5   : > { %1666 = vrot.lane.b32.xlu0 %v1665_v14, %s1750_s24  ;;  %851 = vrot.lane.b32.xlu1 %v835_v31, %s1746_s30  ;;  %v1687_v19 = vadd.low.f32.bf16 %v1578_v56, %v1572_v4  ;;  %v1688_v25 = vadd.high.f32.bf16 %v1579_v13, %v1572_v4  ;;  %v1690_v14 = vadd.high.f32.bf16 %v1899_v47, %v1567_v27 }
  0xe6   : > { %v837_v4 = vmul.f32 %v1689_v28, %v2056_v15  ;;  %v1694_v56 = vadd.high.f32.bf16 %v1917_v53, %v1587_v23 }
  0xe7   : > { %v761_v44 = vmul.f32 %v1687_v19, %v2044_v0  ;;  %v762_v30 = vmul.f32 %v1688_v25, %v2046_v46  ;;  %v838_v31 = vmul.f32 %v1690_v14, %v2058_v17 }
  0xe8   : > { %v2088_v51 = vpop.permute.xlu1 %614 }
  0xe9   : > { %425 = vrot.lane.b32.xlu0 %v408_v16, %s1745_s25  ;;  %779 = vrot.lane.b32.xlu1 %v760_v45, %s1742_s22  ;;  %v839_v16 = vmul.f32 %v1691_v43, %v2060_v18 }
  0xec   : > { %v2093_v55 = vpop.permute.xlu1 %1591 }
  0xed   : > { %773 = vrot.lane.b32.xlu0 %v757_v33, %s1742_s22 }
  0xf0   : > { %v468_v21 = vpop.permute.xlu1 %467 }
  0xf1   : > { %v1675_v24 = vpack.i.bf16 %v468_v21, %v1584_v58  ;;  %777 = vrot.lane.b32.xlu0 %v759_v20, %s1742_s22  ;;  %v1598_v58 = vunpack.i.l.bf16 %v1597_v34 }
  0xf3   : > { %1676 = vrot.lane.b32.xlu1 %v1675_v24, %s1750_s24 }
  0xf5   : > { %853 = vrot.lane.b32.xlu0 %v836_v61, %s1746_s30 }
  0xf7   : > { %781 = vrot.lane.b32.xlu1 %v761_v44, %s1742_s22 }
  0xf9   : > { %1671 = vrot.lane.b32.xlu0 %v1670_v29, %s1748_s10 }
  0xfb   : > { %783 = vrot.lane.b32.xlu1 %v762_v30, %s1742_s22 }
  0xfd   : > { %855 = vrot.lane.b32.xlu0 %v837_v4, %s1746_s30 }
  0xfe   : > { %v2119_v27 = vpop.permute.xlu0 %1601 }
 0x101   : > { %857 = vrot.lane.b32.xlu0 %v838_v31, %s1746_s30  ;;  %v1501_v31 = vunpack.i.l.bf16 %v2018_v38 }
 0x102   : > { %v2122_v35 = vpop.permute.xlu0 %1611  ;;  %v2124_v41 = vpop.permute.xlu1 %1606 }
 0x105   : > { %677 = vrot.lane.b32.xlu0 %v1809_v12, %s1748_s10 }
 0x106   : > { %v2131_v13 = vpop.permute.xlu1 %1616 }
 0x109   : > { %859 = vrot.lane.b32.xlu0 %v839_v16, %s1746_s30  ;;  %v1506_v16 = vunpack.i.l.bf16 %v2022_v42 }
 0x113   : > { %v1622_v45 = vpop.permute.xlu0 %1621 }
 0x114   : > { %v1692_v52 = vadd.high.f32.bf16 %v1905_v49, %v1622_v45  ;;  %v1693_v33 = vadd.low.f32.bf16 %v1888_v40, %v1622_v45  ;;  %v1696_v49 = vadd.low.f32.bf16 %v1598_v58, %v2093_v55  ;;  %v840_v40 = vmul.f32 %v1694_v56, %v2062_v22 }
 0x115   : > { %v1507_v58 = vunpack.i.h.bf16 %v2022_v42 }
 0x116   : > { %v618_v20 = vmul.f32 %v1692_v52, %v2054_v8  ;;  %v617_v21 = vmul.f32 %v1693_v33, %v2052_v3  ;;  %v1642_v8 = vpop.permute.xlu1 %1641  ;;  %v1599_v3 = vunpack.i.h.bf16 %v1597_v34  ;;  %v1497_v34 = vunpack.i.h.bf16 %v2020_v39 }
 0x117   : > { %v1627_v60 = vpop.permute.xlu0 %1626 }
 0x118   : > { %v1695_v19 = vadd.low.f32.bf16 %v1908_v50, %v1627_v60  ;;  %635 = vrot.lane.b32.xlu0 %v618_v20, %s1746_s30  ;;  %633 = vrot.lane.b32.xlu1 %v617_v21, %s1746_s30  ;;  %v1697_v61 = vadd.high.f32.bf16 %v1899_v47, %v1627_v60  ;;  %v763_v50 = vmul.f32 %v1696_v49, %v2048_v1 }
 0x119   : > { %v1700_v47 = vadd.high.f32.bf16 %v1599_v3, %v2093_v55  ;;  %v1705_v33 = vadd.low.f32.bf16 %v1497_v34, %v2007_v32  ;;  %v1709_v60 = vadd.low.f32.bf16 %v1507_v58, %v2013_v36  ;;  %v1711_v21 = vadd.high.f32.bf16 %v1801_v7, %v2119_v27 }
 0x11a   : > { %v619_v25 = vmul.f32 %v1695_v19, %v2056_v15  ;;  %v620_v28 = vmul.f32 %v1697_v61, %v2058_v17  ;;  %v1701_v15 = vadd.low.f32.bf16 %v1922_v54, %v1642_v8  ;;  %v1702_v17 = vadd.high.f32.bf16 %v2030_v57, %v1642_v8 }
 0x11b   : > { %v1632_v24 = vpop.permute.xlu0 %1631  ;;  %v409_v39 = vmul.f32 %v1705_v33, %v2040_v62  ;;  %v413_v42 = vmul.f32 %v1709_v60, %v2048_v1 }
 0x11c   : > { %637 = vrot.lane.b32.xlu0 %v619_v25, %s1746_s30  ;;  %861 = vrot.lane.b32.xlu1 %v840_v40, %s1746_s30  ;;  %v1698_v44 = vadd.high.f32.bf16 %v1917_v53, %v1632_v24  ;;  %v1699_v29 = vadd.low.f32.bf16 %v1902_v48, %v1632_v24  ;;  %v764_v48 = vmul.f32 %v1700_v47, %v2050_v2 }
 0x11d   : > { %v623_v23 = vmul.f32 %v1701_v15, %v2067_v26  ;;  %v624_v43 = vmul.f32 %v1702_v17, %v2088_v51 }
 0x11e   : > { %v622_v4 = vmul.f32 %v1698_v44, %v2062_v22  ;;  %v621_v53 = vmul.f32 %v1699_v29, %v2060_v18 }
 0x11f   : > { %v2146_v30 = vpop.permute.xlu0 %1636 }
 0x120   : > { %785 = vrot.lane.b32.xlu0 %v763_v50, %s1742_s22  ;;  %639 = vrot.lane.b32.xlu1 %v620_v28, %s1746_s30  ;;  %v1639_v14 = vunpack.i.h.bf16 %v2146_v30  ;;  %v1703_v18 = vadd.low.f32.bf16 %v1922_v54, %v2146_v30  ;;  %v1502_v54 = vunpack.i.h.bf16 %v2018_v38 }
 0x122   : > { %v834_v55 = vadd.f32 %v1639_v14, %v2030_v57  ;;  %v1704_v57 = vadd.high.f32.bf16 %v1501_v31, %v2007_v32  ;;  %v841_v52 = vmul.f32 %v1703_v18, %v2067_v26  ;;  %v1708_v26 = vadd.low.f32.bf16 %v1502_v54, %v2015_v37  ;;  %v2650_v31 = vld [vmem:[#allocation2_spill] sm:$0xff] }
 0x124   : > { %643 = vrot.lane.b32.xlu0 %v622_v4, %s1746_s30  ;;  %641 = vrot.lane.b32.xlu1 %v621_v53, %s1746_s30  ;;  %v842_v22 = vmul.f32 %v834_v55, %v2088_v51  ;;  %v410_v45 = vmul.f32 %v1704_v57, %v2042_v63  ;;  %v1706_v51 = vadd.high.f32.bf16 %v1506_v16, %v2015_v37 }
 0x125   : > { %v1707_v63 = vadd.high.f32.bf16 %v2035_v59, %v2013_v36  ;;  %v411_v32 = vmul.f32 %v1708_v26, %v2044_v0 }
 0x126   : > { %v412_v56 = vmul.f32 %v1706_v51, %v2046_v46  ;;  %v1710_v46 = vadd.low.f32.bf16 %v1799_v6, %v2119_v27 }
 0x127   : > { %v414_v38 = vmul.f32 %v1707_v63, %v2050_v2 }
 0x128   : > { %787 = vrot.lane.b32.xlu0 %v764_v48, %s1742_s22  ;;  %645 = vrot.lane.b32.xlu1 %v623_v23, %s1746_s30  ;;  %s1751_s22 = smov 96  }
 0x12c   : > { %865 = vrot.lane.b32.xlu0 %v842_v22, %s1746_s30  ;;  %647 = vrot.lane.b32.xlu1 %v624_v43, %s1746_s30  ;;  %v2236_v43 = vadd.f32 %v1639_v14, %v1809_v12 }
 0x130   : > { %429 = vrot.lane.b32.xlu0 %v410_v45, %s1745_s25  ;;  %863 = vrot.lane.b32.xlu1 %v841_v52, %s1746_s30 }
 0x134   : > { %433 = vrot.lane.b32.xlu0 %v412_v56, %s1745_s25  ;;  %427 = vrot.lane.b32.xlu1 %v409_v39, %s1745_s25 }
 0x138   : > { %437 = vrot.lane.b32.xlu0 %v414_v38, %s1745_s25  ;;  %431 = vrot.lane.b32.xlu1 %v411_v32, %s1745_s25 }
 0x13c   : > { %435 = vrot.lane.b32.xlu1 %v413_v42, %s1745_s25  ;;  %s1386_s25 = sshll.u32 %s2664_s16, 1 }
 0x13d   : > { %s208_s28 = scalar_lea.vmem %s2643_s4, %s1386_s25 }
 0x143   : > { %v2197_v59 = vpop.permute.xlu1 %1646 }
 0x144   : > { %v1722_v54 = vadd.high.f32.bf16 %v1801_v7, %v2197_v59  ;;  %v1723_v30 = vadd.low.f32.bf16 %v1799_v6, %v2197_v59 }
 0x147   : > { %v1657_v37 = vpop.permute.xlu1 %1656 }
 0x148   : > { %v1712_v50 = vadd.high.f32.bf16 %v1801_v7, %v1657_v37  ;;  %v1713_v27 = vadd.low.f32.bf16 %v1799_v6, %v1657_v37 }
 0x14b   : > { %v1662_v62 = vpop.permute.xlu1 %1661 }
 0x14c   : > { %v1714_v28 = vadd.low.f32.bf16 %v1805_v10, %v1662_v62  ;;  %v1720_v22 = vadd.high.f32.bf16 %v1807_v11, %v1662_v62 }
 0x14f   : > { %v424_v0 = vpop.permute.xlu1 %423 }
 0x150   : > { %v2201_v20 = vadd.f32 %v1710_v46, %v424_v0 }
 0x152   : > { %v1150_v17 = vmul.f32 %v2201_v20, %v2201_v20  ;;  %v1048_v45 = vsel %vm1047_vm2, %v2201_v20, 0.0 }
 0x153   : > { %v2203_v2 = vpop.permute.xlu0 %1651  ;;  %v776_v61 = vpop.permute.xlu1 %775 }
 0x154   : > { %v2212_v29 = vadd.f32 %v1712_v50, %v776_v61  ;;  %v1158_v14 = vsel %vm1047_vm2, %v1150_v17, 0.0  ;;  %v1724_v7 = vadd.low.f32.bf16 %v1805_v10, %v2203_v2  ;;  %v1726_v38 = vadd.high.f32.bf16 %v1807_v11, %v2203_v2 }
 0x156   : > { %v1214_v16 = vmul.f32 %v2212_v29, %v2212_v29  ;;  %v1098_v33 = vsel %vm1096_vm3, %v2212_v29, 0.0 }
 0x157   : > { %v2205_v36 = vpop.permute.xlu0 %1666  ;;  %v852_v8 = vpop.permute.xlu1 %851 }
 0x158   : > { %v2246_v52 = vadd.f32 %v1713_v27, %v852_v8  ;;  %v1222_v6 = vsel %vm1096_vm3, %v1214_v16, 0.0  ;;  %v1727_v0 = vadd.high.f32.bf16 %v1797_v5, %v2205_v36 }
 0x15a   : > { %v1124_v60 = vsel %vm1123_vm4, %v2246_v52, 0.0  ;;  %v1247_v37 = vmul.f32 %v2246_v52, %v2246_v52 }
 0x15b   : > { %v426_v1 = vpop.permute.xlu0 %425  ;;  %v780_v44 = vpop.permute.xlu1 %779 }
 0x15c   : > { %v2209_v19 = vadd.f32 %v1711_v21, %v426_v1  ;;  %v2259_v56 = vadd.f32 %v1720_v22, %v780_v44 }
 0x15e   : > { %v1151_v39 = vmul.f32 %v2209_v19, %v2209_v19  ;;  %v1049_v62 = vsel %vm1047_vm2, %v2209_v19, 0.0  ;;  %v1216_v1 = vmul.f32 %v2259_v56, %v2259_v56 }
 0x15f   : > { %v774_v49 = vpop.permute.xlu0 %773 }
 0x160   : > { %v2226_v55 = vadd.f32 %v1713_v27, %v774_v49  ;;  %v1159_v21 = vsel %vm1047_vm2, %v1151_v39, 0.0 }
 0x162   : > { %v1213_v51 = vmul.f32 %v2226_v55, %v2226_v55  ;;  %v1097_v42 = vsel %vm1096_vm3, %v2226_v55, 0.0 }
 0x163   : > { %v778_v24 = vpop.permute.xlu0 %777 }
 0x164   : > { %v2242_v57 = vadd.f32 %v1714_v28, %v778_v24  ;;  %v1221_v46 = vsel %vm1096_vm3, %v1213_v51, 0.0  ;;  %v1255_v51 = vsel %vm1123_vm4, %v1247_v37, 0.0 }
 0x165   : > { %v2218_v15 = vpop.permute.xlu1 %1676  ;;  %v1223_v44 = vadd.f32 %v1222_v6, %v1221_v46 }
 0x166   : > { %v1215_v26 = vmul.f32 %v2242_v57, %v2242_v57  ;;  %v1100_v49 = vsel %vm1096_vm3, %v2242_v57, 0.0 }
 0x167   : > { %v854_v40 = vpop.permute.xlu0 %853 }
 0x168   : > { %v2275_v59 = vadd.f32 %v1712_v50, %v854_v40  ;;  %v1099_v40 = vadd.f32 %v1098_v33, %v1097_v42  ;;  %v1224_v61 = vsel %vm1096_vm3, %v1215_v26, 0.0  ;;  %v1729_v33 = vadd.low.f32.bf16 %v2650_v31, %v2205_v36 }
 0x169   : > { %v782_v58 = vpop.permute.xlu1 %781  ;;  %v2310_v26 = vadd.f32 %v1159_v21, %v1158_v14  ;;  %v1731_v14 = vadd.high.f32.bf16 %v1809_v12, %v2218_v15 }
 0x16a   : > { %v1248_v27 = vmul.f32 %v2275_v59, %v2275_v59  ;;  %v1101_v39 = vadd.f32 %v1100_v49, %v1099_v40  ;;  %v1125_v42 = vsel %vm1123_vm4, %v2275_v59, 0.0  ;;  %v1730_v40 = vadd.low.f32.bf16 %v1803_v9, %v2218_v15 }
 0x16b   : > { %v1672_v25 = vpop.permute.xlu0 %1671 }
 0x16c   : > { %v1725_v32 = vadd.low.f32.bf16 %v2650_v31, %v1672_v25  ;;  %v2290_v24 = vadd.high.f32.bf16 %v1797_v5, %v1672_v25  ;;  %v1102_v25 = vsel %vm1096_vm3, %v2259_v56, 0.0 }
 0x16d   : > { %v784_v17 = vpop.permute.xlu1 %783  ;;  %v1103_v21 = vadd.f32 %v1102_v25, %v1101_v39 }
 0x16e   : > { %v2295_v50 = vadd.f32 %v1725_v32, %v782_v58  ;;  %v1225_v58 = vadd.f32 %v1224_v61, %v1223_v44  ;;  %v2308_v6 = vadd.f32 %v2290_v24, %v784_v17 }
 0x16f   : > { %v856_v3 = vpop.permute.xlu0 %855 }
 0x170   : > { %v2293_v8 = vadd.f32 %v1714_v28, %v856_v3  ;;  %v2304_v3 = vadd.f32 %v1049_v62, %v1048_v45  ;;  %v1226_v28 = vsel %vm1096_vm3, %v1216_v1, 0.0  ;;  %v1217_v46 = vmul.f32 %v2295_v50, %v2295_v50 }
 0x171   : > { %v1256_v45 = vsel %vm1123_vm4, %v1248_v27, 0.0  ;;  %v1104_v61 = vsel %vm1096_vm3, %v2295_v50, 0.0  ;;  %v1227_v34 = vadd.f32 %v1226_v28, %v1225_v58  ;;  %v1126_v27 = vadd.f32 %v1125_v42, %v1124_v60 }
 0x172   : > { %v1249_v37 = vmul.f32 %v2293_v8, %v2293_v8  ;;  %v1257_v18 = vadd.f32 %v1256_v45, %v1255_v51  ;;  %v1228_v25 = vsel %vm1096_vm3, %v1217_v46, 0.0  ;;  %v1105_v58 = vadd.f32 %v1104_v61, %v1103_v21 }
 0x173   : > { %v858_v4 = vpop.permute.xlu0 %857 }
 0x174   : > { %v2319_v62 = vadd.f32 %v1720_v22, %v858_v4  ;;  %v1218_v4 = vmul.f32 %v2308_v6, %v2308_v6  ;;  %v1127_v22 = vsel %vm1123_vm4, %v2293_v8, 0.0  ;;  %v1258_v23 = vsel %vm1123_vm4, %v1249_v37, 0.0 }
 0x175   : > { %v1128_v42 = vadd.f32 %v1127_v22, %v1126_v27  ;;  %v1259_v46 = vadd.f32 %v1258_v23, %v1257_v18 }
 0x176   : > { %v1129_v51 = vsel %vm1123_vm4, %v2319_v62, 0.0  ;;  %v1230_v37 = vsel %vm1096_vm3, %v1218_v4, 0.0 }
 0x177   : > { %v2261_v63 = vpop.permute.xlu0 %677  ;;  %v1130_v27 = vadd.f32 %v1129_v51, %v1128_v42 }
 0x178   : > { %v2357_v45 = vadd.f32 %v1803_v9, %v2261_v63 }
 0x17b   : > { %v860_v16 = vpop.permute.xlu0 %859 }
 0x17c   : > { %v2336_v48 = vadd.f32 %v1725_v32, %v860_v16 }
 0x17e   : > { %2651 = vst [vmem:[#allocation2_spill] sm:$0xff] %v2336_v48 }
 0x18a   : > { %v636_v1 = vpop.permute.xlu0 %635  ;;  %v634_v49 = vpop.permute.xlu1 %633 }
 0x18b   : > { %v2327_v44 = vadd.f32 %v1722_v54, %v636_v1  ;;  %v2329_v17 = vadd.f32 %v1723_v30, %v634_v49  ;;  %v1106_v54 = vsel %vm1096_vm3, %v2308_v6, 0.0  ;;  %v1250_v30 = vmul.f32 %v2319_v62, %v2319_v62 }
 0x18c   : > { %v1229_v1 = vadd.f32 %v1228_v25, %v1227_v34  ;;  %v1251_v49 = vmul.f32 %v2336_v48, %v2336_v48  ;;  %v1107_v4 = vadd.f32 %v1106_v54, %v1105_v58 }
 0x18d   : > { %v1180_v60 = vmul.f32 %v2327_v44, %v2327_v44  ;;  %v1179_v32 = vmul.f32 %v2329_v17, %v2329_v17  ;;  %v1071_v21 = vsel %vm1069_vm5, %v2327_v44, 0.0  ;;  %v1070_v61 = vsel %vm1069_vm5, %v2329_v17, 0.0 }
 0x18e   : > { %v638_v39 = vpop.permute.xlu0 %637  ;;  %v862_v28 = vpop.permute.xlu1 %861  ;;  %v1260_v23 = vsel %vm1123_vm4, %v1250_v30, 0.0  ;;  %v1131_v30 = vsel %vm1123_vm4, %v2336_v48, 0.0  ;;  %v1231_v58 = vadd.f32 %v1230_v37, %v1229_v1  ;;  %v1262_v42 = vsel %vm1123_vm4, %v1251_v49, 0.0 }
 0x18f   : > { %v2352_v16 = vadd.f32 %v1724_v7, %v638_v39  ;;  %v1188_v18 = vsel %vm1069_vm5, %v1180_v60, 0.0  ;;  %v1187_v22 = vsel %vm1069_vm5, %v1179_v32, 0.0  ;;  %v1072_v60 = vadd.f32 %v1071_v21, %v1070_v61 }
 0x190   : > { %v2383_v54 = vadd.f32 %v2290_v24, %v862_v28  ;;  %v1132_v28 = vadd.f32 %v1131_v30, %v1130_v27 }
 0x191   : > { %v1181_v7 = vmul.f32 %v2352_v16, %v2352_v16  ;;  %v1073_v25 = vsel %vm1069_vm5, %v2352_v16, 0.0 }
 0x192   : > { %v786_v63 = vpop.permute.xlu0 %785  ;;  %v640_v34 = vpop.permute.xlu1 %639 }
 0x193   : > { %v2373_v39 = vadd.f32 %v786_v63, %v2357_v45  ;;  %v2378_v53 = vadd.f32 %v1726_v38, %v640_v34  ;;  %v1190_v51 = vsel %vm1069_vm5, %v1181_v7, 0.0  ;;  %v1261_v38 = vadd.f32 %v1260_v23, %v1259_v46 }
 0x194   : > { %v1189_v63 = vadd.f32 %v1188_v18, %v1187_v22  ;;  %v1074_v34 = vadd.f32 %v1073_v25, %v1072_v60  ;;  %v1133_v23 = vsel %vm1123_vm4, %v2383_v54, 0.0 }
 0x195   : > { %v1075_v32 = vsel %vm1069_vm5, %v2378_v53, 0.0  ;;  %v1182_v2 = vmul.f32 %v2378_v53, %v2378_v53  ;;  %v1219_v21 = vmul.f32 %v2373_v39, %v2373_v39  ;;  %v1263_v46 = vadd.f32 %v1262_v42, %v1261_v38 }
 0x196   : > { %v644_v61 = vpop.permute.xlu0 %643  ;;  %v642_v24 = vpop.permute.xlu1 %641  ;;  %v1191_v7 = vadd.f32 %v1190_v51, %v1189_v63  ;;  %v1076_v18 = vadd.f32 %v1075_v32, %v1074_v34  ;;  %v1108_v27 = vsel %vm1096_vm3, %v2373_v39, 0.0 }
 0x197   : > { %v1192_v37 = vsel %vm1069_vm5, %v1182_v2, 0.0  ;;  %v2397_v1 = vadd.f32 %v1727_v0, %v644_v61  ;;  %v2402_v49 = vadd.f32 %v1729_v33, %v642_v24  ;;  %v1252_v33 = vmul.f32 %v2383_v54, %v2383_v54 }
 0x198   : > { %v1232_v25 = vsel %vm1096_vm3, %v1219_v21, 0.0  ;;  %v1193_v30 = vadd.f32 %v1192_v37, %v1191_v7  ;;  %v1109_v34 = vadd.f32 %v1108_v27, %v1107_v4 }
 0x199   : > { %v1184_v22 = vmul.f32 %v2397_v1, %v2397_v1  ;;  %v1077_v0 = vsel %vm1069_vm5, %v2402_v49, 0.0  ;;  %v1183_v36 = vmul.f32 %v2402_v49, %v2402_v49  ;;  %v1079_v32 = vsel %vm1069_vm5, %v2397_v1, 0.0 }
 0x19a   : > { %v1078_v60 = vadd.f32 %v1077_v0, %v1076_v18  ;;  %v788_v42 = vpop.permute.xlu0 %787  ;;  %v646_v51 = vpop.permute.xlu1 %645 }
 0x19b   : > { %v1194_v2 = vsel %vm1069_vm5, %v1183_v36, 0.0  ;;  %v2421_v38 = vadd.f32 %v788_v42, %v2236_v43  ;;  %v2426_v63 = vadd.f32 %v1730_v40, %v646_v51  ;;  %v1196_v21 = vsel %vm1069_vm5, %v1184_v22, 0.0 }
 0x19c   : > { %v1195_v61 = vadd.f32 %v1194_v2, %v1193_v30  ;;  %v1080_v24 = vadd.f32 %v1079_v32, %v1078_v60  ;;  %v1264_v40 = vsel %vm1123_vm4, %v1252_v33, 0.0  ;;  %v1233_v36 = vadd.f32 %v1232_v25, %v1231_v58 }
 0x19d   : > { %v1110_v37 = vsel %vm1096_vm3, %v2421_v38, 0.0  ;;  %v1220_v7 = vmul.f32 %v2421_v38, %v2421_v38  ;;  %v1081_v18 = vsel %vm1069_vm5, %v2426_v63, 0.0  ;;  %v1185_v0 = vmul.f32 %v2426_v63, %v2426_v63 }
 0x19e   : > { %v1111_v4 = vadd.f32 %v1110_v37, %v1109_v34  ;;  %v1197_v27 = vadd.f32 %v1196_v21, %v1195_v61  ;;  %v866_v22 = vpop.permute.xlu0 %865  ;;  %v648_v30 = vpop.permute.xlu1 %647  ;;  %v1134_v2 = vadd.f32 %v1133_v23, %v1132_v28  ;;  %v1082_v58 = vadd.f32 %v1081_v18, %v1080_v24 }
 0x19f   : > { %v1234_v60 = vsel %vm1096_vm3, %v1220_v7, 0.0  ;;  %v1198_v42 = vsel %vm1069_vm5, %v1185_v0, 0.0  ;;  %v2441_v51 = vadd.f32 %v866_v22, %v2236_v43  ;;  %v2446_v32 = vadd.f32 %v1731_v14, %v648_v30 }
 0x1a0   : > { %v1112_v47 = vrot.slane %v1111_v4, 4  ;;  %v1235_v33 = vadd.f32 %v1234_v60, %v1233_v36  ;;  %v1265_v25 = vadd.f32 %v1264_v40, %v1263_v46  ;;  %v1199_v61 = vadd.f32 %v1198_v42, %v1197_v27 }
 0x1a1   : > { %2652 = vst [vmem:[#allocation3_spill] sm:$0xff] %v2441_v51  ;;  %v1254_v34 = vmul.f32 %v2441_v51, %v2441_v51  ;;  %v1083_v21 = vsel %vm1069_vm5, %v2446_v32, 0.0  ;;  %v1186_v43 = vmul.f32 %v2446_v32, %v2446_v32  ;;  %v1137_v28 = vsel %vm1123_vm4, %v2441_v51, 0.0 }
 0x1a2   : > { %v1084_v37 = vadd.f32 %v1083_v21, %v1082_v58  ;;  %v430_v7 = vpop.permute.xlu0 %429  ;;  %v864_v15 = vpop.permute.xlu1 %863  ;;  %v1113_v14 = vadd.f32 %v1112_v47, %v1111_v4  ;;  %v1236_v0 = vrot.slane %v1235_v33, 4  ;;  %v2653_v23 = vadd.high.f32.bf16 %v1807_v11, %v2124_v41 }
 0x1a3   : > { %v1200_v46 = vsel %vm1069_vm5, %v1186_v43, 0.0  ;;  %v2463_v18 = vadd.f32 %v864_v15, %v2357_v45  ;;  %v1268_v40 = vsel %vm1123_vm4, %v1254_v34, 0.0 }
 0x1a4   : > { %v2460_v24 = vadd.f32 %v2653_v23, %v430_v7  ;;  %v1085_v36 = vrot.slane %v1084_v37, 4  ;;  %v1201_v27 = vadd.f32 %v1200_v46, %v1199_v61  ;;  %v1114_v22 = vrot.slane %v1113_v14, 2 }
 0x1a5   : > { %2654 = vst [vmem:[#allocation4_spill] sm:$0xff] %v2463_v18  ;;  %v1135_v4 = vsel %vm1123_vm4, %v2463_v18, 0.0  ;;  %v1253_v30 = vmul.f32 %v2463_v18, %v2463_v18  ;;  %v1237_v11 = vadd.f32 %v1236_v0, %v1235_v33  ;;  %v2655_v7 = vadd.high.f32.bf16 %v1797_v5, %v2122_v35 }
 0x1a6   : > { %v1153_v47 = vmul.f32 %v2460_v24, %v2460_v24  ;;  %v1086_v60 = vadd.f32 %v1085_v36, %v1084_v37  ;;  %v1202_v42 = vrot.slane %v1201_v27, 4  ;;  %v1136_v58 = vadd.f32 %v1135_v4, %v1134_v2  ;;  %v434_v45 = vpop.permute.xlu0 %433  ;;  %v428_v21 = vpop.permute.xlu1 %427 }
 0x1a7   : > { %v1115_v43 = vadd.f32 %v1114_v22, %v1113_v14  ;;  %v1053_v34 = vsel %vm1047_vm2, %v2460_v24, 0.0  ;;  %v1266_v61 = vsel %vm1123_vm4, %v1253_v30, 0.0  ;;  %v2478_v15 = vadd.f32 %v2655_v7, %v434_v45 }
 0x1a8   : > { %v2656_v46 = vadd.low.f32.bf16 %v1805_v10, %v2124_v41  ;;  %v1087_v37 = vrot.slane %v1086_v60, 2  ;;  %v1163_v2 = vsel %vm1047_vm2, %v1153_v47, 0.0  ;;  %v1138_v0 = vadd.f32 %v1137_v28, %v1136_v58 }
 0x1a9   : > { %v1267_v14 = vadd.f32 %v1266_v61, %v1265_v25  ;;  %v1203_v23 = vadd.f32 %v1202_v42, %v1201_v27  ;;  %v1155_v36 = vmul.f32 %v2478_v15, %v2478_v15  ;;  %v1057_v25 = vsel %vm1047_vm2, %v2478_v15, 0.0 }
 0x1aa   : > { %v2483_v33 = vadd.f32 %v2656_v46, %v428_v21  ;;  %v1139_v4 = vrot.slane %v1138_v0, 4  ;;  %v438_v41 = vpop.permute.xlu0 %437  ;;  %v432_v45 = vpop.permute.xlu1 %431  ;;  %v1116_v21 = vrot.slane %v1115_v43, 1  ;;  %v2657_v27 = vadd.high.f32.bf16 %v1809_v12, %v2131_v13 }
 0x1ab   : > { %v1269_v30 = vadd.f32 %v1268_v40, %v1267_v14  ;;  %v2658_v42 = vadd.low.f32.bf16 %v2650_v31, %v2122_v35  ;;  %v1167_v40 = vsel %vm1047_vm2, %v1155_v36, 0.0  ;;  %v2659_v31 = vadd.low.f32.bf16 %v1803_v9, %v2131_v13 }
 0x1ac   : > { %v1051_v22 = vsel %vm1047_vm2, %v2483_v33, 0.0  ;;  %v1152_v5 = vmul.f32 %v2483_v33, %v2483_v33  ;;  %v454_v47 = vadd.f32 %v2657_v27, %v438_v41  ;;  %v1140_v61 = vadd.f32 %v1139_v4, %v1138_v0 }
 0x1ad   : > { %v1052_v10 = vadd.f32 %v1051_v22, %v2304_v3  ;;  %v451_v58 = vadd.f32 %v2658_v42, %v432_v45  ;;  %v1270_v46 = vrot.slane %v1269_v30, 4  ;;  %v1117_v12 = vadd.f32 %v1116_v21, %v1115_v43 }
 0x1ae   : > { %v1161_v28 = vsel %vm1047_vm2, %v1152_v5, 0.0  ;;  %v1061_v14 = vsel %vm1047_vm2, %v454_v47, 0.0  ;;  %v1238_v41 = vrot.slane %v1237_v11, 2  ;;  %v436_v27 = vpop.permute.xlu1 %435  ;;  %v1157_v51 = vmul.f32 %v454_v47, %v454_v47 }
 0x1af   : > { %v1162_v3 = vadd.f32 %v1161_v28, %v2310_v26  ;;  %v1054_v7 = vadd.f32 %v1053_v34, %v1052_v10  ;;  %v1055_v22 = vsel %vm1047_vm2, %v451_v58, 0.0  ;;  %v1154_v5 = vmul.f32 %v451_v58, %v451_v58  ;;  %1119 = vrot.lane.b32.xlu0 %v1117_v12, %s1751_s22 }
 0x1b0   : > { %v453_v0 = vadd.f32 %v2659_v31, %v436_v27  ;;  %v1088_v26 = vadd.f32 %v1087_v37, %v1086_v60  ;;  %v1239_v36 = vadd.f32 %v1238_v41, %v1237_v11  ;;  %v1141_v10 = vrot.slane %v1140_v61, 2 }
 0x1b1   : > { %v1164_v18 = vadd.f32 %v1163_v2, %v1162_v3  ;;  %v1056_v48 = vadd.f32 %v1055_v22, %v1054_v7  ;;  %v1165_v35 = vsel %vm1047_vm2, %v1154_v5, 0.0  ;;  %v1271_v21 = vadd.f32 %v1270_v46, %v1269_v30 }
 0x1b2   : > { %v1059_v2 = vsel %vm1047_vm2, %v453_v0, 0.0  ;;  %v1156_v45 = vmul.f32 %v453_v0, %v453_v0  ;;  %v1089_v43 = vrot.slane %v1088_v26, 1  ;;  %v1240_v28 = vrot.slane %v1239_v36, 1 }
 0x1b3   : > { %v1166_v34 = vadd.f32 %v1165_v35, %v1164_v18  ;;  %v1058_v4 = vadd.f32 %v1057_v25, %v1056_v48  ;;  %v1142_v7 = vadd.f32 %v1141_v10, %v1140_v61  ;;  %v1272_v13 = vrot.slane %v1271_v21, 2 }
 0x1b4   : > { %v1169_v22 = vsel %vm1047_vm2, %v1156_v45, 0.0  ;;  %v1090_v9 = vadd.f32 %v1089_v43, %v1088_v26  ;;  %v1204_v60 = vrot.slane %v1203_v23, 2  ;;  %v1241_v18 = vadd.f32 %v1240_v28, %v1239_v36 }
 0x1b5   : > { %v1168_v42 = vadd.f32 %v1167_v40, %v1166_v34  ;;  %v1060_v3 = vadd.f32 %v1059_v2, %v1058_v4  ;;  %v1143_v11 = vrot.slane %v1142_v7, 1  ;;  %v1171_v48 = vsel %vm1047_vm2, %v1157_v51, 0.0 }
 0x1b6   : > { %1092 = vrot.lane.b32.xlu0 %v1090_v9, %s1752_s13  ;;  %v1273_v25 = vadd.f32 %v1272_v13, %v1271_v21  ;;  %v1205_v12 = vadd.f32 %v1204_v60, %v1203_v23  ;;  %1243 = vrot.lane.b32.xlu1 %v1241_v18, %s1751_s22 }
 0x1b7   : > { %v1062_v37 = vadd.f32 %v1061_v14, %v1060_v3  ;;  %v1170_v5 = vadd.f32 %v1169_v22, %v1168_v42  ;;  %v1144_v30 = vadd.f32 %v1143_v11, %v1142_v7 }
 0x1b8   : > { %v1274_v46 = vrot.slane %v1273_v25, 1  ;;  %v1206_v41 = vrot.slane %v1205_v12, 1 }
 0x1b9   : > { %v1172_v40 = vadd.f32 %v1171_v48, %v1170_v5 }
 0x1ba   : > { %1146 = vrot.lane.b32.xlu0 %v1144_v30, %s1753_s14  ;;  %v1275_v61 = vadd.f32 %v1274_v46, %v1273_v25  ;;  %v1207_v14 = vadd.f32 %v1206_v41, %v1205_v12 }
 0x1bc   : > { %1277 = vrot.lane.b32.xlu1 %v1275_v61, %s1753_s14 }
 0x1be   : > { %893 = vrot.lane.b32.xlu0 %v2209_v19, %s1753_s14  ;;  %v2661_v19 = vld [vmem:[#allocation2_spill] sm:$0xff] }
 0x1c0   : > { %1209 = vrot.lane.b32.xlu1 %v1207_v14, %s1752_s13 }
 0x1c2   : > { %897 = vrot.lane.b32.xlu0 %v2460_v24, %s1753_s14 }
 0x1c4   : > { %891 = vrot.lane.b32.xlu1 %v2201_v20, %s1753_s14  ;;  %v2660_v20 = vld [vmem:[#allocation3_spill] sm:$0xff] }
 0x1c6   : > { %901 = vrot.lane.b32.xlu0 %v2478_v15, %s1753_s14 }
 0x1c8   : > { %895 = vrot.lane.b32.xlu1 %v2483_v33, %s1753_s14 }
 0x1ca   : > { %905 = vrot.lane.b32.xlu0 %v454_v47, %s1753_s14 }
 0x1cc   : > { %899 = vrot.lane.b32.xlu1 %v451_v58, %s1753_s14 }
 0x1ce   : > { %934 = vrot.lane.b32.xlu0 %v2327_v44, %s1754_s17 }
 0x1d0   : > { %903 = vrot.lane.b32.xlu1 %v453_v0, %s1753_s14 }
 0x1d2   : > { %938 = vrot.lane.b32.xlu0 %v2378_v53, %s1754_s17  ;;  %v1063_v53 = vrot.slane %v1062_v37, 4 }
 0x1d4   : > { %932 = vrot.lane.b32.xlu1 %v2329_v17, %s1754_s17 }
 0x1d6   : > { %942 = vrot.lane.b32.xlu0 %v2397_v1, %s1754_s17 }
 0x1d8   : > { %936 = vrot.lane.b32.xlu1 %v2352_v16, %s1754_s17 }
 0x1da   : > { %946 = vrot.lane.b32.xlu0 %v2446_v32, %s1754_s17 }
 0x1dc   : > { %940 = vrot.lane.b32.xlu1 %v2402_v49, %s1754_s17 }
 0x1de   : > { %975 = vrot.lane.b32.xlu0 %v2212_v29, %s1755_s18  ;;  %v2662_v29 = vld [vmem:[#allocation4_spill] sm:$0xff] }
 0x1e0   : > { %944 = vrot.lane.b32.xlu1 %v2426_v63, %s1754_s17 }
 0x1e2   : > { %979 = vrot.lane.b32.xlu0 %v2259_v56, %s1755_s18 }
 0x1e4   : > { %973 = vrot.lane.b32.xlu1 %v2226_v55, %s1755_s18  ;;  %v1173_v55 = vrot.slane %v1172_v40, 4 }
 0x1e6   : > { %983 = vrot.lane.b32.xlu0 %v2308_v6, %s1755_s18 }
 0x1e8   : > { %977 = vrot.lane.b32.xlu1 %v2242_v57, %s1755_s18  ;;  %v1064_v57 = vadd.f32 %v1063_v53, %v1062_v37 }
 0x1ea   : > { %987 = vrot.lane.b32.xlu0 %v2421_v38, %s1755_s18 }
 0x1ec   : > { %981 = vrot.lane.b32.xlu1 %v2295_v50, %s1755_s18 }
 0x1ee   : > { %1016 = vrot.lane.b32.xlu0 %v2275_v59, %s1750_s24  ;;  %v1065_v59 = vrot.slane %v1064_v57, 2 }
 0x1f0   : > { %985 = vrot.lane.b32.xlu1 %v2373_v39, %s1755_s18 }
 0x1f2   : > { %1020 = vrot.lane.b32.xlu0 %v2319_v62, %s1750_s24  ;;  %v1066_v62 = vadd.f32 %v1065_v59, %v1064_v57 }
 0x1f4   : > { %1014 = vrot.lane.b32.xlu1 %v2246_v52, %s1750_s24  ;;  %v1174_v52 = vadd.f32 %v1173_v55, %v1172_v40  ;;  %v1067_v16 = vrot.slane %v1066_v62, 1 }
 0x1f6   : > { %1024 = vrot.lane.b32.xlu0 %v2383_v54, %s1750_s24  ;;  %v1175_v50 = vrot.slane %v1174_v52, 2  ;;  %v1068_v49 = vadd.f32 %v1067_v16, %v1066_v62 }
 0x1f8   : > { %1018 = vrot.lane.b32.xlu1 %v2293_v8, %s1750_s24  ;;  %v1176_v44 = vadd.f32 %v1175_v50, %v1174_v52 }
 0x1fa   : > { %1028 = vrot.lane.b32.xlu0 %v2660_v20, %s1750_s24  ;;  %v1177_v39 = vrot.slane %v1176_v44, 1 }
 0x1fc   : > { %1022 = vrot.lane.b32.xlu1 %v2661_v19, %s1750_s24  ;;  %v1178_v38 = vadd.f32 %v1177_v39, %v1176_v44 }
 0x200   : > { %1026 = vrot.lane.b32.xlu1 %v2662_v29, %s1750_s24 }
 0x221   : > { %v1120_v56 = vpop.permute.xlu0 %1119 }
 0x228   : > { %v1093_v6 = vpop.permute.xlu0 %1092  ;;  %v1244_v8 = vpop.permute.xlu1 %1243 }
 0x229   : > { %v1095_v51 = vadd.f32 %v1093_v6, %v1068_v49 }
 0x22b   : > { %v1122_v23 = vadd.f32 %v1120_v56, %v1095_v51 }
 0x22c   : > { %v1147_v17 = vpop.permute.xlu0 %1146 }
 0x22d   : > { %v1149_v27 = vadd.f32 %v1147_v17, %v1122_v23 }
 0x22e   : > { %v1278_v54 = vpop.permute.xlu1 %1277 }
 0x230   : > { %v894_v1 = vpop.permute.xlu0 %893 }
 0x231   : > { %917 = vst.msk [vmem:[%s2564_s23 + $0x8] sm:$0xff] %vm915_vm6, %v894_v1 }
 0x232   : > { %v1210_v63 = vpop.permute.xlu1 %1209 }
 0x233   : > { %v1212_v32 = vadd.f32 %v1210_v63, %v1178_v38 }
 0x234   : > { %v898_v24 = vpop.permute.xlu0 %897 }
 0x235   : > { %v1246_v15 = vadd.f32 %v1244_v8, %v1212_v32  ;;  %919 = vst.msk [vmem:[%s2564_s23 + $0x18] sm:$0xff] %vm915_vm6, %v898_v24 }
 0x236   : > { %v892_v33 = vpop.permute.xlu1 %891 }
 0x237   : > { %v1280_v47 = vadd.f32 %v1278_v54, %v1246_v15  ;;  %916 = vst.msk [vmem:[%s2564_s23] sm:$0xff] %vm915_vm6, %v892_v33 }
 0x238   : > { %v902_v58 = vpop.permute.xlu0 %901 }
 0x239   : > { %v1282_v35 = vrot.slane %v1280_v47, 7  ;;  %921 = vst.msk [vmem:[%s2564_s23 + $0x28] sm:$0xff] %vm915_vm6, %v902_v58 }
 0x23a   : > { %v896_v31 = vpop.permute.xlu1 %895 }
 0x23b   : > { %918 = vst.msk [vmem:[%s2564_s23 + $0x10] sm:$0xff] %vm915_vm6, %v896_v31  ;;  %v1284_v0 = vsel %vm296_vm0, %v1149_v27, %v1282_v35 }
 0x23c   : > { %1286 = vrot.lane.b32.xlu1 %v1284_v0, %s1753_s14  ;;  %v906_v26 = vpop.permute.xlu0 %905 }
 0x23d   : > { %923 = vst.msk [vmem:[%s2564_s23 + $0x38] sm:$0xff] %vm915_vm6, %v906_v26 }
 0x23e   : > { %v900_v34 = vpop.permute.xlu1 %899 }
 0x23f   : > { %920 = vst.msk [vmem:[%s2564_s23 + $0x20] sm:$0xff] %vm915_vm6, %v900_v34 }
 0x240   : > { %v935_v36 = vpop.permute.xlu0 %934 }
 0x241   : > { %1388 = vst.msk [vmem:[%s2564_s23 + $0x48] sm:$0xff] %vm915_vm6, %v935_v36 }
 0x242   : > { %v904_v4 = vpop.permute.xlu1 %903 }
 0x243   : > { %922 = vst.msk [vmem:[%s2564_s23 + $0x30] sm:$0xff] %vm915_vm6, %v904_v4 }
 0x244   : > { %v939_v10 = vpop.permute.xlu0 %938 }
 0x245   : > { %1390 = vst.msk [vmem:[%s2564_s23 + $0x58] sm:$0xff] %vm915_vm6, %v939_v10 }
 0x246   : > { %v933_v2 = vpop.permute.xlu1 %932 }
 0x247   : > { %1387 = vst.msk [vmem:[%s2564_s23 + $0x40] sm:$0xff] %vm915_vm6, %v933_v2 }
 0x248   : > { %v943_v45 = vpop.permute.xlu0 %942 }
 0x249   : > { %1392 = vst.msk [vmem:[%s2564_s23 + $0x68] sm:$0xff] %vm915_vm6, %v943_v45 }
 0x24a   : > { %v937_v43 = vpop.permute.xlu1 %936 }
 0x24b   : > { %1389 = vst.msk [vmem:[%s2564_s23 + $0x50] sm:$0xff] %vm915_vm6, %v937_v43 }
 0x24c   : > { %v947_v21 = vpop.permute.xlu0 %946 }
 0x24d   : > { %1394 = vst.msk [vmem:[%s2564_s23 + $0x78] sm:$0xff] %vm915_vm6, %v947_v21 }
 0x24e   : > { %v941_v28 = vpop.permute.xlu1 %940 }
 0x24f   : > { %1391 = vst.msk [vmem:[%s2564_s23 + $0x60] sm:$0xff] %vm915_vm6, %v941_v28 }
 0x250   : > { %v976_v42 = vpop.permute.xlu0 %975 }
 0x251   : > { %1396 = vst.msk [vmem:[%s2564_s23 + $0x88] sm:$0xff] %vm915_vm6, %v976_v42 }
 0x252   : > { %v945_v3 = vpop.permute.xlu1 %944 }
 0x253   : > { %1393 = vst.msk [vmem:[%s2564_s23 + $0x70] sm:$0xff] %vm915_vm6, %v945_v3 }
 0x254   : > { %v980_v7 = vpop.permute.xlu0 %979 }
 0x255   : > { %1398 = vst.msk [vmem:[%s2564_s23 + $0x98] sm:$0xff] %vm915_vm6, %v980_v7 }
 0x256   : > { %v974_v22 = vpop.permute.xlu1 %973 }
 0x257   : > { %1395 = vst.msk [vmem:[%s2564_s23 + $0x80] sm:$0xff] %vm915_vm6, %v974_v22 }
 0x258   : > { %v984_v9 = vpop.permute.xlu0 %983 }
 0x259   : > { %1400 = vst.msk [vmem:[%s2564_s23 + $0xa8] sm:$0xff] %vm915_vm6, %v984_v9 }
 0x25a   : > { %v978_v13 = vpop.permute.xlu1 %977 }
 0x25b   : > { %1397 = vst.msk [vmem:[%s2564_s23 + $0x90] sm:$0xff] %vm915_vm6, %v978_v13 }
 0x25c   : > { %v988_v60 = vpop.permute.xlu0 %987 }
 0x25d   : > { %1402 = vst.msk [vmem:[%s2564_s23 + $0xb8] sm:$0xff] %vm915_vm6, %v988_v60 }
 0x25e   : > { %v982_v18 = vpop.permute.xlu1 %981 }
 0x25f   : > { %1399 = vst.msk [vmem:[%s2564_s23 + $0xa0] sm:$0xff] %vm915_vm6, %v982_v18 }
 0x260   : > { %v1017_v37 = vpop.permute.xlu0 %1016 }
 0x261   : > { %1404 = vst.msk [vmem:[%s2564_s23 + $0xc8] sm:$0xff] %vm915_vm6, %v1017_v37 }
 0x262   : > { %v986_v5 = vpop.permute.xlu1 %985 }
 0x263   : > { %1401 = vst.msk [vmem:[%s2564_s23 + $0xb0] sm:$0xff] %vm915_vm6, %v986_v5 }
 0x264   : > { %v1021_v11 = vpop.permute.xlu0 %1020 }
 0x265   : > { %1406 = vst.msk [vmem:[%s2564_s23 + $0xd8] sm:$0xff] %vm915_vm6, %v1021_v11 }
 0x266   : > { %v1015_v48 = vpop.permute.xlu1 %1014 }
 0x267   : > { %1403 = vst.msk [vmem:[%s2564_s23 + $0xc0] sm:$0xff] %vm915_vm6, %v1015_v48 }
 0x268   : > { %v1025_v25 = vpop.permute.xlu0 %1024 }
 0x269   : > { %1408 = vst.msk [vmem:[%s2564_s23 + $0xe8] sm:$0xff] %vm915_vm6, %v1025_v25 }
 0x26a   : > { %v1019_v12 = vpop.permute.xlu1 %1018 }
 0x26b   : > { %1405 = vst.msk [vmem:[%s2564_s23 + $0xd0] sm:$0xff] %vm915_vm6, %v1019_v12 }
 0x26c   : > { %v1029_v30 = vpop.permute.xlu0 %1028 }
 0x26d   : > { %1410 = vst.msk [vmem:[%s2564_s23 + $0xf8] sm:$0xff] %vm915_vm6, %v1029_v30 }
 0x26e   : > { %v1023_v40 = vpop.permute.xlu1 %1022 }
 0x26f   : > { %1407 = vst.msk [vmem:[%s2564_s23 + $0xe0] sm:$0xff] %vm915_vm6, %v1023_v40 }
 0x272   : > { %v1027_v46 = vpop.permute.xlu1 %1026 }
 0x273   : > { %1409 = vst.msk [vmem:[%s2564_s23 + $0xf0] sm:$0xff] %vm915_vm6, %v1027_v46 }
 0x2ae   : > { %v1287_v61 = vpop.permute.xlu1 %1286 }
 0x2af   : > { %1290 = vst.msk [vmem:[%s208_s28] sm:$0x3] %vm1289_vm7, %v1287_v61 }
 0x2b0 PF: > { %s15_s15 = sadd.s32 1, %s1738_s15  }
 0x2b1   : > { %p12_p4 = scmp.ge.s32.totalorder %s15_s15, 4  }
 0x2b3   :  { %14 = sbr.rel (!%p12_p4) target bundleno = 1 (0x1), region = 77 }

// kernel: multi_unet_innermost_forward.9
= control target key start
LH: loop header
LB: loop body
LE: loop exit
PB: predicated region body
PF: predicated region fallthrough
CT: control target
= control target key end

     0   :  { %v90_v0 = vlaneseq  ;;  %vm299_vm0 = vcmask 64512   ;;  %s1445_s1 = inlined_call_operand.vmem [shape: f32[2,8], index: 1, kind: input, shape index: {}]   ;;  %s1446_s0 = inlined_call_operand.vmem [shape: f32[512,8], index: 0, kind: input, shape index: {}]   ;;  %s1447_s2 = inlined_call_operand.vmem [shape: f32[1,8], index: 2, kind: input, shape index: {}]   ;;  %s1448_s3 = inlined_call_operand.vmem [shape: f32[1,8], index: 3, kind: input, shape index: {}]   ;;  %s1449_s4 = inlined_call_operand.vmem [shape: f32[512,8], index: 4, kind: output, shape index: {}]  }
   0x1   :  { %v81_v1 = vld [vmem:[%s1445_s1] sm:$0x1]  ;;  %v83_v2 = vld [vmem:[%s1445_s1 + $0x1] sm:$0x1]  ;;  %v413_v11 = vld [vmem:[%s1446_s0 + $0x8] sm:$0xff] }
   0x2   :  { %v82_v3 = vmul.f32 0.001953125, %v81_v1  ;;  %v84_v4 = vmul.f32 0.001953125, %v83_v2  ;;  %v402_v5 = vshrl.u32 %v90_v0, 7  ;;  %v408_v9 = vld [vmem:[%s1446_s0] sm:$0xff]  ;;  %v422_v13 = vld [vmem:[%s1446_s0 + $0x10] sm:$0xff]  ;;  %v427_v14 = vld [vmem:[%s1446_s0 + $0x18] sm:$0xff] }
   0x3   :  { %v432_v15 = vld [vmem:[%s1446_s0 + $0x20] sm:$0xff]  ;;  %v437_v16 = vld [vmem:[%s1446_s0 + $0x28] sm:$0xff]  ;;  %v442_v18 = vld [vmem:[%s1446_s0 + $0x30] sm:$0xff] }
   0x4   :  { %v85_v6 = vmul.f32 %v82_v3, %v82_v3  ;;  %v1450_v7 = vsub.s32 0, %v402_v5  ;;  %v447_v19 = vld [vmem:[%s1446_s0 + $0x38] sm:$0xff]  ;;  %v452_v20 = vld [vmem:[%s1446_s0 + $0x40] sm:$0xff]  ;;  %v457_v21 = vld [vmem:[%s1446_s0 + $0x48] sm:$0xff] }
   0x5   :  { %v462_v22 = vld [vmem:[%s1446_s0 + $0x50] sm:$0xff]  ;;  %v467_v23 = vld [vmem:[%s1446_s0 + $0x58] sm:$0xff]  ;;  %v472_v24 = vld [vmem:[%s1446_s0 + $0x60] sm:$0xff] }
   0x6   :  { %v86_v8 = vsub.f32 %v84_v4, %v85_v6  ;;  %v417_v12 = vrot.slane %v82_v3, %v1450_v7  ;;  %v477_v25 = vld [vmem:[%s1446_s0 + $0x68] sm:$0xff]  ;;  %v482_v26 = vld [vmem:[%s1446_s0 + $0x70] sm:$0xff]  ;;  %v487_v27 = vld [vmem:[%s1446_s0 + $0x78] sm:$0xff] }
   0x7   :  { %v492_v28 = vld [vmem:[%s1446_s0 + $0x80] sm:$0xff]  ;;  %v497_v29 = vld [vmem:[%s1446_s0 + $0x88] sm:$0xff]  ;;  %v506_v32 = vld [vmem:[%s1446_s0 + $0x90] sm:$0xff] }
   0x8   :  { %v87_v10 = vmax.f32 %v86_v8, 0.0  ;;  %v511_v33 = vld [vmem:[%s1446_s0 + $0x98] sm:$0xff]  ;;  %v516_v34 = vld [vmem:[%s1446_s0 + $0xa0] sm:$0xff]  ;;  %v521_v35 = vld [vmem:[%s1446_s0 + $0xa8] sm:$0xff] }
   0x9   :  { %v534_v40 = vld [vmem:[%s1446_s0 + $0xb0] sm:$0xff]  ;;  %v539_v41 = vld [vmem:[%s1446_s0 + $0xb8] sm:$0xff]  ;;  %v544_v42 = vld [vmem:[%s1446_s0 + $0xc0] sm:$0xff] }
   0xa   :  { %v88_v17 = vadd.f32 1e-05, %v87_v10  ;;  %v549_v43 = vld [vmem:[%s1446_s0 + $0xc8] sm:$0xff]  ;;  %v562_v48 = vld [vmem:[%s1446_s0 + $0xd0] sm:$0xff]  ;;  %v567_v49 = vld [vmem:[%s1446_s0 + $0xd8] sm:$0xff] }
   0xb   :  { %v572_v50 = vld [vmem:[%s1446_s0 + $0xe0] sm:$0xff]  ;;  %v577_v51 = vld [vmem:[%s1446_s0 + $0xe8] sm:$0xff]  ;;  %v590_v56 = vld [vmem:[%s1446_s0 + $0xf0] sm:$0xff] }
   0xc   :  { %369 = vrsqrt.f32 %v88_v17  ;;  %v595_v57 = vld [vmem:[%s1446_s0 + $0xf8] sm:$0xff]  ;;  %v600_v58 = vld [vmem:[%s1446_s0 + $0x100] sm:$0xff]  ;;  %v605_v59 = vld [vmem:[%s1446_s0 + $0x108] sm:$0xff] }
   0xd   :  { %v618_v0 = vld [vmem:[%s1446_s0 + $0x110] sm:$0xff]  ;;  %v623_v1 = vld [vmem:[%s1446_s0 + $0x118] sm:$0xff]  ;;  %v628_v2 = vld [vmem:[%s1446_s0 + $0x120] sm:$0xff] }
   0xe   :  { %v641_v10 = vld [vmem:[%s1446_s0 + $0x128] sm:$0xff]  ;;  %v646_v17 = vld [vmem:[%s1446_s0 + $0x130] sm:$0xff]  ;;  %v651_v4 = vld [vmem:[%s1446_s0 + $0x138] sm:$0xff] }
   0xf   :  { %v664_v62 = vld [vmem:[%s1446_s0 + $0x140] sm:$0xff]  ;;  %v669_v61 = vld [vmem:[%s1446_s0 + $0x148] sm:$0xff]  ;;  %v674_v8 = vld [vmem:[%s1446_s0 + $0x150] sm:$0xff] }
  0x10   :  { %1464 = vst [vmem:[#allocation2_spill] sm:$0xff] %v674_v8  ;;  %v687_v55 = vld [vmem:[%s1446_s0 + $0x158] sm:$0xff]  ;;  %v692_v54 = vld [vmem:[%s1446_s0 + $0x160] sm:$0xff]  ;;  %v697_v63 = vld [vmem:[%s1446_s0 + $0x168] sm:$0xff] }
  0x11   :  { %1465 = vst [vmem:[#allocation3_spill] sm:$0xff] %v687_v55  ;;  %1466 = vst [vmem:[#allocation4_spill] sm:$0xff] %v692_v54  ;;  %v158_v6 = vld [vmem:[%s1447_s2] sm:$0x1]  ;;  %v713_v47 = vld [vmem:[%s1446_s0 + $0x170] sm:$0xff] }
  0x12   :  { %1467 = vst [vmem:[#allocation5_spill] sm:$0xff] %v697_v63  ;;  %1468 = vst [vmem:[#allocation6_spill] sm:$0xff] %v713_v47  ;;  %v718_v46 = vld [vmem:[%s1446_s0 + $0x178] sm:$0xff]  ;;  %v723_v3 = vld [vmem:[%s1446_s0 + $0x180] sm:$0xff]  ;;  %v1480_v63 = vsub.f32 %v422_v13, %v417_v12  ;;  %v1484_v13 = vsub.f32 %v442_v18, %v417_v12 }
  0x13   :  { %1469 = vst [vmem:[#allocation7_spill] sm:$0xff] %v718_v46  ;;  %1470 = vst [vmem:[#allocation8_spill] sm:$0xff] %v723_v3  ;;  %v736_v44 = vld [vmem:[%s1446_s0 + $0x188] sm:$0xff]  ;;  %v741_v39 = vld [vmem:[%s1446_s0 + $0x190] sm:$0xff] }
  0x14   :  { %1471 = vst [vmem:[#allocation9_spill] sm:$0xff] %v736_v44  ;;  %1472 = vst [vmem:[#allocation10_spill] sm:$0xff] %v741_v39  ;;  %v746_v52 = vld [vmem:[%s1446_s0 + $0x198] sm:$0xff]  ;;  %v759_v37 = vld [vmem:[%s1446_s0 + $0x1a0] sm:$0xff]  ;;  %v1479_v39 = vsub.f32 %v413_v11, %v417_v12  ;;  %v1483_v11 = vsub.f32 %v437_v16, %v417_v12 }
  0x15   :  { %1473 = vst [vmem:[#allocation11_spill] sm:$0xff] %v746_v52  ;;  %1474 = vst [vmem:[#allocation12_spill] sm:$0xff] %v759_v37  ;;  %v764_v36 = vld [vmem:[%s1446_s0 + $0x1a8] sm:$0xff]  ;;  %v769_v45 = vld [vmem:[%s1446_s0 + $0x1b0] sm:$0xff]  ;;  %v1477_v37 = vsub.s32 0, %v402_v5 }
  0x16   :  { %v782_v30 = vld [vmem:[%s1446_s0 + $0x1b8] sm:$0xff]  ;;  %v787_v7 = vld [vmem:[%s1446_s0 + $0x1c0] sm:$0xff]  ;;  %v792_v38 = vld [vmem:[%s1446_s0 + $0x1c8] sm:$0xff] }
  0x17   :  { %v805_v55 = vld [vmem:[%s1446_s0 + $0x1d0] sm:$0xff]  ;;  %v810_v8 = vld [vmem:[%s1446_s0 + $0x1d8] sm:$0xff]  ;;  %v815_v31 = vld [vmem:[%s1446_s0 + $0x1e0] sm:$0xff] }
  0x18   :  { %v826_v3 = vld [vmem:[%s1446_s0 + $0x1e8] sm:$0xff]  ;;  %v831_v46 = vld [vmem:[%s1446_s0 + $0x1f0] sm:$0xff]  ;;  %v859_v54 = vld [vmem:[%s1448_s3] ss:$0 sm:$0xff] }
  0x19   :  { %v370_v53 = vpop.eup %369  ;;  %1475 = vst [vmem:[#allocation13_spill] sm:$0xff] %v831_v46 }
  0x1a   :  { %v159_v60 = vmul.f32 %v370_v53, %v158_v6  ;;  %v836_v53 = vld [vmem:[%s1446_s0 + $0x1f8] sm:$0xff]  ;;  %v1478_v6 = vsub.f32 %v408_v9, %v417_v12  ;;  %v1482_v9 = vsub.f32 %v432_v15, %v417_v12 }
  0x1b   :  { %1476 = vst [vmem:[#allocation14_spill] sm:$0xff] %v836_v53 }
  0x1c   :  { %v848_v52 = vrot.slane %v159_v60, %v1477_v37  ;;  %v1481_v37 = vsub.f32 %v427_v14, %v417_v12  ;;  %v1485_v14 = vsub.f32 %v447_v19, %v417_v12  ;;  %v1486_v19 = vsub.f32 %v452_v20, %v417_v12 }
  0x1d   :  { %v1490_v20 = vsub.f32 %v472_v24, %v417_v12 }
  0x1e   :  { %v164_v47 = vmul.f32 %v848_v52, %v1478_v6  ;;  %v165_v44 = vmul.f32 %v848_v52, %v1479_v39  ;;  %v166_v5 = vmul.f32 %v848_v52, %v1480_v63  ;;  %v167_v60 = vmul.f32 %v848_v52, %v1481_v37 }
  0x1f   :  { %v168_v6 = vmul.f32 %v848_v52, %v1482_v9  ;;  %v169_v39 = vmul.f32 %v848_v52, %v1483_v11  ;;  %v170_v63 = vmul.f32 %v848_v52, %v1484_v13  ;;  %v171_v37 = vmul.f32 %v848_v52, %v1485_v14 }
  0x20   :  { %v235_v53 = vadd.f32 %v859_v54, %v164_v47  ;;  %v236_v15 = vadd.f32 %v859_v54, %v165_v44  ;;  %v237_v9 = vadd.f32 %v859_v54, %v166_v5  ;;  %v238_v16 = vadd.f32 %v859_v54, %v167_v60 }
  0x21   :  { %v239_v11 = vadd.f32 %v859_v54, %v168_v6  ;;  %v240_v46 = vadd.f32 %v859_v54, %v169_v39  ;;  %v241_v18 = vadd.f32 %v859_v54, %v170_v63  ;;  %v242_v13 = vadd.f32 %v859_v54, %v171_v37 }
  0x22   :  { %300 = vst.msk [vmem:[%s1449_s4] sm:$0xff] %vm299_vm0, %v235_v53  ;;  %301 = vst.msk [vmem:[%s1449_s4 + $0x8] sm:$0xff] %vm299_vm0, %v236_v15  ;;  %v172_v44 = vmul.f32 %v848_v52, %v1486_v19  ;;  %v1487_v47 = vsub.f32 %v457_v21, %v417_v12  ;;  %v1488_v5 = vsub.f32 %v462_v22, %v417_v12 }
  0x23   :  { %302 = vst.msk [vmem:[%s1449_s4 + $0x10] sm:$0xff] %vm299_vm0, %v237_v9  ;;  %303 = vst.msk [vmem:[%s1449_s4 + $0x18] sm:$0xff] %vm299_vm0, %v238_v16  ;;  %v1489_v6 = vsub.f32 %v467_v23, %v417_v12  ;;  %v176_v21 = vmul.f32 %v848_v52, %v1490_v20  ;;  %v1491_v22 = vsub.f32 %v477_v25, %v417_v12 }
  0x24   :  { %v173_v53 = vmul.f32 %v848_v52, %v1487_v47  ;;  %v174_v60 = vmul.f32 %v848_v52, %v1488_v5  ;;  %304 = vst.msk [vmem:[%s1449_s4 + $0x20] sm:$0xff] %vm299_vm0, %v239_v11  ;;  %305 = vst.msk [vmem:[%s1449_s4 + $0x28] sm:$0xff] %vm299_vm0, %v240_v46  ;;  %v1492_v46 = vsub.f32 %v482_v26, %v417_v12 }
  0x25   :  { %v175_v39 = vmul.f32 %v848_v52, %v1489_v6  ;;  %306 = vst.msk [vmem:[%s1449_s4 + $0x30] sm:$0xff] %vm299_vm0, %v241_v18  ;;  %307 = vst.msk [vmem:[%s1449_s4 + $0x38] sm:$0xff] %vm299_vm0, %v242_v13  ;;  %v177_v23 = vmul.f32 %v848_v52, %v1491_v22  ;;  %v1493_v14 = vsub.f32 %v487_v27, %v417_v12 }
  0x26   :  { %v178_v63 = vmul.f32 %v848_v52, %v1492_v46  ;;  %v243_v15 = vadd.f32 %v859_v54, %v172_v44  ;;  %v244_v24 = vadd.f32 %v859_v54, %v173_v53  ;;  %v245_v9 = vadd.f32 %v859_v54, %v174_v60 }
  0x27   :  { %v179_v37 = vmul.f32 %v848_v52, %v1493_v14  ;;  %v246_v25 = vadd.f32 %v859_v54, %v175_v39  ;;  %v247_v16 = vadd.f32 %v859_v54, %v176_v21  ;;  %v248_v11 = vadd.f32 %v859_v54, %v177_v23 }
  0x28   :  { %v249_v26 = vadd.f32 %v859_v54, %v178_v63  ;;  %308 = vst.msk [vmem:[%s1449_s4 + $0x40] sm:$0xff] %vm299_vm0, %v243_v15  ;;  %309 = vst.msk [vmem:[%s1449_s4 + $0x48] sm:$0xff] %vm299_vm0, %v244_v24  ;;  %v1494_v27 = vsub.f32 %v492_v28, %v417_v12  ;;  %v1495_v19 = vsub.f32 %v497_v29, %v417_v12 }
  0x29   :  { %v250_v18 = vadd.f32 %v859_v54, %v179_v37  ;;  %310 = vst.msk [vmem:[%s1449_s4 + $0x50] sm:$0xff] %vm299_vm0, %v245_v9  ;;  %311 = vst.msk [vmem:[%s1449_s4 + $0x58] sm:$0xff] %vm299_vm0, %v246_v25  ;;  %v1496_v47 = vsub.f32 %v506_v32, %v417_v12  ;;  %v1497_v5 = vsub.f32 %v511_v33, %v417_v12 }
  0x2a   :  { %v180_v13 = vmul.f32 %v848_v52, %v1494_v27  ;;  %v181_v44 = vmul.f32 %v848_v52, %v1495_v19  ;;  %312 = vst.msk [vmem:[%s1449_s4 + $0x60] sm:$0xff] %vm299_vm0, %v247_v16  ;;  %313 = vst.msk [vmem:[%s1449_s4 + $0x68] sm:$0xff] %vm299_vm0, %v248_v11  ;;  %v1498_v28 = vsub.f32 %v516_v34, %v417_v12 }
  0x2b   :  { %v182_v53 = vmul.f32 %v848_v52, %v1496_v47  ;;  %v183_v60 = vmul.f32 %v848_v52, %v1497_v5  ;;  %314 = vst.msk [vmem:[%s1449_s4 + $0x70] sm:$0xff] %vm299_vm0, %v249_v26  ;;  %315 = vst.msk [vmem:[%s1449_s4 + $0x78] sm:$0xff] %vm299_vm0, %v250_v18  ;;  %v1499_v32 = vsub.f32 %v521_v35, %v417_v12 }
  0x2c   :  { %v184_v29 = vmul.f32 %v848_v52, %v1498_v28  ;;  %v1500_v6 = vsub.f32 %v534_v40, %v417_v12  ;;  %v1501_v20 = vsub.f32 %v539_v41, %v417_v12  ;;  %v251_v22 = vadd.f32 %v859_v54, %v180_v13 }
  0x2d   :  { %v185_v33 = vmul.f32 %v848_v52, %v1499_v32  ;;  %v252_v34 = vadd.f32 %v859_v54, %v181_v44  ;;  %v253_v23 = vadd.f32 %v859_v54, %v182_v53  ;;  %v254_v35 = vadd.f32 %v859_v54, %v183_v60 }
  0x2e   :  { %v186_v39 = vmul.f32 %v848_v52, %v1500_v6  ;;  %v187_v21 = vmul.f32 %v848_v52, %v1501_v20  ;;  %v255_v46 = vadd.f32 %v859_v54, %v184_v29  ;;  %316 = vst.msk [vmem:[%s1449_s4 + $0x80] sm:$0xff] %vm299_vm0, %v251_v22  ;;  %v1502_v41 = vsub.f32 %v544_v42, %v417_v12 }
  0x2f   :  { %v256_v63 = vadd.f32 %v859_v54, %v185_v33  ;;  %317 = vst.msk [vmem:[%s1449_s4 + $0x88] sm:$0xff] %vm299_vm0, %v252_v34  ;;  %318 = vst.msk [vmem:[%s1449_s4 + $0x90] sm:$0xff] %vm299_vm0, %v253_v23  ;;  %v1503_v15 = vsub.f32 %v549_v43, %v417_v12  ;;  %v1504_v9 = vsub.f32 %v562_v48, %v417_v12 }
  0x30   :  { %v257_v40 = vadd.f32 %v859_v54, %v186_v39  ;;  %v258_v14 = vadd.f32 %v859_v54, %v187_v21  ;;  %319 = vst.msk [vmem:[%s1449_s4 + $0x98] sm:$0xff] %vm299_vm0, %v254_v35  ;;  %v188_v37 = vmul.f32 %v848_v52, %v1502_v41  ;;  %v1505_v16 = vsub.f32 %v567_v49, %v417_v12 }
  0x31   :  { %v189_v24 = vmul.f32 %v848_v52, %v1503_v15  ;;  %v190_v25 = vmul.f32 %v848_v52, %v1504_v9  ;;  %320 = vst.msk [vmem:[%s1449_s4 + $0xa0] sm:$0xff] %vm299_vm0, %v255_v46  ;;  %321 = vst.msk [vmem:[%s1449_s4 + $0xa8] sm:$0xff] %vm299_vm0, %v256_v63  ;;  %v1506_v42 = vsub.f32 %v572_v50, %v417_v12  ;;  %v1520_v15 = vld [vmem:[#allocation2_spill] sm:$0xff] }
  0x32   :  { %v191_v11 = vmul.f32 %v848_v52, %v1505_v16  ;;  %322 = vst.msk [vmem:[%s1449_s4 + $0xb0] sm:$0xff] %vm299_vm0, %v257_v40  ;;  %323 = vst.msk [vmem:[%s1449_s4 + $0xb8] sm:$0xff] %vm299_vm0, %v258_v14  ;;  %v1507_v48 = vsub.f32 %v577_v51, %v417_v12  ;;  %v1508_v26 = vsub.f32 %v590_v56, %v417_v12 }
  0x33   :  { %v192_v43 = vmul.f32 %v848_v52, %v1506_v42  ;;  %v1509_v27 = vsub.f32 %v595_v57, %v417_v12  ;;  %v259_v19 = vadd.f32 %v859_v54, %v188_v37  ;;  %v260_v50 = vadd.f32 %v859_v54, %v189_v24 }
  0x34   :  { %v193_v49 = vmul.f32 %v848_v52, %v1507_v48  ;;  %v194_v18 = vmul.f32 %v848_v52, %v1508_v26  ;;  %v261_v44 = vadd.f32 %v859_v54, %v190_v25  ;;  %v262_v51 = vadd.f32 %v859_v54, %v191_v11  ;;  %v1522_v25 = vld [vmem:[#allocation3_spill] sm:$0xff]  ;;  %v1528_v26 = vld [vmem:[#allocation6_spill] sm:$0xff] }
  0x35   :  { %v195_v13 = vmul.f32 %v848_v52, %v1509_v27  ;;  %v263_v47 = vadd.f32 %v859_v54, %v192_v43  ;;  %324 = vst.msk [vmem:[%s1449_s4 + $0xc0] sm:$0xff] %vm299_vm0, %v259_v19  ;;  %325 = vst.msk [vmem:[%s1449_s4 + $0xc8] sm:$0xff] %vm299_vm0, %v260_v50  ;;  %v1510_v57 = vsub.f32 %v600_v58, %v417_v12  ;;  %v1526_v43 = vld [vmem:[#allocation5_spill] sm:$0xff] }
  0x36   :  { %v264_v53 = vadd.f32 %v859_v54, %v193_v49  ;;  %v265_v56 = vadd.f32 %v859_v54, %v194_v18  ;;  %326 = vst.msk [vmem:[%s1449_s4 + $0xd0] sm:$0xff] %vm299_vm0, %v261_v44  ;;  %327 = vst.msk [vmem:[%s1449_s4 + $0xd8] sm:$0xff] %vm299_vm0, %v262_v51  ;;  %v1511_v28 = vsub.f32 %v605_v59, %v417_v12 }
  0x37   :  { %v266_v5 = vadd.f32 %v859_v54, %v195_v13  ;;  %v196_v60 = vmul.f32 %v848_v52, %v1510_v57  ;;  %v1512_v32 = vsub.f32 %v618_v0, %v417_v12  ;;  %v1513_v6 = vsub.f32 %v623_v1, %v417_v12  ;;  %328 = vst.msk [vmem:[%s1449_s4 + $0xe0] sm:$0xff] %vm299_vm0, %v263_v47  ;;  %v1530_v13 = vld [vmem:[#allocation7_spill] sm:$0xff] }
  0x38   :  { %v197_v29 = vmul.f32 %v848_v52, %v1511_v28  ;;  %329 = vst.msk [vmem:[%s1449_s4 + $0xe8] sm:$0xff] %vm299_vm0, %v264_v53  ;;  %330 = vst.msk [vmem:[%s1449_s4 + $0xf0] sm:$0xff] %vm299_vm0, %v265_v56  ;;  %v1514_v58 = vsub.f32 %v628_v2, %v417_v12  ;;  %v1515_v0 = vsub.f32 %v641_v10, %v417_v12  ;;  %v1532_v28 = vld [vmem:[#allocation8_spill] sm:$0xff] }
  0x39   :  { %v198_v33 = vmul.f32 %v848_v52, %v1512_v32  ;;  %v199_v39 = vmul.f32 %v848_v52, %v1513_v6  ;;  %331 = vst.msk [vmem:[%s1449_s4 + $0xf8] sm:$0xff] %vm299_vm0, %v266_v5  ;;  %v1516_v20 = vsub.f32 %v646_v17, %v417_v12  ;;  %v1517_v22 = vsub.f32 %v651_v4, %v417_v12 }
  0x3a   :  { %v200_v59 = vmul.f32 %v848_v52, %v1514_v58  ;;  %v201_v1 = vmul.f32 %v848_v52, %v1515_v0  ;;  %v267_v23 = vadd.f32 %v859_v54, %v196_v60  ;;  %v268_v2 = vadd.f32 %v859_v54, %v197_v29  ;;  %v1536_v58 = vld [vmem:[#allocation10_spill] sm:$0xff] }
  0x3b   :  { %v202_v21 = vmul.f32 %v848_v52, %v1516_v20  ;;  %v203_v34 = vmul.f32 %v848_v52, %v1517_v22  ;;  %v269_v35 = vadd.f32 %v859_v54, %v198_v33  ;;  %v270_v10 = vadd.f32 %v859_v54, %v199_v39  ;;  %v1534_v33 = vld [vmem:[#allocation9_spill] sm:$0xff]  ;;  %v1540_v22 = vld [vmem:[#allocation12_spill] sm:$0xff] }
  0x3c   :  { %v271_v46 = vadd.f32 %v859_v54, %v200_v59  ;;  %v272_v63 = vadd.f32 %v859_v54, %v201_v1  ;;  %332 = vst.msk [vmem:[%s1449_s4 + $0x100] sm:$0xff] %vm299_vm0, %v267_v23  ;;  %333 = vst.msk [vmem:[%s1449_s4 + $0x108] sm:$0xff] %vm299_vm0, %v268_v2  ;;  %v1518_v4 = vsub.f32 %v664_v62, %v417_v12  ;;  %v1538_v1 = vld [vmem:[#allocation11_spill] sm:$0xff] }
  0x3d   :  { %v273_v17 = vadd.f32 %v859_v54, %v202_v21  ;;  %v274_v40 = vadd.f32 %v859_v54, %v203_v34  ;;  %334 = vst.msk [vmem:[%s1449_s4 + $0x110] sm:$0xff] %vm299_vm0, %v269_v35  ;;  %335 = vst.msk [vmem:[%s1449_s4 + $0x118] sm:$0xff] %vm299_vm0, %v270_v10  ;;  %v1519_v41 = vsub.f32 %v669_v61, %v417_v12  ;;  %v1524_v61 = vld [vmem:[#allocation4_spill] sm:$0xff] }
  0x3e   :  { %v204_v14 = vmul.f32 %v848_v52, %v1518_v4  ;;  %v1521_v24 = vsub.f32 %v1520_v15, %v417_v12  ;;  %v1523_v16 = vsub.f32 %v1522_v25, %v417_v12  ;;  %336 = vst.msk [vmem:[%s1449_s4 + $0x120] sm:$0xff] %vm299_vm0, %v271_v46  ;;  %337 = vst.msk [vmem:[%s1449_s4 + $0x128] sm:$0xff] %vm299_vm0, %v272_v63 }
  0x3f   :  { %v205_v37 = vmul.f32 %v848_v52, %v1519_v41  ;;  %338 = vst.msk [vmem:[%s1449_s4 + $0x130] sm:$0xff] %vm299_vm0, %v273_v17  ;;  %339 = vst.msk [vmem:[%s1449_s4 + $0x138] sm:$0xff] %vm299_vm0, %v274_v40  ;;  %v1525_v62 = vsub.f32 %v1524_v61, %v417_v12  ;;  %v1527_v48 = vsub.f32 %v1526_v43, %v417_v12 }
  0x40   :  { %v206_v9 = vmul.f32 %v848_v52, %v1521_v24  ;;  %v207_v11 = vmul.f32 %v848_v52, %v1523_v16  ;;  %v1529_v18 = vsub.f32 %v1528_v26, %v417_v12  ;;  %v1531_v19 = vsub.f32 %v1530_v13, %v417_v12 }
  0x41   :  { %v208_v42 = vmul.f32 %v848_v52, %v1525_v62  ;;  %v209_v49 = vmul.f32 %v848_v52, %v1527_v48  ;;  %v275_v44 = vadd.f32 %v859_v54, %v204_v14  ;;  %v276_v51 = vadd.f32 %v859_v54, %v205_v37 }
  0x42   :  { %v210_v27 = vmul.f32 %v848_v52, %v1529_v18  ;;  %v211_v50 = vmul.f32 %v848_v52, %v1531_v19  ;;  %v277_v47 = vadd.f32 %v859_v54, %v206_v9  ;;  %v278_v53 = vadd.f32 %v859_v54, %v207_v11 }
  0x43   :  { %v279_v56 = vadd.f32 %v859_v54, %v208_v42  ;;  %v280_v5 = vadd.f32 %v859_v54, %v209_v49  ;;  %340 = vst.msk [vmem:[%s1449_s4 + $0x140] sm:$0xff] %vm299_vm0, %v275_v44  ;;  %341 = vst.msk [vmem:[%s1449_s4 + $0x148] sm:$0xff] %vm299_vm0, %v276_v51  ;;  %v1533_v29 = vsub.f32 %v1532_v28, %v417_v12  ;;  %v1551_v42 = vld [vmem:[#allocation13_spill] sm:$0xff]  ;;  %v1553_v49 = vld [vmem:[#allocation14_spill] sm:$0xff] }
  0x44   :  { %v281_v57 = vadd.f32 %v859_v54, %v210_v27  ;;  %v282_v60 = vadd.f32 %v859_v54, %v211_v50  ;;  %342 = vst.msk [vmem:[%s1449_s4 + $0x150] sm:$0xff] %vm299_vm0, %v277_v47  ;;  %343 = vst.msk [vmem:[%s1449_s4 + $0x158] sm:$0xff] %vm299_vm0, %v278_v53  ;;  %v1535_v6 = vsub.f32 %v1534_v33, %v417_v12 }
  0x45   :  { %v212_v32 = vmul.f32 %v848_v52, %v1533_v29  ;;  %v1537_v59 = vsub.f32 %v1536_v58, %v417_v12  ;;  %v1539_v20 = vsub.f32 %v1538_v1, %v417_v12  ;;  %344 = vst.msk [vmem:[%s1449_s4 + $0x160] sm:$0xff] %vm299_vm0, %v279_v56  ;;  %345 = vst.msk [vmem:[%s1449_s4 + $0x168] sm:$0xff] %vm299_vm0, %v280_v5 }
  0x46   :  { %v213_v39 = vmul.f32 %v848_v52, %v1535_v6  ;;  %346 = vst.msk [vmem:[%s1449_s4 + $0x170] sm:$0xff] %vm299_vm0, %v281_v57  ;;  %347 = vst.msk [vmem:[%s1449_s4 + $0x178] sm:$0xff] %vm299_vm0, %v282_v60  ;;  %v1541_v34 = vsub.f32 %v1540_v22, %v417_v12  ;;  %v1542_v2 = vsub.f32 %v764_v36, %v417_v12 }
  0x47   :  { %v214_v0 = vmul.f32 %v848_v52, %v1537_v59  ;;  %v215_v21 = vmul.f32 %v848_v52, %v1539_v20  ;;  %v1543_v10 = vsub.f32 %v769_v45, %v417_v12  ;;  %v1544_v63 = vsub.f32 %v782_v30, %v417_v12 }
  0x48   :  { %v216_v23 = vmul.f32 %v848_v52, %v1541_v34  ;;  %v217_v35 = vmul.f32 %v848_v52, %v1542_v2  ;;  %v283_v40 = vadd.f32 %v859_v54, %v212_v32  ;;  %v284_v4 = vadd.f32 %v859_v54, %v213_v39 }
  0x49   :  { %v218_v46 = vmul.f32 %v848_v52, %v1543_v10  ;;  %v219_v17 = vmul.f32 %v848_v52, %v1544_v63  ;;  %v285_v14 = vadd.f32 %v859_v54, %v214_v0  ;;  %v286_v36 = vadd.f32 %v859_v54, %v215_v21 }
  0x4a   :  { %v287_v41 = vadd.f32 %v859_v54, %v216_v23  ;;  %v288_v37 = vadd.f32 %v859_v54, %v217_v35  ;;  %348 = vst.msk [vmem:[%s1449_s4 + $0x180] sm:$0xff] %vm299_vm0, %v283_v40  ;;  %349 = vst.msk [vmem:[%s1449_s4 + $0x188] sm:$0xff] %vm299_vm0, %v284_v4  ;;  %v1545_v30 = vsub.f32 %v787_v7, %v417_v12 }
  0x4b   :  { %v289_v45 = vadd.f32 %v859_v54, %v218_v46  ;;  %v290_v15 = vadd.f32 %v859_v54, %v219_v17  ;;  %350 = vst.msk [vmem:[%s1449_s4 + $0x190] sm:$0xff] %vm299_vm0, %v285_v14  ;;  %351 = vst.msk [vmem:[%s1449_s4 + $0x198] sm:$0xff] %vm299_vm0, %v286_v36  ;;  %v1546_v9 = vsub.f32 %v792_v38, %v417_v12 }
  0x4c   :  { %v220_v24 = vmul.f32 %v848_v52, %v1545_v30  ;;  %v1547_v16 = vsub.f32 %v805_v55, %v417_v12  ;;  %v1548_v61 = vsub.f32 %v810_v8, %v417_v12  ;;  %352 = vst.msk [vmem:[%s1449_s4 + $0x1a0] sm:$0xff] %vm299_vm0, %v287_v41  ;;  %353 = vst.msk [vmem:[%s1449_s4 + $0x1a8] sm:$0xff] %vm299_vm0, %v288_v37 }
  0x4d   :  { %v221_v25 = vmul.f32 %v848_v52, %v1546_v9  ;;  %354 = vst.msk [vmem:[%s1449_s4 + $0x1b0] sm:$0xff] %vm299_vm0, %v289_v45  ;;  %355 = vst.msk [vmem:[%s1449_s4 + $0x1b8] sm:$0xff] %vm299_vm0, %v290_v15  ;;  %v1549_v7 = vsub.f32 %v815_v31, %v417_v12  ;;  %v1550_v55 = vsub.f32 %v826_v3, %v417_v12 }
  0x4e   :  { %v222_v11 = vmul.f32 %v848_v52, %v1547_v16  ;;  %v223_v62 = vmul.f32 %v848_v52, %v1548_v61  ;;  %v1552_v43 = vsub.f32 %v1551_v42, %v417_v12  ;;  %v1554_v26 = vsub.f32 %v1553_v49, %v417_v12 }
  0x4f   :  { %v224_v38 = vmul.f32 %v848_v52, %v1549_v7  ;;  %v225_v8 = vmul.f32 %v848_v52, %v1550_v55  ;;  %v291_v27 = vadd.f32 %v859_v54, %v220_v24  ;;  %v292_v31 = vadd.f32 %v859_v54, %v221_v25 }
  0x50   :  { %v226_v48 = vmul.f32 %v848_v52, %v1552_v43  ;;  %v227_v18 = vmul.f32 %v848_v52, %v1554_v26  ;;  %v293_v13 = vadd.f32 %v859_v54, %v222_v11  ;;  %v294_v3 = vadd.f32 %v859_v54, %v223_v62 }
  0x51   :  { %v295_v19 = vadd.f32 %v859_v54, %v224_v38  ;;  %v296_v50 = vadd.f32 %v859_v54, %v225_v8  ;;  %356 = vst.msk [vmem:[%s1449_s4 + $0x1c0] sm:$0xff] %vm299_vm0, %v291_v27  ;;  %357 = vst.msk [vmem:[%s1449_s4 + $0x1c8] sm:$0xff] %vm299_vm0, %v292_v31 }
  0x52   :  { %v297_v44 = vadd.f32 %v859_v54, %v226_v48  ;;  %v298_v51 = vadd.f32 %v859_v54, %v227_v18  ;;  %358 = vst.msk [vmem:[%s1449_s4 + $0x1d0] sm:$0xff] %vm299_vm0, %v293_v13  ;;  %359 = vst.msk [vmem:[%s1449_s4 + $0x1d8] sm:$0xff] %vm299_vm0, %v294_v3 }
  0x53   :  { %360 = vst.msk [vmem:[%s1449_s4 + $0x1e0] sm:$0xff] %vm299_vm0, %v295_v19  ;;  %361 = vst.msk [vmem:[%s1449_s4 + $0x1e8] sm:$0xff] %vm299_vm0, %v296_v50 }
  0x54   :  { %362 = vst.msk [vmem:[%s1449_s4 + $0x1f0] sm:$0xff] %vm299_vm0, %v297_v44  ;;  %363 = vst.msk [vmem:[%s1449_s4 + $0x1f8] sm:$0xff] %vm299_vm0, %v298_v51 }

</bundles_post_ra>
